<compile_context>
chip_gen: v7x
topology: tpu7x:2x2x1
jax: 0.10.0
libtpu: 0.0.40
codegen_flags: <defaults>
</compile_context>

<pallas_src>
import functools

import jax
import jax.numpy as jnp
from jax.experimental import pallas as pl
from jax.experimental.pallas import tpu as pltpu

D_MODEL = 768       # BERT hidden size
D_HID = 1024        # self.linear out_features
D_OUT = 1           # self.linear2 out_features


def _round_up(x, m):
    return -(-x // m) * m


def _mlp_head_kernel(q_ref, a_ref, w1q_ref, w1a_ref, b1_ref, w2_ref, b2_ref, o_ref):
    tm = q_ref.shape[0]

    # First linear on the (virtual) concatenation: q @ W1q + a @ W1a + b1.
    # bf16 operands, fp32 accumulation on the MXU.
    h = (jnp.dot(q_ref[...], w1q_ref[...], preferred_element_type=jnp.float32)
         + jnp.dot(a_ref[...], w1a_ref[...], preferred_element_type=jnp.float32)
         + b1_ref[...])
    h = jnp.maximum(h, 0.0)                                            # ReLU (VPU)

    # Second linear (1024 -> 1) as multiply + lane reduce: keeps the MXU free
    # (a (tm,1024)@(1024,1) matmul would light up 1 output column only).
    logit_col = jnp.sum(h * w2_ref[...], axis=1, keepdims=True) + b2_ref[...]   # (tm, 1)

    # Relayout (tm, 1) sublane-major -> (1, tm) lane-major for a lane-dense store:
    # place the column on the diagonal of a (tm, tm) tile, then reduce sublanes.
    # Exact (one non-zero per output lane), all 2-D ops.
    row = jax.lax.broadcasted_iota(jnp.int32, (tm, tm), 0)
    col = jax.lax.broadcasted_iota(jnp.int32, (tm, tm), 1)
    lane_logits = jnp.sum(jnp.where(row == col, logit_col, 0.0),
                          axis=0, keepdims=True)                       # (1, tm)

    # Sigmoid on the lane-dense row (EUP), then store the whole (1, 1, tm) block.
    o_ref[0, :, :] = jax.nn.sigmoid(lane_logits).astype(o_ref.dtype)


@functools.partial(jax.jit, static_argnames=("tm",))
def ffw_distance_head(q_hidden, a_hidden, w1, b1, w2, b2, *, tm=256):
    """q_hidden, a_hidden: (B, S, 768) float32.
    w1: (1536, 1024), b1: (1024,), w2: (1024, 1), b2: (1,)   [in, out] layout.
    Returns the same as the PyTorch forward after .squeeze(1):
    shape (B, S, 1) when S != 1, shape (B, 1) when S == 1.
    """
    B, S, D = q_hidden.shape
    assert D == D_MODEL and a_hidden.shape == (B, S, D)
    M = B * S

    # Row tile: full MXU LHS tile; must be a multiple of 128 (lane-dense output).
    # Clamp for small B*S so we do not pad far past M.
    tm = min(tm, _round_up(M, 128))
    assert tm % 128 == 0, "row tile must be a multiple of 128"
    M_pad = _round_up(M, tm)
    num_tiles = M_pad // tm

    # Activations and W1 in bf16 (fp32 accumulation inside the kernel).
    q2 = q_hidden.reshape(M, D).astype(jnp.bfloat16)
    a2 = a_hidden.reshape(M, D).astype(jnp.bfloat16)
    if M_pad != M:
        pad = ((0, M_pad - M), (0, 0))
        q2 = jnp.pad(q2, pad)
        a2 = jnp.pad(a2, pad)

    w1q = w1[:D_MODEL].astype(jnp.bfloat16)              # (768, 1024)
    w1a = w1[D_MODEL:].astype(jnp.bfloat16)              # (768, 1024)
    b1_2d = b1.reshape(1, D_HID).astype(jnp.float32)
    w2_2d = w2.reshape(1, D_HID).astype(jnp.float32)     # row layout for the VPU reduce
    b2_2d = b2.reshape(1, 1).astype(jnp.float32)

    out = pl.pallas_call(
        _mlp_head_kernel,
        out_shape=jax.ShapeDtypeStruct((num_tiles, 1, tm), jnp.float32),
        grid_spec=pltpu.PrefetchScalarGridSpec(
            num_scalar_prefetch=0,
            grid=(num_tiles,),
            in_specs=[
                pl.BlockSpec((tm, D_MODEL), lambda i: (i, 0)),       # q rows (bf16)
                pl.BlockSpec((tm, D_MODEL), lambda i: (i, 0)),       # a rows (bf16)
                pl.BlockSpec((D_MODEL, D_HID), lambda i: (0, 0)),    # W1 query half
                pl.BlockSpec((D_MODEL, D_HID), lambda i: (0, 0)),    # W1 answer half
                pl.BlockSpec((1, D_HID), lambda i: (0, 0)),          # b1
                pl.BlockSpec((1, D_HID), lambda i: (0, 0)),          # w2 as a row
                pl.BlockSpec((1, 1), lambda i: (0, 0)),              # b2
            ],
            out_specs=pl.BlockSpec((1, 1, tm), lambda i: (i, 0, 0)),  # lane-dense output
        ),
        compiler_params=pltpu.CompilerParams(
            dimension_semantics=("parallel",),
            vmem_limit_bytes=32 * 1024 * 1024,
        ),
    )(q2, a2, w1q, w1a, b1_2d, w2_2d, b2_2d)

    out = out.reshape(M_pad)[:M].reshape(B, S, D_OUT)
    if S == 1:  # torch .squeeze(1): only removes dim 1 when it is size 1
        out = out.reshape(B, D_OUT)
    return out


def _reference(q_hidden, a_hidden, w1, b1, w2, b2):
    x = jnp.concatenate([q_hidden, a_hidden], axis=2)          # (B, S, 1536)
    h = jnp.maximum(jnp.einsum("bsk,kn->bsn", x, w1) + b1, 0.0)
    o = jax.nn.sigmoid(jnp.einsum("bsk,kn->bsn", h, w2) + b2)
    if o.shape[1] == 1:
        o = o[:, 0, :]
    return o


if __name__ == "__main__":
    B, S = 2, 8
    key = jax.random.PRNGKey(0)
    kq, ka, kw1, kb1, kw2, kb2 = jax.random.split(key, 6)

    # Deterministic "hidden states" standing in for BERT last_hidden_state.
    q_hidden = jax.random.normal(kq, (B, S, D_MODEL), dtype=jnp.float32)
    a_hidden = jax.random.normal(ka, (B, S, D_MODEL), dtype=jnp.float32)

    # Deterministic parameter init (nn.Linear-style fan-in uniform), (in, out) layout.
    lim1 = 1.0 / jnp.sqrt(jnp.float32(2 * D_MODEL))
    lim2 = 1.0 / jnp.sqrt(jnp.float32(D_HID))
    w1 = jax.random.uniform(kw1, (2 * D_MODEL, D_HID), jnp.float32, -lim1, lim1)
    b1 = jax.random.uniform(kb1, (D_HID,), jnp.float32, -lim1, lim1)
    w2 = jax.random.uniform(kw2, (D_HID, D_OUT), jnp.float32, -lim2, lim2)
    b2 = jax.random.uniform(kb2, (D_OUT,), jnp.float32, -lim2, lim2)

    out = jax.block_until_ready(ffw_distance_head(q_hidden, a_hidden, w1, b1, w2, b2))

    ref = _reference(q_hidden, a_hidden, w1, b1, w2, b2)
    assert out.shape == ref.shape, (out.shape, ref.shape)
    # bf16 MXU inputs (fp32 accumulation) vs fp32 reference -> loosened tolerance.
    max_err = float(jnp.max(jnp.abs(out - ref)))
    assert jnp.allclose(out, ref, atol=2e-2, rtol=2e-2), f"mismatch vs reference: {max_err}"

    print("KERNEL_OK")
</pallas_src>

<mosaic_0001>
module attributes {stable_mosaic.version = 11 : i64} {
  func.func @_mlp_head_kernel(%arg0: i32, %arg1: memref<128x768xbf16, #tpu.memory_space<vmem>>, %arg2: memref<128x768xbf16, #tpu.memory_space<vmem>>, %arg3: memref<768x1024xbf16, #tpu.memory_space<vmem>>, %arg4: memref<768x1024xbf16, #tpu.memory_space<vmem>>, %arg5: memref<1x1024xf32, #tpu.memory_space<vmem>>, %arg6: memref<1x1024xf32, #tpu.memory_space<vmem>>, %arg7: memref<1x1xf32, #tpu.memory_space<vmem>>, %arg8: memref<1x1x128xf32, #tpu.memory_space<vmem>>) attributes {dimension_semantics = [#tpu.dimension_semantics<parallel>], iteration_bounds = array<i64: 1>, scalar_prefetch = 0 : i64, scratch_operands = 0 : i64, tpu.core_type = #tpu.core_type<tc>, window_params = [{transform_indices = @transform_0, window_bounds = array<i64: 128, 768>}, {transform_indices = @transform_1, window_bounds = array<i64: 128, 768>}, {pipeline_mode = #tpu.pipeline_mode<synchronous>, transform_indices = @transform_2, window_bounds = array<i64: 768, 1024>}, {pipeline_mode = #tpu.pipeline_mode<synchronous>, transform_indices = @transform_3, window_bounds = array<i64: 768, 1024>}, {pipeline_mode = #tpu.pipeline_mode<synchronous>, transform_indices = @transform_4, window_bounds = array<i64: 1, 1024>}, {pipeline_mode = #tpu.pipeline_mode<synchronous>, transform_indices = @transform_5, window_bounds = array<i64: 1, 1024>}, {pipeline_mode = #tpu.pipeline_mode<synchronous>, transform_indices = @transform_6, window_bounds = array<i64: 1, 1>}, {transform_indices = @transform_7, window_bounds = array<i64: 1, 1, 128>}]} {
    %c0 = arith.constant 0 : index
    %c0_0 = arith.constant 0 : index
    %0 = vector.load %arg1[%c0, %c0_0] : memref<128x768xbf16, #tpu.memory_space<vmem>>, vector<128x768xbf16>
    %c0_1 = arith.constant 0 : index
    %c0_2 = arith.constant 0 : index
    %1 = vector.load %arg3[%c0_1, %c0_2] : memref<768x1024xbf16, #tpu.memory_space<vmem>>, vector<768x1024xbf16>
    %cst = arith.constant dense<0.000000e+00> : vector<128x1024xf32>
    %2 = tpu.matmul %0, %1, %cst {dimension_numbers = #tpu.dot_dimension_numbers<[1], [0], [0], [1], [0, 0, 1, 1], [], []>} : vector<128x768xbf16>, vector<768x1024xbf16>, vector<128x1024xf32> -> vector<128x1024xf32>
    %c0_3 = arith.constant 0 : index
    %c0_4 = arith.constant 0 : index
    %3 = vector.load %arg2[%c0_3, %c0_4] : memref<128x768xbf16, #tpu.memory_space<vmem>>, vector<128x768xbf16>
    %c0_5 = arith.constant 0 : index
    %c0_6 = arith.constant 0 : index
    %4 = vector.load %arg4[%c0_5, %c0_6] : memref<768x1024xbf16, #tpu.memory_space<vmem>>, vector<768x1024xbf16>
    %cst_7 = arith.constant dense<0.000000e+00> : vector<128x1024xf32>
    %5 = tpu.matmul %3, %4, %cst_7 {dimension_numbers = #tpu.dot_dimension_numbers<[1], [0], [0], [1], [0, 0, 1, 1], [], []>} : vector<128x768xbf16>, vector<768x1024xbf16>, vector<128x1024xf32> -> vector<128x1024xf32>
    %6 = arith.addf %2, %5 : vector<128x1024xf32>
    %c0_8 = arith.constant 0 : index
    %c0_9 = arith.constant 0 : index
    %7 = vector.load %arg5[%c0_8, %c0_9] : memref<1x1024xf32, #tpu.memory_space<vmem>>, vector<1x1024xf32>
    %8 = vector.broadcast %7 : vector<1x1024xf32> to vector<128x1024xf32>
    %9 = arith.addf %6, %8 : vector<128x1024xf32>
    %cst_10 = arith.constant 0.000000e+00 : f32
    %10 = vector.broadcast %cst_10 : f32 to vector<128x1024xf32>
    %11 = arith.maximumf %9, %10 : vector<128x1024xf32>
    %c0_11 = arith.constant 0 : index
    %c0_12 = arith.constant 0 : index
    %12 = vector.load %arg6[%c0_11, %c0_12] : memref<1x1024xf32, #tpu.memory_space<vmem>>, vector<1x1024xf32>
    %13 = vector.broadcast %12 : vector<1x1024xf32> to vector<128x1024xf32>
    %14 = arith.mulf %11, %13 : vector<128x1024xf32>
    %cst_13 = arith.constant dense<0.000000e+00> : vector<128xf32>
    %15 = vector.multi_reduction <add>, %14, %cst_13 [1] : vector<128x1024xf32> to vector<128xf32>
    %16 = vector.shape_cast %15 : vector<128xf32> to vector<128x1xf32>
    %c0_14 = arith.constant 0 : index
    %c0_15 = arith.constant 0 : index
    %17 = vector.load %arg7[%c0_14, %c0_15] : memref<1x1xf32, #tpu.memory_space<vmem>>, vector<1x1xf32>
    %18 = vector.broadcast %17 : vector<1x1xf32> to vector<128x1xf32>
    %19 = arith.addf %16, %18 : vector<128x1xf32>
    %20 = tpu.iota {dimensions = array<i32: 0>} : vector<128x128xi32>
    %21 = tpu.iota {dimensions = array<i32: 1>} : vector<128x128xi32>
    %22 = arith.cmpi eq, %20, %21 : vector<128x128xi32>
    %cst_16 = arith.constant 0.000000e+00 : f32
    %23 = vector.shape_cast %19 : vector<128x1xf32> to vector<128x1xf32>
    %24 = vector.broadcast %23 : vector<128x1xf32> to vector<128x128xf32>
    %25 = vector.broadcast %cst_16 : f32 to vector<128x128xf32>
    %26 = arith.select %22, %24, %25 : vector<128x128xi1>, vector<128x128xf32>
    %cst_17 = arith.constant dense<0.000000e+00> : vector<128xf32>
    %27 = vector.multi_reduction <add>, %26, %cst_17 [0] : vector<128x128xf32> to vector<128xf32>
    %28 = vector.shape_cast %27 : vector<128xf32> to vector<1x128xf32>
    %29 = arith.negf %28 : vector<1x128xf32>
    %30 = math.exp %29 : vector<1x128xf32>
    %cst_18 = arith.constant 1.000000e+00 : f32
    %31 = vector.broadcast %cst_18 : f32 to vector<1x128xf32>
    %32 = arith.addf %31, %30 : vector<1x128xf32>
    %33 = arith.divf %31, %32 : vector<1x128xf32>
    %c0_19 = arith.constant 0 : index
    %c0_20 = arith.constant 0 : index
    %c0_21 = arith.constant 0 : index
    %34 = vector.load %arg8[%c0_19, %c0_20, %c0_21] : memref<1x1x128xf32, #tpu.memory_space<vmem>>, vector<1x1x128xf32>
    %35 = vector.shape_cast %34 : vector<1x1x128xf32> to vector<1x128xf32>
    %36 = vector.shape_cast %33 : vector<1x128xf32> to vector<1x1x128xf32>
    tpu.vector_store %arg8[%c0_19, %c0_20, %c0_21], %36 {strides = array<i32>} : memref<1x1x128xf32, #tpu.memory_space<vmem>>, vector<1x1x128xf32>,
    return
  }
  func.func @transform_0(%arg0: i32) -> (i32, i32) {
    %c0_i32 = arith.constant 0 : i32
    %c0_i32_0 = arith.constant 0 : i32
    return %arg0, %c0_i32 : i32, i32
  }
  func.func @transform_1(%arg0: i32) -> (i32, i32) {
    %c0_i32 = arith.constant 0 : i32
    %c0_i32_0 = arith.constant 0 : i32
    return %arg0, %c0_i32 : i32, i32
  }
  func.func @transform_2(%arg0: i32) -> (i32, i32) {
    %c0_i32 = arith.constant 0 : i32
    %c0_i32_0 = arith.constant 0 : i32
    %c0_i32_1 = arith.constant 0 : i32
    return %c0_i32, %c0_i32_0 : i32, i32
  }
  func.func @transform_3(%arg0: i32) -> (i32, i32) {
    %c0_i32 = arith.constant 0 : i32
    %c0_i32_0 = arith.constant 0 : i32
    %c0_i32_1 = arith.constant 0 : i32
    return %c0_i32, %c0_i32_0 : i32, i32
  }
  func.func @transform_4(%arg0: i32) -> (i32, i32) {
    %c0_i32 = arith.constant 0 : i32
    %c0_i32_0 = arith.constant 0 : i32
    %c0_i32_1 = arith.constant 0 : i32
    return %c0_i32, %c0_i32_0 : i32, i32
  }
  func.func @transform_5(%arg0: i32) -> (i32, i32) {
    %c0_i32 = arith.constant 0 : i32
    %c0_i32_0 = arith.constant 0 : i32
    %c0_i32_1 = arith.constant 0 : i32
    return %c0_i32, %c0_i32_0 : i32, i32
  }
  func.func @transform_6(%arg0: i32) -> (i32, i32) {
    %c0_i32 = arith.constant 0 : i32
    %c0_i32_0 = arith.constant 0 : i32
    %c0_i32_1 = arith.constant 0 : i32
    return %c0_i32, %c0_i32_0 : i32, i32
  }
  func.func @transform_7(%arg0: i32) -> (i32, i32, i32) {
    %c0_i32 = arith.constant 0 : i32
    %c0_i32_0 = arith.constant 0 : i32
    %c0_i32_1 = arith.constant 0 : i32
    return %arg0, %c0_i32, %c0_i32_0 : i32, i32, i32
  }
}

</mosaic_0001>

<bundles_post_ra>
// kernel: ffw_distance_head.1
= control target key start
LH: loop header
LB: loop body
LE: loop exit
PB: predicated region body
PF: predicated region fallthrough
CT: control target
= control target key end

     0   :  { %s13810_s3 = inlined_call_operand.vmem [shape: bf16[768,1024], index: 3, kind: input, shape index: {}]   ;;  %s13811_s1 = inlined_call_operand.vmem [shape: bf16[128,768], index: 1, kind: input, shape index: {}]   ;;  %s13812_s0 = inlined_call_operand.vmem [shape: bf16[128,768], index: 0, kind: input, shape index: {}]   ;;  %s13813_s2 = inlined_call_operand.vmem [shape: bf16[768,1024], index: 2, kind: input, shape index: {}]   ;;  %s13814_s4 = inlined_call_operand.vmem [shape: f32[1,1024], index: 4, kind: input, shape index: {}]   ;;  %s13815_s5 = inlined_call_operand.vmem [shape: f32[1,1024], index: 5, kind: input, shape index: {}]   ;;  %s13816_s6 = inlined_call_operand.<no memory space> [shape: f32[1,1], index: 6, kind: input, shape index: {}]   ;;  %s13817_s7 = inlined_call_operand.vmem [shape: f32[1,1,128], index: 7, kind: output, shape index: {}]  }
   0x1   :  { %v508_v0 = vld [vmem:[%s13810_s3] sm:$0xff]  ;;  %v509_v2 = vld [vmem:[%s13810_s3 + $0x8] sm:$0xff] }
   0x2   :  { %v512_v1 = vld [vmem:[%s13810_s3 + $0x20] sm:$0xff]  ;;  %v513_v4 = vld [vmem:[%s13810_s3 + $0x28] sm:$0xff] }
   0x3   :  { %v8771_v3 = vcombine.high %v508_v0, %v512_v1  ;;  %v8770_v5 = vcombine.low %v508_v0, %v512_v1  ;;  %v516_v6 = vld [vmem:[%s13810_s3 + $0x40] sm:$0xff]  ;;  %v8773_v8 = vcombine.high %v509_v2, %v513_v4  ;;  %v8772_v9 = vcombine.low %v509_v2, %v513_v4  ;;  %v517_v11 = vld [vmem:[%s13810_s3 + $0x48] sm:$0xff] }
   0x4   :  { %v520_v7 = vld [vmem:[%s13810_s3 + $0x60] sm:$0xff]  ;;  %v521_v12 = vld [vmem:[%s13810_s3 + $0x68] sm:$0xff] }
   0x5   :  { %v8779_v10 = vcombine.high %v516_v6, %v520_v7  ;;  %v524_v13 = vld [vmem:[%s13810_s3 + $0x80] sm:$0xff]  ;;  %3052 = vmatprep.subr.bf16.mxu0 %v8771_v3  ;;  %v8781_v14 = vcombine.high %v517_v11, %v521_v12  ;;  %v525_v16 = vld [vmem:[%s13810_s3 + $0x88] sm:$0xff]  ;;  %3391 = vmatprep.subr.bf16.mxu1 %v8773_v8  ;;  %v8778_v18 = vcombine.low %v516_v6, %v520_v7 }
   0x6   :  { %v528_v15 = vld [vmem:[%s13810_s3 + $0xa0] sm:$0xff]  ;;  %v529_v17 = vld [vmem:[%s13810_s3 + $0xa8] sm:$0xff]  ;;  %3053 = vmatpush1.bf16.msra.mxu0 %v8770_v5  ;;  %3392 = vmatpush1.bf16.msra.mxu1 %v8772_v9  ;;  %v8780_v19 = vcombine.low %v517_v11, %v521_v12 }
   0x7   :  { %3054 = vmatprep.subr.bf16.mxu0 %v8779_v10  ;;  %v8787_v20 = vcombine.high %v524_v13, %v528_v15  ;;  %3393 = vmatprep.subr.bf16.mxu1 %v8781_v14  ;;  %v8789_v21 = vcombine.high %v525_v16, %v529_v17  ;;  %v532_v22 = vld [vmem:[%s13810_s3 + $0xc0] sm:$0xff]  ;;  %v533_v24 = vld [vmem:[%s13810_s3 + $0xc8] sm:$0xff]  ;;  %v8786_v26 = vcombine.low %v524_v13, %v528_v15 }
   0x8   :  { %v536_v23 = vld [vmem:[%s13810_s3 + $0xe0] sm:$0xff]  ;;  %v537_v25 = vld [vmem:[%s13810_s3 + $0xe8] sm:$0xff]  ;;  %v8788_v27 = vcombine.low %v525_v16, %v529_v17 }
   0x9   :  { %v8795_v28 = vcombine.high %v532_v22, %v536_v23  ;;  %v8797_v29 = vcombine.high %v533_v24, %v537_v25  ;;  %v540_v30 = vld [vmem:[%s13810_s3 + $0x100] sm:$0xff]  ;;  %v541_v32 = vld [vmem:[%s13810_s3 + $0x108] sm:$0xff]  ;;  %v8794_v34 = vcombine.low %v532_v22, %v536_v23  ;;  %v8796_v35 = vcombine.low %v533_v24, %v537_v25 }
   0xa   :  { %3055 = vmatpush1.bf16.msra.mxu0 %v8778_v18  ;;  %3394 = vmatpush1.bf16.msra.mxu1 %v8780_v19  ;;  %v544_v31 = vld [vmem:[%s13810_s3 + $0x120] sm:$0xff]  ;;  %v545_v33 = vld [vmem:[%s13810_s3 + $0x128] sm:$0xff] }
   0xb   :  { %3056 = vmatprep.subr.bf16.mxu0 %v8787_v20  ;;  %3395 = vmatprep.subr.bf16.mxu1 %v8789_v21  ;;  %v8803_v36 = vcombine.high %v540_v30, %v544_v31  ;;  %v8805_v37 = vcombine.high %v541_v32, %v545_v33  ;;  %v548_v38 = vld [vmem:[%s13810_s3 + $0x140] sm:$0xff]  ;;  %v549_v40 = vld [vmem:[%s13810_s3 + $0x148] sm:$0xff]  ;;  %v8802_v42 = vcombine.low %v540_v30, %v544_v31 }
   0xc   :  { %v552_v39 = vld [vmem:[%s13810_s3 + $0x160] sm:$0xff]  ;;  %v553_v41 = vld [vmem:[%s13810_s3 + $0x168] sm:$0xff]  ;;  %v8804_v43 = vcombine.low %v541_v32, %v545_v33 }
   0xd   :  { %v8811_v44 = vcombine.high %v548_v38, %v552_v39  ;;  %v8813_v45 = vcombine.high %v549_v40, %v553_v41  ;;  %v556_v46 = vld [vmem:[%s13810_s3 + $0x180] sm:$0xff]  ;;  %v557_v48 = vld [vmem:[%s13810_s3 + $0x188] sm:$0xff]  ;;  %v8810_v50 = vcombine.low %v548_v38, %v552_v39  ;;  %v8812_v51 = vcombine.low %v549_v40, %v553_v41 }
   0xe   :  { %3057 = vmatpush1.bf16.msra.mxu0 %v8786_v26  ;;  %3396 = vmatpush1.bf16.msra.mxu1 %v8788_v27  ;;  %v560_v47 = vld [vmem:[%s13810_s3 + $0x1a0] sm:$0xff]  ;;  %v561_v49 = vld [vmem:[%s13810_s3 + $0x1a8] sm:$0xff] }
   0xf   :  { %3058 = vmatprep.subr.bf16.mxu0 %v8795_v28  ;;  %3397 = vmatprep.subr.bf16.mxu1 %v8797_v29  ;;  %v8819_v52 = vcombine.high %v556_v46, %v560_v47  ;;  %v8821_v53 = vcombine.high %v557_v48, %v561_v49  ;;  %v564_v54 = vld [vmem:[%s13810_s3 + $0x1c0] sm:$0xff]  ;;  %v565_v57 = vld [vmem:[%s13810_s3 + $0x1c8] sm:$0xff]  ;;  %v8818_v59 = vcombine.low %v556_v46, %v560_v47 }
  0x10   :  { %v568_v55 = vld [vmem:[%s13810_s3 + $0x1e0] sm:$0xff]  ;;  %v569_v58 = vld [vmem:[%s13810_s3 + $0x1e8] sm:$0xff]  ;;  %v8820_v60 = vcombine.low %v557_v48, %v561_v49 }
  0x11   :  { %v10231_v56 = vld [vmem:[%s13811_s1 + $0x4] ss:$24 sps:$4 sm:$0xff]   ;;  %v8827_v61 = vcombine.high %v564_v54, %v568_v55  ;;  %v8829_v62 = vcombine.high %v565_v57, %v569_v58  ;;  %v573_v1 = vld [vmem:[%s13810_s3 + $0x208] sm:$0xff]  ;;  %v8826_v3 = vcombine.low %v564_v54, %v568_v55  ;;  %v8828_v4 = vcombine.low %v565_v57, %v569_v58 }
  0x12   :  { %3059 = vmatpush1.bf16.msra.mxu0 %v8794_v34  ;;  %3398 = vmatpush1.bf16.msra.mxu1 %v8796_v35  ;;  %v572_v63 = vld [vmem:[%s13810_s3 + $0x200] sm:$0xff]  ;;  %v577_v2 = vld [vmem:[%s13810_s3 + $0x228] sm:$0xff] }
  0x13   :  { %3060 = vmatprep.subr.bf16.mxu0 %v8803_v36  ;;  %3399 = vmatprep.subr.bf16.mxu1 %v8805_v37  ;;  %v576_v0 = vld [vmem:[%s13810_s3 + $0x220] sm:$0xff]  ;;  %v8837_v6 = vcombine.high %v573_v1, %v577_v2  ;;  %v581_v9 = vld [vmem:[%s13810_s3 + $0x248] sm:$0xff]  ;;  %v8836_v12 = vcombine.low %v573_v1, %v577_v2 }
  0x14   :  { %3084 = vmatprep.mubr.bf16.mxu0 %v10231_v56  ;;  %3423 = vmatprep.mubr.bf16.mxu1 %v10231_v56  ;;  %v8835_v5 = vcombine.high %v572_v63, %v576_v0  ;;  %v580_v7 = vld [vmem:[%s13810_s3 + $0x240] sm:$0xff]  ;;  %v585_v10 = vld [vmem:[%s13810_s3 + $0x268] sm:$0xff]  ;;  %v8834_v11 = vcombine.low %v572_v63, %v576_v0 }
  0x15   :  { %v584_v8 = vld [vmem:[%s13810_s3 + $0x260] sm:$0xff]  ;;  %v8845_v14 = vcombine.high %v581_v9, %v585_v10  ;;  %v589_v17 = vld [vmem:[%s13810_s3 + $0x288] sm:$0xff]  ;;  %v8844_v20 = vcombine.low %v581_v9, %v585_v10 }
  0x16   :  { %3061 = vmatpush1.bf16.msra.mxu0 %v8802_v42  ;;  %3400 = vmatpush1.bf16.msra.mxu1 %v8804_v43  ;;  %v8843_v13 = vcombine.high %v580_v7, %v584_v8  ;;  %v588_v15 = vld [vmem:[%s13810_s3 + $0x280] sm:$0xff]  ;;  %v593_v18 = vld [vmem:[%s13810_s3 + $0x2a8] sm:$0xff]  ;;  %v8842_v19 = vcombine.low %v580_v7, %v584_v8 }
  0x17   :  { %3062 = vmatprep.subr.bf16.mxu0 %v8811_v44  ;;  %3401 = vmatprep.subr.bf16.mxu1 %v8813_v45  ;;  %v592_v16 = vld [vmem:[%s13810_s3 + $0x2a0] sm:$0xff]  ;;  %v8853_v22 = vcombine.high %v589_v17, %v593_v18  ;;  %v597_v25 = vld [vmem:[%s13810_s3 + $0x2c8] sm:$0xff]  ;;  %v8852_v28 = vcombine.low %v589_v17, %v593_v18 }
  0x18   :  { %v8851_v21 = vcombine.high %v588_v15, %v592_v16  ;;  %v596_v23 = vld [vmem:[%s13810_s3 + $0x2c0] sm:$0xff]  ;;  %v601_v26 = vld [vmem:[%s13810_s3 + $0x2e8] sm:$0xff]  ;;  %v8850_v27 = vcombine.low %v588_v15, %v592_v16 }
  0x19   :  { %v600_v24 = vld [vmem:[%s13810_s3 + $0x2e0] sm:$0xff]  ;;  %v8861_v30 = vcombine.high %v597_v25, %v601_v26  ;;  %v605_v33 = vld [vmem:[%s13810_s3 + $0x308] sm:$0xff]  ;;  %v8860_v36 = vcombine.low %v597_v25, %v601_v26 }
  0x1a   :  { %3063 = vmatpush1.bf16.msra.mxu0 %v8810_v50  ;;  %3402 = vmatpush1.bf16.msra.mxu1 %v8812_v51  ;;  %v8859_v29 = vcombine.high %v596_v23, %v600_v24  ;;  %v604_v31 = vld [vmem:[%s13810_s3 + $0x300] sm:$0xff]  ;;  %v609_v34 = vld [vmem:[%s13810_s3 + $0x328] sm:$0xff]  ;;  %v8858_v35 = vcombine.low %v596_v23, %v600_v24 }
  0x1b   :  { %3064 = vmatprep.subr.bf16.mxu0 %v8819_v52  ;;  %3403 = vmatprep.subr.bf16.mxu1 %v8821_v53  ;;  %v608_v32 = vld [vmem:[%s13810_s3 + $0x320] sm:$0xff]  ;;  %v8869_v38 = vcombine.high %v605_v33, %v609_v34  ;;  %v613_v41 = vld [vmem:[%s13810_s3 + $0x348] sm:$0xff]  ;;  %v8868_v44 = vcombine.low %v605_v33, %v609_v34 }
  0x1c   :  { %v8867_v37 = vcombine.high %v604_v31, %v608_v32  ;;  %v612_v39 = vld [vmem:[%s13810_s3 + $0x340] sm:$0xff]  ;;  %v617_v42 = vld [vmem:[%s13810_s3 + $0x368] sm:$0xff]  ;;  %v8866_v43 = vcombine.low %v604_v31, %v608_v32 }
  0x1d   :  { %v616_v40 = vld [vmem:[%s13810_s3 + $0x360] sm:$0xff]  ;;  %v8877_v46 = vcombine.high %v613_v41, %v617_v42  ;;  %v621_v49 = vld [vmem:[%s13810_s3 + $0x388] sm:$0xff]  ;;  %v8876_v52 = vcombine.low %v613_v41, %v617_v42 }
  0x1e   :  { %3065 = vmatpush1.bf16.msra.mxu0 %v8818_v59  ;;  %3404 = vmatpush1.bf16.msra.mxu1 %v8820_v60  ;;  %v8875_v45 = vcombine.high %v612_v39, %v616_v40  ;;  %v620_v47 = vld [vmem:[%s13810_s3 + $0x380] sm:$0xff]  ;;  %v625_v50 = vld [vmem:[%s13810_s3 + $0x3a8] sm:$0xff]  ;;  %v8874_v51 = vcombine.low %v612_v39, %v616_v40 }
  0x1f   :  { %3066 = vmatprep.subr.bf16.mxu0 %v8827_v61  ;;  %3405 = vmatprep.subr.bf16.mxu1 %v8829_v62  ;;  %v624_v48 = vld [vmem:[%s13810_s3 + $0x3a0] sm:$0xff]  ;;  %v8885_v54 = vcombine.high %v621_v49, %v625_v50  ;;  %v629_v57 = vld [vmem:[%s13810_s3 + $0x3c8] sm:$0xff]  ;;  %v8884_v60 = vcombine.low %v621_v49, %v625_v50 }
  0x20   :  { %v8883_v53 = vcombine.high %v620_v47, %v624_v48  ;;  %v628_v55 = vld [vmem:[%s13810_s3 + $0x3c0] sm:$0xff]  ;;  %v633_v58 = vld [vmem:[%s13810_s3 + $0x3e8] sm:$0xff]  ;;  %v8882_v59 = vcombine.low %v620_v47, %v624_v48 }
  0x21   :  { %v632_v56 = vld [vmem:[%s13810_s3 + $0x3e0] sm:$0xff]  ;;  %v8893_v62 = vcombine.high %v629_v57, %v633_v58  ;;  %v637_v1 = vld [vmem:[%s13810_s3 + $0x408] sm:$0xff] }
  0x22   :  { %3067 = vmatpush1.bf16.msra.mxu0 %v8826_v3  ;;  %3406 = vmatpush1.bf16.msra.mxu1 %v8828_v4  ;;  %v8891_v61 = vcombine.high %v628_v55, %v632_v56  ;;  %v636_v63 = vld [vmem:[%s13810_s3 + $0x400] sm:$0xff]  ;;  %v641_v2 = vld [vmem:[%s13810_s3 + $0x428] sm:$0xff]  ;;  %v8890_v3 = vcombine.low %v628_v55, %v632_v56  ;;  %v8892_v4 = vcombine.low %v629_v57, %v633_v58 }
  0x23   :  { %3068 = vmatprep.subr.bf16.mxu0 %v8835_v5  ;;  %3407 = vmatprep.subr.bf16.mxu1 %v8837_v6  ;;  %v640_v0 = vld [vmem:[%s13810_s3 + $0x420] sm:$0xff]  ;;  %v8901_v6 = vcombine.high %v637_v1, %v641_v2  ;;  %v645_v10 = vld [vmem:[%s13810_s3 + $0x448] sm:$0xff] }
  0x24   :  { %v8899_v5 = vcombine.high %v636_v63, %v640_v0  ;;  %v644_v7 = vld [vmem:[%s13810_s3 + $0x440] sm:$0xff]  ;;  %v10234_v16 = vld [vmem:[%s13811_s1 + $0x34] ss:$24 sps:$4 sm:$0xff]  }
  0x25   :  { %v648_v8 = vld [vmem:[%s13810_s3 + $0x460] sm:$0xff]  ;;  %v681_v47 = vld [vmem:[%s13810_s3 + $0x568] sm:$0xff] }
  0x26   :  { %3069 = vmatpush1.bf16.msra.mxu0 %v8834_v11  ;;  %3408 = vmatpush1.bf16.msra.mxu1 %v8836_v12  ;;  %v10233_v9 = vld [vmem:[%s13811_s1] ss:$24 sps:$4 sm:$0xff]   ;;  %v649_v11 = vld [vmem:[%s13810_s3 + $0x468] sm:$0xff]  ;;  %v8898_v12 = vcombine.low %v636_v63, %v640_v0  ;;  %v10237_v34 = vld [vmem:[%s13811_s1 + $0x64] ss:$24 sps:$4 sm:$0xff]  }
  0x27   :  { %3070 = vmatprep.subr.bf16.mxu0 %v8843_v13  ;;  %3409 = vmatprep.subr.bf16.mxu1 %v8845_v14  ;;  %v8900_v13 = vcombine.low %v637_v1, %v641_v2  ;;  %v8907_v14 = vcombine.high %v644_v7, %v648_v8  ;;  %v8909_v15 = vcombine.high %v645_v10, %v649_v11  ;;  %v652_v17 = vld [vmem:[%s13810_s3 + $0x480] sm:$0xff]  ;;  %v685_v55 = vld [vmem:[%s13810_s3 + $0x588] sm:$0xff] }
  0x28   :  { %v656_v18 = vld [vmem:[%s13810_s3 + $0x4a0] sm:$0xff]  ;;  %v689_v56 = vld [vmem:[%s13810_s3 + $0x5a8] sm:$0xff] }
  0x29   :  { %v8915_v23 = vcombine.high %v652_v17, %v656_v18  ;;  %v660_v25 = vld [vmem:[%s13810_s3 + $0x4c0] sm:$0xff]  ;;  %v10242_v63 = vld [vmem:[%s13811_s1 + $0x90] ss:$24 sps:$4 sm:$0xff]  }
  0x2a   :  { %3071 = vmatpush1.bf16.msra.mxu0 %v8842_v19  ;;  %3410 = vmatpush1.bf16.msra.mxu1 %v8844_v20  ;;  %v653_v19 = vld [vmem:[%s13810_s3 + $0x488] sm:$0xff]  ;;  %v664_v26 = vld [vmem:[%s13810_s3 + $0x4e0] sm:$0xff] }
  0x2b   :  { %3072 = vmatprep.subr.bf16.mxu0 %v8851_v21  ;;  %3411 = vmatprep.subr.bf16.mxu1 %v8853_v22  ;;  %v657_v20 = vld [vmem:[%s13810_s3 + $0x4a8] sm:$0xff]  ;;  %v8906_v21 = vcombine.low %v644_v7, %v648_v8  ;;  %v8908_v22 = vcombine.low %v645_v10, %v649_v11  ;;  %v8923_v32 = vcombine.high %v660_v25, %v664_v26  ;;  %v700_v7 = vld [vmem:[%s13810_s3 + $0x600] sm:$0xff] }
  0x2c   :  { %v8917_v24 = vcombine.high %v653_v19, %v657_v20  ;;  %v8916_v31 = vcombine.low %v653_v19, %v657_v20  ;;  %v8922_v39 = vcombine.low %v660_v25, %v664_v26  ;;  %v693_v0 = vld [vmem:[%s13810_s3 + $0x5c8] sm:$0xff]  ;;  %v704_v8 = vld [vmem:[%s13810_s3 + $0x620] sm:$0xff] }
  0x2d   :  { %v697_v1 = vld [vmem:[%s13810_s3 + $0x5e8] sm:$0xff]  ;;  %v8962_v20 = vcombine.low %v700_v7, %v704_v8  ;;  %v716_v25 = vld [vmem:[%s13810_s3 + $0x680] sm:$0xff] }
  0x2e   :  { %3073 = vmatpush1.bf16.msra.mxu0 %v8850_v27  ;;  %3412 = vmatpush1.bf16.msra.mxu1 %v8852_v28  ;;  %v10236_v27 = vld [vmem:[%s13811_s1 + $0x30] ss:$24 sps:$4 sm:$0xff]   ;;  %v720_v26 = vld [vmem:[%s13810_s3 + $0x6a0] sm:$0xff] }
  0x2f   :  { %3074 = vmatprep.subr.bf16.mxu0 %v8859_v29  ;;  %3413 = vmatprep.subr.bf16.mxu1 %v8861_v30  ;;  %v661_v28 = vld [vmem:[%s13810_s3 + $0x4c8] sm:$0xff]  ;;  %v8914_v30 = vcombine.low %v652_v17, %v656_v18  ;;  %v10245_v17 = vld [vmem:[%s13811_s1 + $0xc0] ss:$24 sps:$4 sm:$0xff]  }
  0x30   :  { %v665_v29 = vld [vmem:[%s13810_s3 + $0x4e8] sm:$0xff] }
  0x31   :  { %v8925_v33 = vcombine.high %v661_v28, %v665_v29  ;;  %v8924_v40 = vcombine.low %v661_v28, %v665_v29  ;;  %v705_v10 = vld [vmem:[%s13810_s3 + $0x628] sm:$0xff] }
  0x32   :  { %3075 = vmatpush1.bf16.msra.mxu0 %v8858_v35  ;;  %3414 = vmatpush1.bf16.msra.mxu1 %v8860_v36  ;;  %v668_v35 = vld [vmem:[%s13810_s3 + $0x500] sm:$0xff]  ;;  %v709_v18 = vld [vmem:[%s13810_s3 + $0x648] sm:$0xff] }
  0x33   :  { %3076 = vmatprep.subr.bf16.mxu0 %v8867_v37  ;;  %3415 = vmatprep.subr.bf16.mxu1 %v8869_v38  ;;  %v672_v36 = vld [vmem:[%s13810_s3 + $0x520] sm:$0xff]  ;;  %v669_v37 = vld [vmem:[%s13810_s3 + $0x508] sm:$0xff] }
  0x34   :  { %v673_v38 = vld [vmem:[%s13810_s3 + $0x528] sm:$0xff]  ;;  %v8931_v41 = vcombine.high %v668_v35, %v672_v36  ;;  %v8930_v48 = vcombine.low %v668_v35, %v672_v36 }
  0x35   :  { %v8933_v42 = vcombine.high %v669_v37, %v673_v38  ;;  %v8932_v49 = vcombine.low %v669_v37, %v673_v38  ;;  %v713_v19 = vld [vmem:[%s13810_s3 + $0x668] sm:$0xff]  ;;  %v8978_v38 = vcombine.low %v716_v25, %v720_v26 }
  0x36   :  { %3077 = vmatpush1.bf16.msra.mxu0 %v8866_v43  ;;  %3416 = vmatpush1.bf16.msra.mxu1 %v8868_v44  ;;  %v676_v43 = vld [vmem:[%s13810_s3 + $0x540] sm:$0xff]  ;;  %v721_v28 = vld [vmem:[%s13810_s3 + $0x6a8] sm:$0xff] }
  0x37   :  { %3078 = vmatprep.subr.bf16.mxu0 %v8875_v45  ;;  %3417 = vmatprep.subr.bf16.mxu1 %v8877_v46  ;;  %v680_v44 = vld [vmem:[%s13810_s3 + $0x560] sm:$0xff]  ;;  %v677_v46 = vld [vmem:[%s13810_s3 + $0x548] sm:$0xff] }
  0x38   :  { %v10239_v45 = vld [vmem:[%s13811_s1 + $0x60] ss:$24 sps:$4 sm:$0xff]   ;;  %v8939_v50 = vcombine.high %v676_v43, %v680_v44  ;;  %v8938_v57 = vcombine.low %v676_v43, %v680_v44  ;;  %v8940_v58 = vcombine.low %v677_v46, %v681_v47  ;;  %v10248_v35 = vld [vmem:[%s13811_s1 + $0xf0] ss:$24 sps:$4 sm:$0xff]  }
  0x39   :  { %v725_v36 = vld [vmem:[%s13810_s3 + $0x6c8] sm:$0xff]  ;;  %v732_v43 = vld [vmem:[%s13810_s3 + $0x700] sm:$0xff] }
  0x3a   :  { %3079 = vmatpush1.bf16.msra.mxu0 %v8874_v51  ;;  %3418 = vmatpush1.bf16.msra.mxu1 %v8876_v52  ;;  %v8941_v51 = vcombine.high %v677_v46, %v681_v47  ;;  %v10240_v52 = vld [vmem:[%s13811_s1 + $0x94] ss:$24 sps:$4 sm:$0xff]   ;;  %v736_v44 = vld [vmem:[%s13810_s3 + $0x720] sm:$0xff] }
  0x3b   :  { %3080 = vmatprep.subr.bf16.mxu0 %v8883_v53  ;;  %3419 = vmatprep.subr.bf16.mxu1 %v8885_v54  ;;  %v684_v53 = vld [vmem:[%s13810_s3 + $0x580] sm:$0xff]  ;;  %v729_v37 = vld [vmem:[%s13810_s3 + $0x6e8] sm:$0xff] }
  0x3c   :  { %v688_v54 = vld [vmem:[%s13810_s3 + $0x5a0] sm:$0xff]  ;;  %v737_v46 = vld [vmem:[%s13810_s3 + $0x728] sm:$0xff] }
  0x3d   :  { %v8946_v2 = vcombine.low %v684_v53, %v688_v54 }
  0x3e   :  { %3081 = vmatpush1.bf16.msra.mxu0 %v8882_v59  ;;  %3420 = vmatpush1.bf16.msra.mxu1 %v8884_v60  ;;  %v8947_v59 = vcombine.high %v684_v53, %v688_v54  ;;  %v8949_v60 = vcombine.high %v685_v55, %v689_v56  ;;  %v10251_v53 = vld [vmem:[%s13811_s1 + $0x120] ss:$24 sps:$4 sm:$0xff]   ;;  %v741_v54 = vld [vmem:[%s13810_s3 + $0x748] sm:$0xff] }
  0x3f   :  { %3082 = vmatprep.subr.bf16.mxu0 %v8891_v61  ;;  %3421 = vmatprep.subr.bf16.mxu1 %v8893_v62  ;;  %v692_v61 = vld [vmem:[%s13810_s3 + $0x5c0] sm:$0xff] }
  0x40   :  { %v696_v62 = vld [vmem:[%s13810_s3 + $0x5e0] sm:$0xff] }
  0x41   :  { %v8954_v11 = vcombine.low %v692_v61, %v696_v62 }
  0x42   :  { %3083 = vmatpush1.bf16.msra.mxu0 %v8890_v3  ;;  %3422 = vmatpush1.bf16.msra.mxu1 %v8892_v4  ;;  %v8948_v3 = vcombine.low %v685_v55, %v689_v56  ;;  %v8955_v4 = vcombine.high %v692_v61, %v696_v62  ;;  %v745_v55 = vld [vmem:[%s13810_s3 + $0x768] sm:$0xff]  ;;  %v8994_v56 = vcombine.low %v732_v43, %v736_v44  ;;  %v748_v61 = vld [vmem:[%s13810_s3 + $0x780] sm:$0xff] }
  0x43   :  { %3165 = vmatprep.subr.bf16.mxu0 %v8899_v5  ;;  %3504 = vmatprep.subr.bf16.mxu1 %v8901_v6  ;;  %v8957_v5 = vcombine.high %v693_v0, %v697_v1  ;;  %v10243_v6 = vld [vmem:[%s13811_s1 + $0xc4] ss:$24 sps:$4 sm:$0xff]  }
  0x44   :  { %v752_v62 = vld [vmem:[%s13810_s3 + $0x7a0] sm:$0xff] }
  0x45   :  { %3085 = vmatmul.mubr.bf16.vlgmr.msra.gmra.mrb[0].mxu0 %v10233_v9  ;;  %3424 = vmatmul.mubr.bf16.vlgmr.msra.gmra.mrb[0].mxu1 %v10233_v9  ;;  %v701_v9 = vld [vmem:[%s13810_s3 + $0x608] sm:$0xff] }
  0x46   :  { %3166 = vmatpush1.bf16.msra.mxu0 %v8898_v12  ;;  %3505 = vmatpush1.bf16.msra.mxu1 %v8900_v13  ;;  %v8956_v12 = vcombine.low %v693_v0, %v697_v1  ;;  %v8963_v13 = vcombine.high %v700_v7, %v704_v8  ;;  %v753_v0 = vld [vmem:[%s13810_s3 + $0x7a8] sm:$0xff] }
  0x47   :  { %3167 = vmatprep.subr.bf16.mxu0 %v8907_v14  ;;  %3506 = vmatprep.subr.bf16.mxu1 %v8909_v15  ;;  %v8965_v14 = vcombine.high %v701_v9, %v705_v10  ;;  %v708_v15 = vld [vmem:[%s13810_s3 + $0x640] sm:$0xff]  ;;  %v10254_v7 = vld [vmem:[%s13811_s1 + $0x150] ss:$24 sps:$4 sm:$0xff]  }
  0x48   :  { %3094 = vmatprep.mubr.bf16.mxu0 %v10234_v16  ;;  %3433 = vmatprep.mubr.bf16.mxu1 %v10234_v16  ;;  %v712_v16 = vld [vmem:[%s13810_s3 + $0x660] sm:$0xff]  ;;  %v757_v8 = vld [vmem:[%s13810_s3 + $0x7c8] sm:$0xff] }
  0x49   :  { %v8970_v29 = vcombine.low %v708_v15, %v712_v16 }
  0x4a   :  { %3168 = vmatpush1.bf16.msra.mxu0 %v8906_v21  ;;  %3507 = vmatpush1.bf16.msra.mxu1 %v8908_v22  ;;  %v8964_v21 = vcombine.low %v701_v9, %v705_v10  ;;  %v8971_v22 = vcombine.high %v708_v15, %v712_v16  ;;  %v761_v9 = vld [vmem:[%s13810_s3 + $0x7e8] sm:$0xff]  ;;  %v9010_v10 = vcombine.low %v748_v61, %v752_v62  ;;  %v764_v15 = vld [vmem:[%s13810_s3 + $0x800] sm:$0xff] }
  0x4b   :  { %3169 = vmatprep.subr.bf16.mxu0 %v8915_v23  ;;  %3508 = vmatprep.subr.bf16.mxu1 %v8917_v24  ;;  %v8973_v23 = vcombine.high %v709_v18, %v713_v19  ;;  %v10246_v24 = vld [vmem:[%s13811_s1 + $0xf4] ss:$24 sps:$4 sm:$0xff]   ;;  %v768_v16 = vld [vmem:[%s13810_s3 + $0x820] sm:$0xff] }
  0x4d   :  { %3095 = vmatmul.mubr.bf16.gmra.mrb[4].mxu0 %v10236_v27  ;;  %3434 = vmatmul.mubr.bf16.gmra.mrb[4].mxu1 %v10236_v27  ;;  %v717_v27 = vld [vmem:[%s13810_s3 + $0x688] sm:$0xff] }
  0x4e   :  { %3170 = vmatpush1.bf16.msra.mxu0 %v8914_v30  ;;  %3509 = vmatpush1.bf16.msra.mxu1 %v8916_v31  ;;  %v8972_v30 = vcombine.low %v709_v18, %v713_v19  ;;  %v8979_v31 = vcombine.high %v716_v25, %v720_v26  ;;  %v769_v18 = vld [vmem:[%s13810_s3 + $0x828] sm:$0xff] }
  0x4f   :  { %3171 = vmatprep.subr.bf16.mxu0 %v8923_v32  ;;  %3510 = vmatprep.subr.bf16.mxu1 %v8925_v33  ;;  %v8981_v32 = vcombine.high %v717_v27, %v721_v28  ;;  %v724_v33 = vld [vmem:[%s13810_s3 + $0x6c0] sm:$0xff]  ;;  %v773_v26 = vld [vmem:[%s13810_s3 + $0x848] sm:$0xff] }
  0x50   :  { %3104 = vmatprep.mubr.bf16.mxu0 %v10237_v34  ;;  %3443 = vmatprep.mubr.bf16.mxu1 %v10237_v34  ;;  %v728_v34 = vld [vmem:[%s13810_s3 + $0x6e0] sm:$0xff] }
  0x51   :  { %v8986_v47 = vcombine.low %v724_v33, %v728_v34  ;;  %v10255_v25 = vld [vmem:[%s13811_s1 + $0x8] ss:$24 sps:$4 sm:$0xff]  }
  0x52   :  { %3172 = vmatpush1.bf16.msra.mxu0 %v8922_v39  ;;  %3511 = vmatpush1.bf16.msra.mxu1 %v8924_v40  ;;  %v8980_v39 = vcombine.low %v717_v27, %v721_v28  ;;  %v8987_v40 = vcombine.high %v724_v33, %v728_v34  ;;  %v777_v27 = vld [vmem:[%s13810_s3 + $0x868] sm:$0xff]  ;;  %v9026_v28 = vcombine.low %v764_v15, %v768_v16  ;;  %v780_v33 = vld [vmem:[%s13810_s3 + $0x880] sm:$0xff] }
  0x53   :  { %3173 = vmatprep.subr.bf16.mxu0 %v8931_v41  ;;  %3512 = vmatprep.subr.bf16.mxu1 %v8933_v42  ;;  %v8989_v41 = vcombine.high %v725_v36, %v729_v37  ;;  %v10249_v42 = vld [vmem:[%s13811_s1 + $0x124] ss:$24 sps:$4 sm:$0xff]  }
  0x54   :  { %v784_v34 = vld [vmem:[%s13810_s3 + $0x8a0] sm:$0xff] }
  0x55   :  { %3105 = vmatmul.mubr.bf16.gmra.mrb[8].mxu0 %v10239_v45  ;;  %3444 = vmatmul.mubr.bf16.gmra.mrb[8].mxu1 %v10239_v45  ;;  %v733_v45 = vld [vmem:[%s13810_s3 + $0x708] sm:$0xff] }
  0x56   :  { %3174 = vmatpush1.bf16.msra.mxu0 %v8930_v48  ;;  %3513 = vmatpush1.bf16.msra.mxu1 %v8932_v49  ;;  %v8988_v48 = vcombine.low %v725_v36, %v729_v37  ;;  %v8995_v49 = vcombine.high %v732_v43, %v736_v44  ;;  %v785_v36 = vld [vmem:[%s13810_s3 + $0x8a8] sm:$0xff]  ;;  %v10260_v43 = vld [vmem:[%s13811_s1 + $0x38] ss:$24 sps:$4 sm:$0xff]  }
  0x57   :  { %3175 = vmatprep.subr.bf16.mxu0 %v8939_v50  ;;  %3514 = vmatprep.subr.bf16.mxu1 %v8941_v51  ;;  %v8997_v50 = vcombine.high %v733_v45, %v737_v46  ;;  %v740_v51 = vld [vmem:[%s13810_s3 + $0x740] sm:$0xff]  ;;  %v789_v44 = vld [vmem:[%s13810_s3 + $0x8c8] sm:$0xff] }
  0x58   :  { %3114 = vmatprep.mubr.bf16.mxu0 %v10240_v52  ;;  %3453 = vmatprep.mubr.bf16.mxu1 %v10240_v52  ;;  %v744_v52 = vld [vmem:[%s13810_s3 + $0x760] sm:$0xff] }
  0x59   :  { %v9002_v1 = vcombine.low %v740_v51, %v744_v52 }
  0x5a   :  { %3176 = vmatpush1.bf16.msra.mxu0 %v8938_v57  ;;  %3515 = vmatpush1.bf16.msra.mxu1 %v8940_v58  ;;  %v8996_v57 = vcombine.low %v733_v45, %v737_v46  ;;  %v9003_v58 = vcombine.high %v740_v51, %v744_v52  ;;  %v793_v45 = vld [vmem:[%s13810_s3 + $0x8e8] sm:$0xff]  ;;  %v9042_v46 = vcombine.low %v780_v33, %v784_v34  ;;  %v796_v51 = vld [vmem:[%s13810_s3 + $0x900] sm:$0xff] }
  0x5b   :  { %3177 = vmatprep.subr.bf16.mxu0 %v8947_v59  ;;  %3516 = vmatprep.subr.bf16.mxu1 %v8949_v60  ;;  %v9005_v59 = vcombine.high %v741_v54, %v745_v55  ;;  %v10252_v60 = vld [vmem:[%s13811_s1 + $0x154] ss:$24 sps:$4 sm:$0xff]   ;;  %v800_v52 = vld [vmem:[%s13810_s3 + $0x920] sm:$0xff] }
  0x5d   :  { %3115 = vmatmul.mubr.bf16.gmra.mrb[12].mxu0 %v10242_v63  ;;  %3454 = vmatmul.mubr.bf16.gmra.mrb[12].mxu1 %v10242_v63  ;;  %v749_v63 = vld [vmem:[%s13810_s3 + $0x788] sm:$0xff] }
  0x5e   :  { %3178 = vmatpush1.bf16.msra.mxu0 %v8946_v2  ;;  %3517 = vmatpush1.bf16.msra.mxu1 %v8948_v3  ;;  %v9004_v2 = vcombine.low %v741_v54, %v745_v55  ;;  %v9011_v3 = vcombine.high %v748_v61, %v752_v62  ;;  %v801_v54 = vld [vmem:[%s13810_s3 + $0x928] sm:$0xff] }
  0x5f   :  { %3179 = vmatprep.subr.bf16.mxu0 %v8955_v4  ;;  %3518 = vmatprep.subr.bf16.mxu1 %v8957_v5  ;;  %v9013_v4 = vcombine.high %v749_v63, %v753_v0  ;;  %v756_v5 = vld [vmem:[%s13810_s3 + $0x7c0] sm:$0xff]  ;;  %v805_v62 = vld [vmem:[%s13810_s3 + $0x948] sm:$0xff] }
  0x60   :  { %3124 = vmatprep.mubr.bf16.mxu0 %v10243_v6  ;;  %3463 = vmatprep.mubr.bf16.mxu1 %v10243_v6  ;;  %v760_v6 = vld [vmem:[%s13810_s3 + $0x7e0] sm:$0xff] }
  0x61   :  { %v9018_v19 = vcombine.low %v756_v5, %v760_v6  ;;  %v10263_v61 = vld [vmem:[%s13811_s1 + $0x68] ss:$24 sps:$4 sm:$0xff]  }
  0x62   :  { %3180 = vmatpush1.bf16.msra.mxu0 %v8954_v11  ;;  %3519 = vmatpush1.bf16.msra.mxu1 %v8956_v12  ;;  %v9012_v11 = vcombine.low %v749_v63, %v753_v0  ;;  %v9019_v12 = vcombine.high %v756_v5, %v760_v6  ;;  %v809_v63 = vld [vmem:[%s13810_s3 + $0x968] sm:$0xff]  ;;  %v9058_v0 = vcombine.low %v796_v51, %v800_v52  ;;  %v812_v5 = vld [vmem:[%s13810_s3 + $0x980] sm:$0xff] }
  0x63   :  { %3181 = vmatprep.subr.bf16.mxu0 %v8963_v13  ;;  %3520 = vmatprep.subr.bf16.mxu1 %v8965_v14  ;;  %v9021_v13 = vcombine.high %v757_v8, %v761_v9  ;;  %v10257_v14 = vld [vmem:[%s13811_s1 + $0xc] ss:$24 sps:$4 sm:$0xff]  }
  0x64   :  { %v816_v6 = vld [vmem:[%s13810_s3 + $0x9a0] sm:$0xff] }
  0x65   :  { %3125 = vmatmul.mubr.bf16.gmra.mrb[16].mxu0 %v10245_v17  ;;  %3464 = vmatmul.mubr.bf16.gmra.mrb[16].mxu1 %v10245_v17  ;;  %v765_v17 = vld [vmem:[%s13810_s3 + $0x808] sm:$0xff] }
  0x66   :  { %3182 = vmatpush1.bf16.msra.mxu0 %v8962_v20  ;;  %3521 = vmatpush1.bf16.msra.mxu1 %v8964_v21  ;;  %v9020_v20 = vcombine.low %v757_v8, %v761_v9  ;;  %v9027_v21 = vcombine.high %v764_v15, %v768_v16  ;;  %v817_v8 = vld [vmem:[%s13810_s3 + $0x9a8] sm:$0xff]  ;;  %v10266_v15 = vld [vmem:[%s13811_s1 + $0x98] ss:$24 sps:$4 sm:$0xff]  }
  0x67   :  { %3183 = vmatprep.subr.bf16.mxu0 %v8971_v22  ;;  %3522 = vmatprep.subr.bf16.mxu1 %v8973_v23  ;;  %v9029_v22 = vcombine.high %v765_v17, %v769_v18  ;;  %v772_v23 = vld [vmem:[%s13810_s3 + $0x840] sm:$0xff]  ;;  %v821_v16 = vld [vmem:[%s13810_s3 + $0x9c8] sm:$0xff] }
  0x68   :  { %3134 = vmatprep.mubr.bf16.mxu0 %v10246_v24  ;;  %3473 = vmatprep.mubr.bf16.mxu1 %v10246_v24  ;;  %v776_v24 = vld [vmem:[%s13810_s3 + $0x860] sm:$0xff] }
  0x69   :  { %v9034_v37 = vcombine.low %v772_v23, %v776_v24 }
  0x6a   :  { %3184 = vmatpush1.bf16.msra.mxu0 %v8970_v29  ;;  %3523 = vmatpush1.bf16.msra.mxu1 %v8972_v30  ;;  %v9028_v29 = vcombine.low %v765_v17, %v769_v18  ;;  %v9035_v30 = vcombine.high %v772_v23, %v776_v24  ;;  %v825_v17 = vld [vmem:[%s13810_s3 + $0x9e8] sm:$0xff]  ;;  %v9074_v18 = vcombine.low %v812_v5, %v816_v6  ;;  %v828_v23 = vld [vmem:[%s13810_s3 + $0xa00] sm:$0xff] }
  0x6b   :  { %3185 = vmatprep.subr.bf16.mxu0 %v8979_v31  ;;  %3524 = vmatprep.subr.bf16.mxu1 %v8981_v32  ;;  %v9037_v31 = vcombine.high %v773_v26, %v777_v27  ;;  %v10258_v32 = vld [vmem:[%s13811_s1 + $0x3c] ss:$24 sps:$4 sm:$0xff]   ;;  %v832_v24 = vld [vmem:[%s13810_s3 + $0xa20] sm:$0xff] }
  0x6d   :  { %3135 = vmatmul.mubr.bf16.gmra.mrb[20].mxu0 %v10248_v35  ;;  %3474 = vmatmul.mubr.bf16.gmra.mrb[20].mxu1 %v10248_v35  ;;  %v781_v35 = vld [vmem:[%s13810_s3 + $0x888] sm:$0xff] }
  0x6e   :  { %3186 = vmatpush1.bf16.msra.mxu0 %v8978_v38  ;;  %3525 = vmatpush1.bf16.msra.mxu1 %v8980_v39  ;;  %v9036_v38 = vcombine.low %v773_v26, %v777_v27  ;;  %v9043_v39 = vcombine.high %v780_v33, %v784_v34  ;;  %v833_v26 = vld [vmem:[%s13810_s3 + $0xa28] sm:$0xff] }
  0x6f   :  { %3187 = vmatprep.subr.bf16.mxu0 %v8987_v40  ;;  %3526 = vmatprep.subr.bf16.mxu1 %v8989_v41  ;;  %v9045_v40 = vcombine.high %v781_v35, %v785_v36  ;;  %v788_v41 = vld [vmem:[%s13810_s3 + $0x8c0] sm:$0xff]  ;;  %v837_v34 = vld [vmem:[%s13810_s3 + $0xa48] sm:$0xff] }
  0x70   :  { %3144 = vmatprep.mubr.bf16.mxu0 %v10249_v42  ;;  %3483 = vmatprep.mubr.bf16.mxu1 %v10249_v42  ;;  %v792_v42 = vld [vmem:[%s13810_s3 + $0x8e0] sm:$0xff] }
  0x71   :  { %v9050_v55 = vcombine.low %v788_v41, %v792_v42  ;;  %v10269_v33 = vld [vmem:[%s13811_s1 + $0xc8] ss:$24 sps:$4 sm:$0xff]  }
  0x72   :  { %3188 = vmatpush1.bf16.msra.mxu0 %v8986_v47  ;;  %3527 = vmatpush1.bf16.msra.mxu1 %v8988_v48  ;;  %v9044_v47 = vcombine.low %v781_v35, %v785_v36  ;;  %v9051_v48 = vcombine.high %v788_v41, %v792_v42  ;;  %v841_v35 = vld [vmem:[%s13810_s3 + $0xa68] sm:$0xff]  ;;  %v9090_v36 = vcombine.low %v828_v23, %v832_v24  ;;  %v844_v41 = vld [vmem:[%s13810_s3 + $0xa80] sm:$0xff] }
  0x73   :  { %3189 = vmatprep.subr.bf16.mxu0 %v8995_v49  ;;  %3528 = vmatprep.subr.bf16.mxu1 %v8997_v50  ;;  %v9053_v49 = vcombine.high %v789_v44, %v793_v45  ;;  %v10261_v50 = vld [vmem:[%s13811_s1 + $0x6c] ss:$24 sps:$4 sm:$0xff]  }
  0x74   :  { %v848_v42 = vld [vmem:[%s13810_s3 + $0xaa0] sm:$0xff] }
  0x75   :  { %3145 = vmatmul.mubr.bf16.gmra.mrb[24].mxu0 %v10251_v53  ;;  %3484 = vmatmul.mubr.bf16.gmra.mrb[24].mxu1 %v10251_v53  ;;  %v797_v53 = vld [vmem:[%s13810_s3 + $0x908] sm:$0xff] }
  0x76   :  { %3190 = vmatpush1.bf16.msra.mxu0 %v8994_v56  ;;  %3529 = vmatpush1.bf16.msra.mxu1 %v8996_v57  ;;  %v9052_v56 = vcombine.low %v789_v44, %v793_v45  ;;  %v9059_v57 = vcombine.high %v796_v51, %v800_v52  ;;  %v849_v44 = vld [vmem:[%s13810_s3 + $0xaa8] sm:$0xff]  ;;  %v10272_v51 = vld [vmem:[%s13811_s1 + $0xf8] ss:$24 sps:$4 sm:$0xff]  }
  0x77   :  { %3191 = vmatprep.subr.bf16.mxu0 %v9003_v58  ;;  %3530 = vmatprep.subr.bf16.mxu1 %v9005_v59  ;;  %v9061_v58 = vcombine.high %v797_v53, %v801_v54  ;;  %v804_v59 = vld [vmem:[%s13810_s3 + $0x940] sm:$0xff]  ;;  %v853_v52 = vld [vmem:[%s13810_s3 + $0xac8] sm:$0xff] }
  0x78   :  { %3154 = vmatprep.mubr.bf16.mxu0 %v10252_v60  ;;  %3493 = vmatprep.mubr.bf16.mxu1 %v10252_v60  ;;  %v808_v60 = vld [vmem:[%s13810_s3 + $0x960] sm:$0xff] }
  0x79   :  { %v9066_v9 = vcombine.low %v804_v59, %v808_v60 }
  0x7a   :  { %3192 = vmatpush1.bf16.msra.mxu0 %v9002_v1  ;;  %3531 = vmatpush1.bf16.msra.mxu1 %v9004_v2  ;;  %v9060_v1 = vcombine.low %v797_v53, %v801_v54  ;;  %v9067_v2 = vcombine.high %v804_v59, %v808_v60  ;;  %v857_v53 = vld [vmem:[%s13810_s3 + $0xae8] sm:$0xff]  ;;  %v9106_v54 = vcombine.low %v844_v41, %v848_v42  ;;  %v860_v59 = vld [vmem:[%s13810_s3 + $0xb00] sm:$0xff] }
  0x7b   :  { %3193 = vmatprep.subr.bf16.mxu0 %v9011_v3  ;;  %3532 = vmatprep.subr.bf16.mxu1 %v9013_v4  ;;  %v9069_v3 = vcombine.high %v805_v62, %v809_v63  ;;  %v10264_v4 = vld [vmem:[%s13811_s1 + $0x9c] ss:$24 sps:$4 sm:$0xff]   ;;  %v864_v60 = vld [vmem:[%s13810_s3 + $0xb20] sm:$0xff] }
  0x7d   :  { %3155 = vmatmul.mubr.bf16.gmra.mrb[28].mxu0 %v10254_v7  ;;  %3494 = vmatmul.mubr.bf16.gmra.mrb[28].mxu1 %v10254_v7  ;;  %v813_v7 = vld [vmem:[%s13810_s3 + $0x988] sm:$0xff] }
  0x7e   :  { %3194 = vmatpush1.bf16.msra.mxu0 %v9010_v10  ;;  %3533 = vmatpush1.bf16.msra.mxu1 %v9012_v11  ;;  %v9068_v10 = vcombine.low %v805_v62, %v809_v63  ;;  %v9075_v11 = vcombine.high %v812_v5, %v816_v6  ;;  %v865_v62 = vld [vmem:[%s13810_s3 + $0xb28] sm:$0xff] }
  0x7f   :  { %3195 = vmatprep.subr.bf16.mxu0 %v9019_v12  ;;  %3534 = vmatprep.subr.bf16.mxu1 %v9021_v13  ;;  %v9077_v12 = vcombine.high %v813_v7, %v817_v8  ;;  %v820_v13 = vld [vmem:[%s13810_s3 + $0x9c0] sm:$0xff]  ;;  %v869_v6 = vld [vmem:[%s13810_s3 + $0xb48] sm:$0xff] }
  0x80   :  { %3197 = vmatprep.mubr.bf16.mxu0 %v10257_v14  ;;  %3536 = vmatprep.mubr.bf16.mxu1 %v10257_v14  ;;  %v824_v14 = vld [vmem:[%s13810_s3 + $0x9e0] sm:$0xff] }
  0x81   :  { %v9082_v27 = vcombine.low %v820_v13, %v824_v14  ;;  %v10275_v5 = vld [vmem:[%s13811_s1 + $0x128] ss:$24 sps:$4 sm:$0xff]  }
  0x82   :  { %3196 = vmatpush1.bf16.msra.mxu0 %v9018_v19  ;;  %3535 = vmatpush1.bf16.msra.mxu1 %v9020_v20  ;;  %v9076_v19 = vcombine.low %v813_v7, %v817_v8  ;;  %v9083_v20 = vcombine.high %v820_v13, %v824_v14  ;;  %v873_v7 = vld [vmem:[%s13810_s3 + $0xb68] sm:$0xff]  ;;  %v9122_v8 = vcombine.low %v860_v59, %v864_v60  ;;  %v876_v13 = vld [vmem:[%s13810_s3 + $0xb80] sm:$0xff] }
  0x83   :  { %3278 = vmatprep.subr.bf16.mxu0 %v9027_v21  ;;  %3617 = vmatprep.subr.bf16.mxu1 %v9029_v22  ;;  %v9085_v21 = vcombine.high %v821_v16, %v825_v17  ;;  %v10267_v22 = vld [vmem:[%s13811_s1 + $0xcc] ss:$24 sps:$4 sm:$0xff]  }
  0x84   :  { %v880_v14 = vld [vmem:[%s13810_s3 + $0xba0] sm:$0xff] }
  0x85   :  { %3198 = vmatmul.mubr.bf16.vlgmr.msra.gmra.mrb[0].mxu0 %v10255_v25  ;;  %3537 = vmatmul.mubr.bf16.vlgmr.msra.gmra.mrb[0].mxu1 %v10255_v25  ;;  %v829_v25 = vld [vmem:[%s13810_s3 + $0xa08] sm:$0xff] }
  0x86   :  { %3279 = vmatpush1.bf16.msra.mxu0 %v9026_v28  ;;  %3618 = vmatpush1.bf16.msra.mxu1 %v9028_v29  ;;  %v9084_v28 = vcombine.low %v821_v16, %v825_v17  ;;  %v9091_v29 = vcombine.high %v828_v23, %v832_v24  ;;  %v881_v16 = vld [vmem:[%s13810_s3 + $0xba8] sm:$0xff]  ;;  %v10278_v23 = vld [vmem:[%s13811_s1 + $0x158] ss:$24 sps:$4 sm:$0xff]  }
  0x87   :  { %3280 = vmatprep.subr.bf16.mxu0 %v9035_v30  ;;  %3619 = vmatprep.subr.bf16.mxu1 %v9037_v31  ;;  %v9093_v30 = vcombine.high %v829_v25, %v833_v26  ;;  %v836_v31 = vld [vmem:[%s13810_s3 + $0xa40] sm:$0xff]  ;;  %v885_v24 = vld [vmem:[%s13810_s3 + $0xbc8] sm:$0xff] }
  0x88   :  { %3207 = vmatprep.mubr.bf16.mxu0 %v10258_v32  ;;  %3546 = vmatprep.mubr.bf16.mxu1 %v10258_v32  ;;  %v840_v32 = vld [vmem:[%s13810_s3 + $0xa60] sm:$0xff] }
  0x89   :  { %v9098_v45 = vcombine.low %v836_v31, %v840_v32 }
  0x8a   :  { %3281 = vmatpush1.bf16.msra.mxu0 %v9034_v37  ;;  %3620 = vmatpush1.bf16.msra.mxu1 %v9036_v38  ;;  %v9092_v37 = vcombine.low %v829_v25, %v833_v26  ;;  %v9099_v38 = vcombine.high %v836_v31, %v840_v32  ;;  %v889_v25 = vld [vmem:[%s13810_s3 + $0xbe8] sm:$0xff]  ;;  %v9138_v26 = vcombine.low %v876_v13, %v880_v14  ;;  %v510_v31 = vld [vmem:[%s13810_s3 + $0x10] sm:$0xff] }
  0x8b   :  { %3282 = vmatprep.subr.bf16.mxu0 %v9043_v39  ;;  %3621 = vmatprep.subr.bf16.mxu1 %v9045_v40  ;;  %v9101_v39 = vcombine.high %v837_v34, %v841_v35  ;;  %v10270_v40 = vld [vmem:[%s13811_s1 + $0xfc] ss:$24 sps:$4 sm:$0xff]  }
  0x8c   :  { %v514_v32 = vld [vmem:[%s13810_s3 + $0x30] sm:$0xff] }
  0x8d   :  { %3208 = vmatmul.mubr.bf16.gmra.mrb[4].mxu0 %v10260_v43  ;;  %3547 = vmatmul.mubr.bf16.gmra.mrb[4].mxu1 %v10260_v43  ;;  %v845_v43 = vld [vmem:[%s13810_s3 + $0xa88] sm:$0xff] }
  0x8e   :  { %3283 = vmatpush1.bf16.msra.mxu0 %v9042_v46  ;;  %3622 = vmatpush1.bf16.msra.mxu1 %v9044_v47  ;;  %v9100_v46 = vcombine.low %v837_v34, %v841_v35  ;;  %v9107_v47 = vcombine.high %v844_v41, %v848_v42  ;;  %v515_v34 = vld [vmem:[%s13810_s3 + $0x38] sm:$0xff]  ;;  %v10279_v41 = vld [vmem:[%s13811_s1 + $0x10] ss:$24 sps:$4 sm:$0xff]  }
  0x8f   :  { %3284 = vmatprep.subr.bf16.mxu0 %v9051_v48  ;;  %3623 = vmatprep.subr.bf16.mxu1 %v9053_v49  ;;  %v9109_v48 = vcombine.high %v845_v43, %v849_v44  ;;  %v852_v49 = vld [vmem:[%s13810_s3 + $0xac0] sm:$0xff]  ;;  %v519_v42 = vld [vmem:[%s13810_s3 + $0x58] sm:$0xff] }
  0x90   :  { %3217 = vmatprep.mubr.bf16.mxu0 %v10261_v50  ;;  %3556 = vmatprep.mubr.bf16.mxu1 %v10261_v50  ;;  %v856_v50 = vld [vmem:[%s13810_s3 + $0xae0] sm:$0xff] }
  0x91   :  { %v9114_v63 = vcombine.low %v852_v49, %v856_v50 }
  0x92   :  { %3285 = vmatpush1.bf16.msra.mxu0 %v9050_v55  ;;  %3624 = vmatpush1.bf16.msra.mxu1 %v9052_v56  ;;  %v9108_v55 = vcombine.low %v845_v43, %v849_v44  ;;  %v9115_v56 = vcombine.high %v852_v49, %v856_v50  ;;  %v523_v43 = vld [vmem:[%s13810_s3 + $0x78] sm:$0xff]  ;;  %v8774_v44 = vcombine.low %v510_v31, %v514_v32  ;;  %v526_v49 = vld [vmem:[%s13810_s3 + $0x90] sm:$0xff] }
  0x93   :  { %3286 = vmatprep.subr.bf16.mxu0 %v9059_v57  ;;  %3625 = vmatprep.subr.bf16.mxu1 %v9061_v58  ;;  %v9117_v57 = vcombine.high %v853_v52, %v857_v53  ;;  %v10273_v58 = vld [vmem:[%s13811_s1 + $0x12c] ss:$24 sps:$4 sm:$0xff]   ;;  %v530_v50 = vld [vmem:[%s13810_s3 + $0xb0] sm:$0xff] }
  0x95   :  { %3218 = vmatmul.mubr.bf16.gmra.mrb[8].mxu0 %v10263_v61  ;;  %3557 = vmatmul.mubr.bf16.gmra.mrb[8].mxu1 %v10263_v61  ;;  %v861_v61 = vld [vmem:[%s13810_s3 + $0xb08] sm:$0xff] }
  0x96   :  { %3287 = vmatpush1.bf16.msra.mxu0 %v9058_v0  ;;  %3626 = vmatpush1.bf16.msra.mxu1 %v9060_v1  ;;  %v9116_v0 = vcombine.low %v853_v52, %v857_v53  ;;  %v9123_v1 = vcombine.high %v860_v59, %v864_v60  ;;  %v531_v52 = vld [vmem:[%s13810_s3 + $0xb8] sm:$0xff] }
  0x97   :  { %3288 = vmatprep.subr.bf16.mxu0 %v9067_v2  ;;  %3627 = vmatprep.subr.bf16.mxu1 %v9069_v3  ;;  %v9125_v2 = vcombine.high %v861_v61, %v865_v62  ;;  %v868_v3 = vld [vmem:[%s13810_s3 + $0xb40] sm:$0xff]  ;;  %v535_v60 = vld [vmem:[%s13810_s3 + $0xd8] sm:$0xff] }
  0x98   :  { %3227 = vmatprep.mubr.bf16.mxu0 %v10264_v4  ;;  %3566 = vmatprep.mubr.bf16.mxu1 %v10264_v4  ;;  %v872_v4 = vld [vmem:[%s13810_s3 + $0xb60] sm:$0xff] }
  0x99   :  { %v9130_v17 = vcombine.low %v868_v3, %v872_v4  ;;  %v10284_v59 = vld [vmem:[%s13811_s1 + $0x40] ss:$24 sps:$4 sm:$0xff]  }
  0x9a   :  { %3289 = vmatpush1.bf16.msra.mxu0 %v9066_v9  ;;  %3628 = vmatpush1.bf16.msra.mxu1 %v9068_v10  ;;  %v9124_v9 = vcombine.low %v861_v61, %v865_v62  ;;  %v9131_v10 = vcombine.high %v868_v3, %v872_v4  ;;  %v539_v61 = vld [vmem:[%s13810_s3 + $0xf8] sm:$0xff]  ;;  %v8790_v62 = vcombine.low %v526_v49, %v530_v50  ;;  %v542_v3 = vld [vmem:[%s13810_s3 + $0x110] sm:$0xff] }
  0x9b   :  { %3290 = vmatprep.subr.bf16.mxu0 %v9075_v11  ;;  %3629 = vmatprep.subr.bf16.mxu1 %v9077_v12  ;;  %v9133_v11 = vcombine.high %v869_v6, %v873_v7  ;;  %v10276_v12 = vld [vmem:[%s13811_s1 + $0x15c] ss:$24 sps:$4 sm:$0xff]  }
  0x9c   :  { %v546_v4 = vld [vmem:[%s13810_s3 + $0x130] sm:$0xff] }
  0x9d   :  { %3228 = vmatmul.mubr.bf16.gmra.mrb[12].mxu0 %v10266_v15  ;;  %3567 = vmatmul.mubr.bf16.gmra.mrb[12].mxu1 %v10266_v15  ;;  %v877_v15 = vld [vmem:[%s13810_s3 + $0xb88] sm:$0xff] }
  0x9e   :  { %3291 = vmatpush1.bf16.msra.mxu0 %v9074_v18  ;;  %3630 = vmatpush1.bf16.msra.mxu1 %v9076_v19  ;;  %v9132_v18 = vcombine.low %v869_v6, %v873_v7  ;;  %v9139_v19 = vcombine.high %v876_v13, %v880_v14  ;;  %v547_v6 = vld [vmem:[%s13810_s3 + $0x138] sm:$0xff]  ;;  %v10287_v13 = vld [vmem:[%s13811_s1 + $0x70] ss:$24 sps:$4 sm:$0xff]  }
  0x9f   :  { %3292 = vmatprep.subr.bf16.mxu0 %v9083_v20  ;;  %3631 = vmatprep.subr.bf16.mxu1 %v9085_v21  ;;  %v9141_v20 = vcombine.high %v877_v15, %v881_v16  ;;  %v884_v21 = vld [vmem:[%s13810_s3 + $0xbc0] sm:$0xff]  ;;  %v551_v14 = vld [vmem:[%s13810_s3 + $0x158] sm:$0xff] }
  0xa0   :  { %3237 = vmatprep.mubr.bf16.mxu0 %v10267_v22  ;;  %3576 = vmatprep.mubr.bf16.mxu1 %v10267_v22  ;;  %v888_v22 = vld [vmem:[%s13810_s3 + $0xbe0] sm:$0xff] }
  0xa1   :  { %v9146_v35 = vcombine.low %v884_v21, %v888_v22 }
  0xa2   :  { %3293 = vmatpush1.bf16.msra.mxu0 %v9082_v27  ;;  %3632 = vmatpush1.bf16.msra.mxu1 %v9084_v28  ;;  %v9140_v27 = vcombine.low %v877_v15, %v881_v16  ;;  %v9147_v28 = vcombine.high %v884_v21, %v888_v22  ;;  %v555_v15 = vld [vmem:[%s13810_s3 + $0x178] sm:$0xff]  ;;  %v8806_v16 = vcombine.low %v542_v3, %v546_v4  ;;  %v558_v21 = vld [vmem:[%s13810_s3 + $0x190] sm:$0xff] }
  0xa3   :  { %3294 = vmatprep.subr.bf16.mxu0 %v9091_v29  ;;  %3633 = vmatprep.subr.bf16.mxu1 %v9093_v30  ;;  %v9149_v29 = vcombine.high %v885_v24, %v889_v25  ;;  %v10281_v30 = vld [vmem:[%s13811_s1 + $0x14] ss:$24 sps:$4 sm:$0xff]  }
  0xa4   :  { %v562_v22 = vld [vmem:[%s13810_s3 + $0x1b0] sm:$0xff] }
  0xa5   :  { %3238 = vmatmul.mubr.bf16.gmra.mrb[16].mxu0 %v10269_v33  ;;  %3577 = vmatmul.mubr.bf16.gmra.mrb[16].mxu1 %v10269_v33  ;;  %v511_v33 = vld [vmem:[%s13810_s3 + $0x18] sm:$0xff] }
  0xa6   :  { %3295 = vmatpush1.bf16.msra.mxu0 %v9090_v36  ;;  %3634 = vmatpush1.bf16.msra.mxu1 %v9092_v37  ;;  %v9148_v36 = vcombine.low %v885_v24, %v889_v25  ;;  %v8775_v37 = vcombine.high %v510_v31, %v514_v32  ;;  %v563_v24 = vld [vmem:[%s13810_s3 + $0x1b8] sm:$0xff] }
  0xa7   :  { %3296 = vmatprep.subr.bf16.mxu0 %v9099_v38  ;;  %3635 = vmatprep.subr.bf16.mxu1 %v9101_v39  ;;  %v8777_v38 = vcombine.high %v511_v33, %v515_v34  ;;  %v518_v39 = vld [vmem:[%s13810_s3 + $0x50] sm:$0xff]  ;;  %v10290_v31 = vld [vmem:[%s13811_s1 + $0xa0] ss:$24 sps:$4 sm:$0xff]  }
  0xa8   :  { %3247 = vmatprep.mubr.bf16.mxu0 %v10270_v40  ;;  %3586 = vmatprep.mubr.bf16.mxu1 %v10270_v40  ;;  %v522_v40 = vld [vmem:[%s13810_s3 + $0x70] sm:$0xff]  ;;  %v567_v32 = vld [vmem:[%s13810_s3 + $0x1d8] sm:$0xff] }
  0xa9   :  { %v8782_v53 = vcombine.low %v518_v39, %v522_v40 }
  0xaa   :  { %3297 = vmatpush1.bf16.msra.mxu0 %v9098_v45  ;;  %3636 = vmatpush1.bf16.msra.mxu1 %v9100_v46  ;;  %v8776_v45 = vcombine.low %v511_v33, %v515_v34  ;;  %v8783_v46 = vcombine.high %v518_v39, %v522_v40  ;;  %v571_v33 = vld [vmem:[%s13810_s3 + $0x1f8] sm:$0xff]  ;;  %v8822_v34 = vcombine.low %v558_v21, %v562_v22  ;;  %v574_v39 = vld [vmem:[%s13810_s3 + $0x210] sm:$0xff] }
  0xab   :  { %3298 = vmatprep.subr.bf16.mxu0 %v9107_v47  ;;  %3637 = vmatprep.subr.bf16.mxu1 %v9109_v48  ;;  %v8785_v47 = vcombine.high %v519_v42, %v523_v43  ;;  %v10282_v48 = vld [vmem:[%s13811_s1 + $0x44] ss:$24 sps:$4 sm:$0xff]   ;;  %v578_v40 = vld [vmem:[%s13810_s3 + $0x230] sm:$0xff] }
  0xad   :  { %3248 = vmatmul.mubr.bf16.gmra.mrb[20].mxu0 %v10272_v51  ;;  %3587 = vmatmul.mubr.bf16.gmra.mrb[20].mxu1 %v10272_v51  ;;  %v527_v51 = vld [vmem:[%s13810_s3 + $0x98] sm:$0xff] }
  0xae   :  { %3299 = vmatpush1.bf16.msra.mxu0 %v9106_v54  ;;  %3638 = vmatpush1.bf16.msra.mxu1 %v9108_v55  ;;  %v8784_v54 = vcombine.low %v519_v42, %v523_v43  ;;  %v8791_v55 = vcombine.high %v526_v49, %v530_v50  ;;  %v579_v42 = vld [vmem:[%s13810_s3 + $0x238] sm:$0xff]  ;;  %v10293_v49 = vld [vmem:[%s13811_s1 + $0xd0] ss:$24 sps:$4 sm:$0xff]  }
  0xaf   :  { %3300 = vmatprep.subr.bf16.mxu0 %v9115_v56  ;;  %3639 = vmatprep.subr.bf16.mxu1 %v9117_v57  ;;  %v8793_v56 = vcombine.high %v527_v51, %v531_v52  ;;  %v534_v57 = vld [vmem:[%s13810_s3 + $0xd0] sm:$0xff]  ;;  %v583_v50 = vld [vmem:[%s13810_s3 + $0x258] sm:$0xff] }
  0xb0   :  { %3257 = vmatprep.mubr.bf16.mxu0 %v10273_v58  ;;  %3596 = vmatprep.mubr.bf16.mxu1 %v10273_v58  ;;  %v538_v58 = vld [vmem:[%s13810_s3 + $0xf0] sm:$0xff] }
  0xb1   :  { %v8798_v7 = vcombine.low %v534_v57, %v538_v58 }
  0xb2   :  { %3301 = vmatpush1.bf16.msra.mxu0 %v9114_v63  ;;  %3640 = vmatpush1.bf16.msra.mxu1 %v9116_v0  ;;  %v8792_v63 = vcombine.low %v527_v51, %v531_v52  ;;  %v8799_v0 = vcombine.high %v534_v57, %v538_v58  ;;  %v587_v51 = vld [vmem:[%s13810_s3 + $0x278] sm:$0xff]  ;;  %v8838_v52 = vcombine.low %v574_v39, %v578_v40  ;;  %v590_v57 = vld [vmem:[%s13810_s3 + $0x290] sm:$0xff] }
  0xb3   :  { %3302 = vmatprep.subr.bf16.mxu0 %v9123_v1  ;;  %3641 = vmatprep.subr.bf16.mxu1 %v9125_v2  ;;  %v8801_v1 = vcombine.high %v535_v60, %v539_v61  ;;  %v10285_v2 = vld [vmem:[%s13811_s1 + $0x74] ss:$24 sps:$4 sm:$0xff]  }
  0xb4   :  { %v594_v58 = vld [vmem:[%s13810_s3 + $0x2b0] sm:$0xff] }
  0xb5   :  { %3258 = vmatmul.mubr.bf16.gmra.mrb[24].mxu0 %v10275_v5  ;;  %3597 = vmatmul.mubr.bf16.gmra.mrb[24].mxu1 %v10275_v5  ;;  %v543_v5 = vld [vmem:[%s13810_s3 + $0x118] sm:$0xff] }
  0xb6   :  { %3303 = vmatpush1.bf16.msra.mxu0 %v9122_v8  ;;  %3642 = vmatpush1.bf16.msra.mxu1 %v9124_v9  ;;  %v8800_v8 = vcombine.low %v535_v60, %v539_v61  ;;  %v8807_v9 = vcombine.high %v542_v3, %v546_v4  ;;  %v595_v60 = vld [vmem:[%s13810_s3 + $0x2b8] sm:$0xff] }
  0xb7   :  { %3304 = vmatprep.subr.bf16.mxu0 %v9131_v10  ;;  %3643 = vmatprep.subr.bf16.mxu1 %v9133_v11  ;;  %v8809_v10 = vcombine.high %v543_v5, %v547_v6  ;;  %v550_v11 = vld [vmem:[%s13810_s3 + $0x150] sm:$0xff]  ;;  %v10296_v3 = vld [vmem:[%s13811_s1 + $0x100] ss:$24 sps:$4 sm:$0xff]  }
  0xb8   :  { %3267 = vmatprep.mubr.bf16.mxu0 %v10276_v12  ;;  %3606 = vmatprep.mubr.bf16.mxu1 %v10276_v12  ;;  %v554_v12 = vld [vmem:[%s13810_s3 + $0x170] sm:$0xff]  ;;  %v599_v4 = vld [vmem:[%s13810_s3 + $0x2d8] sm:$0xff] }
  0xb9   :  { %v8814_v25 = vcombine.low %v550_v11, %v554_v12 }
  0xba   :  { %3305 = vmatpush1.bf16.msra.mxu0 %v9130_v17  ;;  %3644 = vmatpush1.bf16.msra.mxu1 %v9132_v18  ;;  %v8808_v17 = vcombine.low %v543_v5, %v547_v6  ;;  %v8815_v18 = vcombine.high %v550_v11, %v554_v12  ;;  %v603_v5 = vld [vmem:[%s13810_s3 + $0x2f8] sm:$0xff]  ;;  %v8854_v6 = vcombine.low %v590_v57, %v594_v58  ;;  %v606_v11 = vld [vmem:[%s13810_s3 + $0x310] sm:$0xff] }
  0xbb   :  { %3306 = vmatprep.subr.bf16.mxu0 %v9139_v19  ;;  %3645 = vmatprep.subr.bf16.mxu1 %v9141_v20  ;;  %v8817_v19 = vcombine.high %v551_v14, %v555_v15  ;;  %v10288_v20 = vld [vmem:[%s13811_s1 + $0xa4] ss:$24 sps:$4 sm:$0xff]   ;;  %v610_v12 = vld [vmem:[%s13810_s3 + $0x330] sm:$0xff] }
  0xbd   :  { %3268 = vmatmul.mubr.bf16.gmra.mrb[28].mxu0 %v10278_v23  ;;  %3607 = vmatmul.mubr.bf16.gmra.mrb[28].mxu1 %v10278_v23  ;;  %v559_v23 = vld [vmem:[%s13810_s3 + $0x198] sm:$0xff] }
  0xbe   :  { %3307 = vmatpush1.bf16.msra.mxu0 %v9138_v26  ;;  %3646 = vmatpush1.bf16.msra.mxu1 %v9140_v27  ;;  %v8816_v26 = vcombine.low %v551_v14, %v555_v15  ;;  %v8823_v27 = vcombine.high %v558_v21, %v562_v22  ;;  %v611_v14 = vld [vmem:[%s13810_s3 + $0x338] sm:$0xff]  ;;  %v10299_v21 = vld [vmem:[%s13811_s1 + $0x130] ss:$24 sps:$4 sm:$0xff]  }
  0xbf   :  { %3308 = vmatprep.subr.bf16.mxu0 %v9147_v28  ;;  %3647 = vmatprep.subr.bf16.mxu1 %v9149_v29  ;;  %v8825_v28 = vcombine.high %v559_v23, %v563_v24  ;;  %v566_v29 = vld [vmem:[%s13810_s3 + $0x1d0] sm:$0xff]  ;;  %v615_v22 = vld [vmem:[%s13810_s3 + $0x358] sm:$0xff] }
  0xc0   :  { %3310 = vmatprep.mubr.bf16.mxu0 %v10281_v30  ;;  %3649 = vmatprep.mubr.bf16.mxu1 %v10281_v30  ;;  %v570_v30 = vld [vmem:[%s13810_s3 + $0x1f0] sm:$0xff] }
  0xc1   :  { %v8830_v43 = vcombine.low %v566_v29, %v570_v30 }
  0xc2   :  { %3309 = vmatpush1.bf16.msra.mxu0 %v9146_v35  ;;  %3648 = vmatpush1.bf16.msra.mxu1 %v9148_v36  ;;  %v8824_v35 = vcombine.low %v559_v23, %v563_v24  ;;  %v8831_v36 = vcombine.high %v566_v29, %v570_v30  ;;  %v619_v23 = vld [vmem:[%s13810_s3 + $0x378] sm:$0xff]  ;;  %v8870_v24 = vcombine.low %v606_v11, %v610_v12  ;;  %v622_v29 = vld [vmem:[%s13810_s3 + $0x390] sm:$0xff] }
  0xc3   :  { %3730 = vmatprep.subr.bf16.mxu0 %v8775_v37  ;;  %4069 = vmatprep.subr.bf16.mxu1 %v8777_v38  ;;  %v8833_v37 = vcombine.high %v567_v32, %v571_v33  ;;  %v10291_v38 = vld [vmem:[%s13811_s1 + $0xd4] ss:$24 sps:$4 sm:$0xff]  }
  0xc4   :  { %v626_v30 = vld [vmem:[%s13810_s3 + $0x3b0] sm:$0xff] }
  0xc5   :  { %3311 = vmatmul.mubr.bf16.vlgmr.msra.gmra.mrb[0].mxu0 %v10279_v41  ;;  %3650 = vmatmul.mubr.bf16.vlgmr.msra.gmra.mrb[0].mxu1 %v10279_v41  ;;  %v575_v41 = vld [vmem:[%s13810_s3 + $0x218] sm:$0xff] }
  0xc6   :  { %3731 = vmatpush1.bf16.msra.mxu0 %v8774_v44  ;;  %4070 = vmatpush1.bf16.msra.mxu1 %v8776_v45  ;;  %v8832_v44 = vcombine.low %v567_v32, %v571_v33  ;;  %v8839_v45 = vcombine.high %v574_v39, %v578_v40  ;;  %v627_v32 = vld [vmem:[%s13810_s3 + $0x3b8] sm:$0xff] }
  0xc7   :  { %3732 = vmatprep.subr.bf16.mxu0 %v8783_v46  ;;  %4071 = vmatprep.subr.bf16.mxu1 %v8785_v47  ;;  %v8841_v46 = vcombine.high %v575_v41, %v579_v42  ;;  %v582_v47 = vld [vmem:[%s13810_s3 + $0x250] sm:$0xff]  ;;  %v10302_v39 = vld [vmem:[%s13811_s1 + $0x160] ss:$24 sps:$4 sm:$0xff]  }
  0xc8   :  { %3320 = vmatprep.mubr.bf16.mxu0 %v10282_v48  ;;  %3659 = vmatprep.mubr.bf16.mxu1 %v10282_v48  ;;  %v586_v48 = vld [vmem:[%s13810_s3 + $0x270] sm:$0xff]  ;;  %v631_v40 = vld [vmem:[%s13810_s3 + $0x3d8] sm:$0xff] }
  0xc9   :  { %v8846_v61 = vcombine.low %v582_v47, %v586_v48 }
  0xca   :  { %3733 = vmatpush1.bf16.msra.mxu0 %v8782_v53  ;;  %4072 = vmatpush1.bf16.msra.mxu1 %v8784_v54  ;;  %v8840_v53 = vcombine.low %v575_v41, %v579_v42  ;;  %v8847_v54 = vcombine.high %v582_v47, %v586_v48  ;;  %v635_v41 = vld [vmem:[%s13810_s3 + $0x3f8] sm:$0xff]  ;;  %v8886_v42 = vcombine.low %v622_v29, %v626_v30  ;;  %v642_v47 = vld [vmem:[%s13810_s3 + $0x430] sm:$0xff] }
  0xcb   :  { %3734 = vmatprep.subr.bf16.mxu0 %v8791_v55  ;;  %4073 = vmatprep.subr.bf16.mxu1 %v8793_v56  ;;  %v8849_v55 = vcombine.high %v583_v50, %v587_v51  ;;  %v10294_v56 = vld [vmem:[%s13811_s1 + $0x104] ss:$24 sps:$4 sm:$0xff]  }
  0xcc   :  { %v639_v48 = vld [vmem:[%s13810_s3 + $0x418] sm:$0xff] }
  0xcd   :  { %3321 = vmatmul.mubr.bf16.gmra.mrb[4].mxu0 %v10284_v59  ;;  %3660 = vmatmul.mubr.bf16.gmra.mrb[4].mxu1 %v10284_v59  ;;  %v591_v59 = vld [vmem:[%s13810_s3 + $0x298] sm:$0xff] }
  0xce   :  { %3735 = vmatpush1.bf16.msra.mxu0 %v8790_v62  ;;  %4074 = vmatpush1.bf16.msra.mxu1 %v8792_v63  ;;  %v8848_v62 = vcombine.low %v583_v50, %v587_v51  ;;  %v8855_v63 = vcombine.high %v590_v57, %v594_v58  ;;  %v8896_v51 = vcombine.low %v631_v40, %v635_v41  ;;  %v647_v57 = vld [vmem:[%s13810_s3 + $0x458] sm:$0xff] }
  0xcf   :  { %3736 = vmatprep.subr.bf16.mxu0 %v8799_v0  ;;  %4075 = vmatprep.subr.bf16.mxu1 %v8801_v1  ;;  %v8857_v0 = vcombine.high %v591_v59, %v595_v60  ;;  %v598_v1 = vld [vmem:[%s13810_s3 + $0x2d0] sm:$0xff]  ;;  %v651_v58 = vld [vmem:[%s13810_s3 + $0x478] sm:$0xff] }
  0xd0   :  { %3330 = vmatprep.mubr.bf16.mxu0 %v10285_v2  ;;  %3669 = vmatprep.mubr.bf16.mxu1 %v10285_v2  ;;  %v602_v2 = vld [vmem:[%s13810_s3 + $0x2f0] sm:$0xff] }
  0xd1   :  { %v8862_v15 = vcombine.low %v598_v1, %v602_v2 }
  0xd2   :  { %3737 = vmatpush1.bf16.msra.mxu0 %v8798_v7  ;;  %4076 = vmatpush1.bf16.msra.mxu1 %v8800_v8  ;;  %v8856_v7 = vcombine.low %v591_v59, %v595_v60  ;;  %v8863_v8 = vcombine.high %v598_v1, %v602_v2  ;;  %v10380_v1 = vld [vmem:[%s13811_s1] ss:$24 sps:$4 sm:$0xff]  }
  0xd3   :  { %3738 = vmatprep.subr.bf16.mxu0 %v8807_v9  ;;  %4077 = vmatprep.subr.bf16.mxu1 %v8809_v10  ;;  %v8865_v9 = vcombine.high %v599_v4, %v603_v5  ;;  %v10297_v10 = vld [vmem:[%s13811_s1 + $0x134] ss:$24 sps:$4 sm:$0xff]   ;;  %v655_v2 = vld [vmem:[%s13810_s3 + $0x498] sm:$0xff] }
  0xd5   :  { %3331 = vmatmul.mubr.bf16.gmra.mrb[8].mxu0 %v10287_v13  ;;  %3670 = vmatmul.mubr.bf16.gmra.mrb[8].mxu1 %v10287_v13  ;;  %v607_v13 = vld [vmem:[%s13810_s3 + $0x318] sm:$0xff] }
  0xd6   :  { %3739 = vmatpush1.bf16.msra.mxu0 %v8806_v16  ;;  %4078 = vmatpush1.bf16.msra.mxu1 %v8808_v17  ;;  %v8864_v16 = vcombine.low %v599_v4, %v603_v5  ;;  %v8871_v17 = vcombine.high %v606_v11, %v610_v12  ;;  %v8912_v5 = vcombine.low %v647_v57, %v651_v58  ;;  %v663_v11 = vld [vmem:[%s13810_s3 + $0x4d8] sm:$0xff] }
  0xd7   :  { %3740 = vmatprep.subr.bf16.mxu0 %v8815_v18  ;;  %4079 = vmatprep.subr.bf16.mxu1 %v8817_v19  ;;  %v8873_v18 = vcombine.high %v607_v13, %v611_v14  ;;  %v614_v19 = vld [vmem:[%s13810_s3 + $0x350] sm:$0xff]  ;;  %v667_v12 = vld [vmem:[%s13810_s3 + $0x4f8] sm:$0xff] }
  0xd8   :  { %3340 = vmatprep.mubr.bf16.mxu0 %v10288_v20  ;;  %3679 = vmatprep.mubr.bf16.mxu1 %v10288_v20  ;;  %v618_v20 = vld [vmem:[%s13810_s3 + $0x370] sm:$0xff] }
  0xd9   :  { %v8878_v33 = vcombine.low %v614_v19, %v618_v20 }
  0xda   :  { %3741 = vmatpush1.bf16.msra.mxu0 %v8814_v25  ;;  %4080 = vmatpush1.bf16.msra.mxu1 %v8816_v26  ;;  %v8872_v25 = vcombine.low %v607_v13, %v611_v14  ;;  %v8879_v26 = vcombine.high %v614_v19, %v618_v20  ;;  %v10382_v19 = vld [vmem:[%s13811_s1 + $0x30] ss:$24 sps:$4 sm:$0xff]   ;;  %v671_v20 = vld [vmem:[%s13810_s3 + $0x518] sm:$0xff] }
  0xdb   :  { %3742 = vmatprep.subr.bf16.mxu0 %v8823_v27  ;;  %4081 = vmatprep.subr.bf16.mxu1 %v8825_v28  ;;  %v8881_v27 = vcombine.high %v615_v22, %v619_v23  ;;  %v10300_v28 = vld [vmem:[%s13811_s1 + $0x164] ss:$24 sps:$4 sm:$0xff]  }
  0xdd   :  { %3341 = vmatmul.mubr.bf16.gmra.mrb[12].mxu0 %v10290_v31  ;;  %3680 = vmatmul.mubr.bf16.gmra.mrb[12].mxu1 %v10290_v31  ;;  %v623_v31 = vld [vmem:[%s13810_s3 + $0x398] sm:$0xff] }
  0xde   :  { %3743 = vmatpush1.bf16.msra.mxu0 %v8822_v34  ;;  %4082 = vmatpush1.bf16.msra.mxu1 %v8824_v35  ;;  %v8880_v34 = vcombine.low %v615_v22, %v619_v23  ;;  %v8887_v35 = vcombine.high %v622_v29, %v626_v30  ;;  %v8928_v23 = vcombine.low %v663_v11, %v667_v12  ;;  %v679_v29 = vld [vmem:[%s13810_s3 + $0x558] sm:$0xff] }
  0xdf   :  { %3744 = vmatprep.subr.bf16.mxu0 %v8831_v36  ;;  %4083 = vmatprep.subr.bf16.mxu1 %v8833_v37  ;;  %v8889_v36 = vcombine.high %v623_v31, %v627_v32  ;;  %v630_v37 = vld [vmem:[%s13810_s3 + $0x3d0] sm:$0xff]  ;;  %v683_v30 = vld [vmem:[%s13810_s3 + $0x578] sm:$0xff] }
  0xe0   :  { %3350 = vmatprep.mubr.bf16.mxu0 %v10291_v38  ;;  %3689 = vmatprep.mubr.bf16.mxu1 %v10291_v38  ;;  %v634_v38 = vld [vmem:[%s13810_s3 + $0x3f0] sm:$0xff] }
  0xe1   :  { %v8894_v50 = vcombine.low %v630_v37, %v634_v38 }
  0xe2   :  { %3745 = vmatpush1.bf16.msra.mxu0 %v8830_v43  ;;  %4084 = vmatpush1.bf16.msra.mxu1 %v8832_v44  ;;  %v8888_v43 = vcombine.low %v623_v31, %v627_v32  ;;  %v8895_v44 = vcombine.high %v630_v37, %v634_v38  ;;  %v10384_v37 = vld [vmem:[%s13811_s1 + $0x60] ss:$24 sps:$4 sm:$0xff]  }
  0xe3   :  { %3746 = vmatprep.subr.bf16.mxu0 %v8839_v45  ;;  %4085 = vmatprep.subr.bf16.mxu1 %v8841_v46  ;;  %v8897_v45 = vcombine.high %v631_v40, %v635_v41  ;;  %v638_v46 = vld [vmem:[%s13810_s3 + $0x410] sm:$0xff]  ;;  %v687_v38 = vld [vmem:[%s13810_s3 + $0x598] sm:$0xff]  ;;  %v8944_v41 = vcombine.low %v679_v29, %v683_v30 }
  0xe4   :  { %v8902_v59 = vcombine.low %v638_v46, %v642_v47 }
  0xe5   :  { %3351 = vmatmul.mubr.bf16.gmra.mrb[16].mxu0 %v10293_v49  ;;  %3690 = vmatmul.mubr.bf16.gmra.mrb[16].mxu1 %v10293_v49  ;;  %v643_v49 = vld [vmem:[%s13810_s3 + $0x438] sm:$0xff] }
  0xe6   :  { %3747 = vmatpush1.bf16.msra.mxu0 %v8838_v52  ;;  %4086 = vmatpush1.bf16.msra.mxu1 %v8840_v53  ;;  %v8903_v52 = vcombine.high %v638_v46, %v642_v47  ;;  %v10379_v53 = vld [vmem:[%s13811_s1 + $0x4] ss:$24 sps:$4 sm:$0xff]   ;;  %v8904_v60 = vcombine.low %v639_v48, %v643_v49  ;;  %v698_v46 = vld [vmem:[%s13810_s3 + $0x5f0] sm:$0xff] }
  0xe7   :  { %3748 = vmatprep.subr.bf16.mxu0 %v8847_v54  ;;  %4087 = vmatprep.subr.bf16.mxu1 %v8849_v55  ;;  %v8905_v54 = vcombine.high %v639_v48, %v643_v49  ;;  %v646_v55 = vld [vmem:[%s13810_s3 + $0x450] sm:$0xff]  ;;  %v695_v47 = vld [vmem:[%s13810_s3 + $0x5d8] sm:$0xff] }
  0xe8   :  { %3360 = vmatprep.mubr.bf16.mxu0 %v10294_v56  ;;  %3699 = vmatprep.mubr.bf16.mxu1 %v10294_v56  ;;  %v650_v56 = vld [vmem:[%s13810_s3 + $0x470] sm:$0xff]  ;;  %v699_v48 = vld [vmem:[%s13810_s3 + $0x5f8] sm:$0xff] }
  0xe9   :  { %v8910_v4 = vcombine.low %v646_v55, %v650_v56 }
  0xea   :  { %3749 = vmatpush1.bf16.msra.mxu0 %v8846_v61  ;;  %4088 = vmatpush1.bf16.msra.mxu1 %v8848_v62  ;;  %v8911_v61 = vcombine.high %v646_v55, %v650_v56  ;;  %v8913_v62 = vcombine.high %v647_v57, %v651_v58  ;;  %v10386_v55 = vld [vmem:[%s13811_s1 + $0x90] ss:$24 sps:$4 sm:$0xff]   ;;  %v703_v56 = vld [vmem:[%s13810_s3 + $0x618] sm:$0xff] }
  0xeb   :  { %3750 = vmatprep.subr.bf16.mxu0 %v8855_v63  ;;  %4089 = vmatprep.subr.bf16.mxu1 %v8857_v0  ;;  %v654_v63 = vld [vmem:[%s13810_s3 + $0x490] sm:$0xff]  ;;  %v707_v57 = vld [vmem:[%s13810_s3 + $0x638] sm:$0xff] }
  0xec   :  { %v658_v0 = vld [vmem:[%s13810_s3 + $0x4b0] sm:$0xff] }
  0xed   :  { %3361 = vmatmul.mubr.bf16.gmra.mrb[20].mxu0 %v10296_v3  ;;  %3700 = vmatmul.mubr.bf16.gmra.mrb[20].mxu1 %v10296_v3  ;;  %v659_v3 = vld [vmem:[%s13810_s3 + $0x4b8] sm:$0xff]  ;;  %v8918_v13 = vcombine.low %v654_v63, %v658_v0 }
  0xee   :  { %3751 = vmatpush1.bf16.msra.mxu0 %v8854_v6  ;;  %4090 = vmatpush1.bf16.msra.mxu1 %v8856_v7  ;;  %v8919_v6 = vcombine.high %v654_v63, %v658_v0  ;;  %v10381_v7 = vld [vmem:[%s13811_s1 + $0x34] ss:$24 sps:$4 sm:$0xff]   ;;  %v8920_v14 = vcombine.low %v655_v2, %v659_v3 }
  0xef   :  { %3752 = vmatprep.subr.bf16.mxu0 %v8863_v8  ;;  %4091 = vmatprep.subr.bf16.mxu1 %v8865_v9  ;;  %v8921_v8 = vcombine.high %v655_v2, %v659_v3  ;;  %v662_v9 = vld [vmem:[%s13810_s3 + $0x4d0] sm:$0xff]  ;;  %v715_v2 = vld [vmem:[%s13810_s3 + $0x678] sm:$0xff] }
  0xf0   :  { %3370 = vmatprep.mubr.bf16.mxu0 %v10297_v10  ;;  %3709 = vmatprep.mubr.bf16.mxu1 %v10297_v10  ;;  %v666_v10 = vld [vmem:[%s13810_s3 + $0x4f0] sm:$0xff] }
  0xf1   :  { %v8926_v22 = vcombine.low %v662_v9, %v666_v10  ;;  %v710_v63 = vld [vmem:[%s13810_s3 + $0x650] sm:$0xff] }
  0xf2   :  { %3753 = vmatpush1.bf16.msra.mxu0 %v8862_v15  ;;  %4092 = vmatpush1.bf16.msra.mxu1 %v8864_v16  ;;  %v8927_v15 = vcombine.high %v662_v9, %v666_v10  ;;  %v8929_v16 = vcombine.high %v663_v11, %v667_v12  ;;  %v714_v0 = vld [vmem:[%s13810_s3 + $0x670] sm:$0xff]  ;;  %v10388_v9 = vld [vmem:[%s13811_s1 + $0xc0] ss:$24 sps:$4 sm:$0xff]  }
  0xf3   :  { %3754 = vmatprep.subr.bf16.mxu0 %v8871_v17  ;;  %4093 = vmatprep.subr.bf16.mxu1 %v8873_v18  ;;  %v670_v17 = vld [vmem:[%s13810_s3 + $0x510] sm:$0xff]  ;;  %v719_v10 = vld [vmem:[%s13810_s3 + $0x698] sm:$0xff]  ;;  %v8974_v12 = vcombine.low %v710_v63, %v714_v0 }
  0xf4   :  { %v674_v18 = vld [vmem:[%s13810_s3 + $0x530] sm:$0xff]  ;;  %v723_v11 = vld [vmem:[%s13810_s3 + $0x6b8] sm:$0xff] }
  0xf5   :  { %3371 = vmatmul.mubr.bf16.gmra.mrb[24].mxu0 %v10299_v21  ;;  %3710 = vmatmul.mubr.bf16.gmra.mrb[24].mxu1 %v10299_v21  ;;  %v675_v21 = vld [vmem:[%s13810_s3 + $0x538] sm:$0xff]  ;;  %v8934_v31 = vcombine.low %v670_v17, %v674_v18 }
  0xf6   :  { %3755 = vmatpush1.bf16.msra.mxu0 %v8870_v24  ;;  %4094 = vmatpush1.bf16.msra.mxu1 %v8872_v25  ;;  %v8935_v24 = vcombine.high %v670_v17, %v674_v18  ;;  %v10383_v25 = vld [vmem:[%s13811_s1 + $0x64] ss:$24 sps:$4 sm:$0xff]   ;;  %v8936_v32 = vcombine.low %v671_v20, %v675_v21  ;;  %v726_v17 = vld [vmem:[%s13810_s3 + $0x6d0] sm:$0xff] }
  0xf7   :  { %3756 = vmatprep.subr.bf16.mxu0 %v8879_v26  ;;  %4095 = vmatprep.subr.bf16.mxu1 %v8881_v27  ;;  %v8937_v26 = vcombine.high %v671_v20, %v675_v21  ;;  %v678_v27 = vld [vmem:[%s13810_s3 + $0x550] sm:$0xff]  ;;  %v731_v20 = vld [vmem:[%s13810_s3 + $0x6f8] sm:$0xff] }
  0xf8   :  { %3380 = vmatprep.mubr.bf16.mxu0 %v10300_v28  ;;  %3719 = vmatprep.mubr.bf16.mxu1 %v10300_v28  ;;  %v682_v28 = vld [vmem:[%s13810_s3 + $0x570] sm:$0xff] }
  0xf9   :  { %v8942_v40 = vcombine.low %v678_v27, %v682_v28  ;;  %v730_v18 = vld [vmem:[%s13810_s3 + $0x6f0] sm:$0xff] }
  0xfa   :  { %3757 = vmatpush1.bf16.msra.mxu0 %v8878_v33  ;;  %4096 = vmatpush1.bf16.msra.mxu1 %v8880_v34  ;;  %v8943_v33 = vcombine.high %v678_v27, %v682_v28  ;;  %v8945_v34 = vcombine.high %v679_v29, %v683_v30  ;;  %v10390_v27 = vld [vmem:[%s13811_s1 + $0xf0] ss:$24 sps:$4 sm:$0xff]   ;;  %v735_v28 = vld [vmem:[%s13810_s3 + $0x718] sm:$0xff]  ;;  %v8990_v30 = vcombine.low %v726_v17, %v730_v18 }
  0xfb   :  { %3758 = vmatprep.subr.bf16.mxu0 %v8887_v35  ;;  %4097 = vmatprep.subr.bf16.mxu1 %v8889_v36  ;;  %v686_v35 = vld [vmem:[%s13810_s3 + $0x590] sm:$0xff]  ;;  %v739_v29 = vld [vmem:[%s13810_s3 + $0x738] sm:$0xff] }
  0xfc   :  { %v690_v36 = vld [vmem:[%s13810_s3 + $0x5b0] sm:$0xff] }
  0xfd   :  { %3381 = vmatmul.mubr.bf16.gmra.mrb[28].mxu0 %v10302_v39  ;;  %3720 = vmatmul.mubr.bf16.gmra.mrb[28].mxu1 %v10302_v39  ;;  %v691_v39 = vld [vmem:[%s13810_s3 + $0x5b8] sm:$0xff]  ;;  %v8950_v49 = vcombine.low %v686_v35, %v690_v36 }
  0xfe   :  { %3759 = vmatpush1.bf16.msra.mxu0 %v8886_v42  ;;  %4098 = vmatpush1.bf16.msra.mxu1 %v8888_v43  ;;  %v8951_v42 = vcombine.high %v686_v35, %v690_v36  ;;  %v10385_v43 = vld [vmem:[%s13811_s1 + $0x94] ss:$24 sps:$4 sm:$0xff]  }
  0xff   :  { %3760 = vmatprep.subr.bf16.mxu0 %v8895_v44  ;;  %4099 = vmatprep.subr.bf16.mxu1 %v8897_v45  ;;  %v8953_v44 = vcombine.high %v687_v38, %v691_v39  ;;  %v694_v45 = vld [vmem:[%s13810_s3 + $0x5d0] sm:$0xff] }
 0x100   :  { %3762 = vmatprep.mubr.bf16.mxu0 %v10379_v53  ;;  %4101 = vmatprep.mubr.bf16.mxu1 %v10379_v53  ;;  %v702_v53 = vld [vmem:[%s13810_s3 + $0x610] sm:$0xff]  ;;  %v8958_v58 = vcombine.low %v694_v45, %v698_v46 }
 0x101   :  { %v742_v35 = vld [vmem:[%s13810_s3 + $0x750] sm:$0xff] }
 0x102   :  { %3761 = vmatpush1.bf16.msra.mxu0 %v8894_v50  ;;  %4100 = vmatpush1.bf16.msra.mxu1 %v8896_v51  ;;  %v8952_v50 = vcombine.low %v687_v38, %v691_v39  ;;  %v8959_v51 = vcombine.high %v694_v45, %v698_v46  ;;  %v746_v36 = vld [vmem:[%s13810_s3 + $0x770] sm:$0xff]  ;;  %v747_v38 = vld [vmem:[%s13810_s3 + $0x778] sm:$0xff] }
 0x103   :  { %3843 = vmatprep.subr.bf16.mxu0 %v8903_v52  ;;  %4182 = vmatprep.subr.bf16.mxu1 %v8905_v54  ;;  %v8961_v52 = vcombine.high %v695_v47, %v699_v48  ;;  %v706_v54 = vld [vmem:[%s13810_s3 + $0x630] sm:$0xff]  ;;  %v10392_v45 = vld [vmem:[%s13811_s1 + $0x120] ss:$24 sps:$4 sm:$0xff]  }
 0x104   :  { %v8966_v3 = vcombine.low %v702_v53, %v706_v54  ;;  %v751_v46 = vld [vmem:[%s13810_s3 + $0x798] sm:$0xff] }
 0x105   :  { %3763 = vmatmul.mubr.bf16.vlgmr.msra.gmra.mrb[32].mxu0 %v10380_v1  ;;  %4102 = vmatmul.mubr.bf16.vlgmr.msra.gmra.mrb[32].mxu1 %v10380_v1  ;;  %v711_v1 = vld [vmem:[%s13810_s3 + $0x658] sm:$0xff] }
 0x106   :  { %3844 = vmatpush1.bf16.msra.mxu0 %v8902_v59  ;;  %4183 = vmatpush1.bf16.msra.mxu1 %v8904_v60  ;;  %v8960_v59 = vcombine.low %v695_v47, %v699_v48  ;;  %v8967_v60 = vcombine.high %v702_v53, %v706_v54  ;;  %v755_v47 = vld [vmem:[%s13810_s3 + $0x7b8] sm:$0xff]  ;;  %v9006_v48 = vcombine.low %v742_v35, %v746_v36  ;;  %v758_v53 = vld [vmem:[%s13810_s3 + $0x7d0] sm:$0xff] }
 0x107   :  { %3845 = vmatprep.subr.bf16.mxu0 %v8911_v61  ;;  %4184 = vmatprep.subr.bf16.mxu1 %v8913_v62  ;;  %v10387_v61 = vld [vmem:[%s13811_s1 + $0xc4] ss:$24 sps:$4 sm:$0xff]   ;;  %v8969_v62 = vcombine.high %v703_v56, %v707_v57  ;;  %v762_v54 = vld [vmem:[%s13810_s3 + $0x7f0] sm:$0xff] }
 0x108   :  { %3772 = vmatprep.mubr.bf16.mxu0 %v10381_v7  ;;  %4111 = vmatprep.mubr.bf16.mxu1 %v10381_v7  ;;  %v718_v7 = vld [vmem:[%s13810_s3 + $0x690] sm:$0xff] }
 0x10a   :  { %3846 = vmatpush1.bf16.msra.mxu0 %v8910_v4  ;;  %4185 = vmatpush1.bf16.msra.mxu1 %v8912_v5  ;;  %v8968_v4 = vcombine.low %v703_v56, %v707_v57  ;;  %v8975_v5 = vcombine.high %v710_v63, %v714_v0  ;;  %v763_v56 = vld [vmem:[%s13810_s3 + $0x7f8] sm:$0xff]  ;;  %v10394_v63 = vld [vmem:[%s13811_s1 + $0x150] ss:$24 sps:$4 sm:$0xff]  }
 0x10b   :  { %3847 = vmatprep.subr.bf16.mxu0 %v8919_v6  ;;  %4186 = vmatprep.subr.bf16.mxu1 %v8921_v8  ;;  %v8977_v6 = vcombine.high %v711_v1, %v715_v2  ;;  %v722_v8 = vld [vmem:[%s13810_s3 + $0x6b0] sm:$0xff]  ;;  %v767_v0 = vld [vmem:[%s13810_s3 + $0x818] sm:$0xff] }
 0x10c   :  { %v8982_v21 = vcombine.low %v718_v7, %v722_v8 }
 0x10d   :  { %3773 = vmatmul.mubr.bf16.gmra.mrb[36].mxu0 %v10382_v19  ;;  %4112 = vmatmul.mubr.bf16.gmra.mrb[36].mxu1 %v10382_v19  ;;  %v727_v19 = vld [vmem:[%s13810_s3 + $0x6d8] sm:$0xff] }
 0x10e   :  { %3848 = vmatpush1.bf16.msra.mxu0 %v8918_v13  ;;  %4187 = vmatpush1.bf16.msra.mxu1 %v8920_v14  ;;  %v8976_v13 = vcombine.low %v711_v1, %v715_v2  ;;  %v8983_v14 = vcombine.high %v718_v7, %v722_v8  ;;  %v771_v1 = vld [vmem:[%s13810_s3 + $0x838] sm:$0xff]  ;;  %v9022_v2 = vcombine.low %v758_v53, %v762_v54  ;;  %v774_v7 = vld [vmem:[%s13810_s3 + $0x850] sm:$0xff] }
 0x10f   :  { %3849 = vmatprep.subr.bf16.mxu0 %v8927_v15  ;;  %4188 = vmatprep.subr.bf16.mxu1 %v8929_v16  ;;  %v10389_v15 = vld [vmem:[%s13811_s1 + $0xf4] ss:$24 sps:$4 sm:$0xff]   ;;  %v8985_v16 = vcombine.high %v719_v10, %v723_v11 }
 0x110   :  { %3782 = vmatprep.mubr.bf16.mxu0 %v10383_v25  ;;  %4121 = vmatprep.mubr.bf16.mxu1 %v10383_v25  ;;  %v734_v25 = vld [vmem:[%s13810_s3 + $0x710] sm:$0xff] }
 0x111   :  { %v778_v8 = vld [vmem:[%s13810_s3 + $0x870] sm:$0xff] }
 0x112   :  { %3850 = vmatpush1.bf16.msra.mxu0 %v8926_v22  ;;  %4189 = vmatpush1.bf16.msra.mxu1 %v8928_v23  ;;  %v8984_v22 = vcombine.low %v719_v10, %v723_v11  ;;  %v8991_v23 = vcombine.high %v726_v17, %v730_v18  ;;  %v779_v10 = vld [vmem:[%s13810_s3 + $0x878] sm:$0xff]  ;;  %v10396_v17 = vld [vmem:[%s13811_s1 + $0x8] ss:$24 sps:$4 sm:$0xff]  }
 0x113   :  { %3851 = vmatprep.subr.bf16.mxu0 %v8935_v24  ;;  %4190 = vmatprep.subr.bf16.mxu1 %v8937_v26  ;;  %v8993_v24 = vcombine.high %v727_v19, %v731_v20  ;;  %v738_v26 = vld [vmem:[%s13810_s3 + $0x730] sm:$0xff]  ;;  %v783_v18 = vld [vmem:[%s13810_s3 + $0x898] sm:$0xff] }
 0x114   :  { %v8998_v39 = vcombine.low %v734_v25, %v738_v26 }
 0x115   :  { %3783 = vmatmul.mubr.bf16.gmra.mrb[40].mxu0 %v10384_v37  ;;  %4122 = vmatmul.mubr.bf16.gmra.mrb[40].mxu1 %v10384_v37  ;;  %v743_v37 = vld [vmem:[%s13810_s3 + $0x758] sm:$0xff] }
 0x116   :  { %3852 = vmatpush1.bf16.msra.mxu0 %v8934_v31  ;;  %4191 = vmatpush1.bf16.msra.mxu1 %v8936_v32  ;;  %v8992_v31 = vcombine.low %v727_v19, %v731_v20  ;;  %v8999_v32 = vcombine.high %v734_v25, %v738_v26  ;;  %v787_v19 = vld [vmem:[%s13810_s3 + $0x8b8] sm:$0xff]  ;;  %v9038_v20 = vcombine.low %v774_v7, %v778_v8 }
 0x117   :  { %3853 = vmatprep.subr.bf16.mxu0 %v8943_v33  ;;  %4192 = vmatprep.subr.bf16.mxu1 %v8945_v34  ;;  %v10391_v33 = vld [vmem:[%s13811_s1 + $0x124] ss:$24 sps:$4 sm:$0xff]   ;;  %v9001_v34 = vcombine.high %v735_v28, %v739_v29 }
 0x118   :  { %3792 = vmatprep.mubr.bf16.mxu0 %v10385_v43  ;;  %4131 = vmatprep.mubr.bf16.mxu1 %v10385_v43  ;;  %v750_v43 = vld [vmem:[%s13810_s3 + $0x790] sm:$0xff]  ;;  %v791_v25 = vld [vmem:[%s13810_s3 + $0x8d8] sm:$0xff] }
 0x119   :  { %v10397_v26 = vld [vmem:[%s13811_s1 + $0x3c] ss:$24 sps:$4 sm:$0xff]  }
 0x11a   :  { %3854 = vmatpush1.bf16.msra.mxu0 %v8942_v40  ;;  %4193 = vmatpush1.bf16.msra.mxu1 %v8944_v41  ;;  %v9000_v40 = vcombine.low %v735_v28, %v739_v29  ;;  %v9007_v41 = vcombine.high %v742_v35, %v746_v36  ;;  %v795_v28 = vld [vmem:[%s13810_s3 + $0x8f8] sm:$0xff] }
 0x11b   :  { %3855 = vmatprep.subr.bf16.mxu0 %v8951_v42  ;;  %4194 = vmatprep.subr.bf16.mxu1 %v8953_v44  ;;  %v9009_v42 = vcombine.high %v743_v37, %v747_v38  ;;  %v754_v44 = vld [vmem:[%s13810_s3 + $0x7b0] sm:$0xff]  ;;  %v799_v35 = vld [vmem:[%s13810_s3 + $0x918] sm:$0xff] }
 0x11c   :  { %v9014_v57 = vcombine.low %v750_v43, %v754_v44  ;;  %v803_v36 = vld [vmem:[%s13810_s3 + $0x938] sm:$0xff] }
 0x11d   :  { %3793 = vmatmul.mubr.bf16.gmra.mrb[44].mxu0 %v10386_v55  ;;  %4132 = vmatmul.mubr.bf16.gmra.mrb[44].mxu1 %v10386_v55  ;;  %v759_v55 = vld [vmem:[%s13810_s3 + $0x7d8] sm:$0xff] }
 0x11e   :  { %3856 = vmatpush1.bf16.msra.mxu0 %v8950_v49  ;;  %4195 = vmatpush1.bf16.msra.mxu1 %v8952_v50  ;;  %v9008_v49 = vcombine.low %v743_v37, %v747_v38  ;;  %v9015_v50 = vcombine.high %v750_v43, %v754_v44  ;;  %v10398_v37 = vld [vmem:[%s13811_s1 + $0x38] ss:$24 sps:$4 sm:$0xff]   ;;  %v10399_v44 = vld [vmem:[%s13811_s1 + $0x6c] ss:$24 sps:$4 sm:$0xff]  }
 0x11f   :  { %3857 = vmatprep.subr.bf16.mxu0 %v8959_v51  ;;  %4196 = vmatprep.subr.bf16.mxu1 %v8961_v52  ;;  %v10393_v51 = vld [vmem:[%s13811_s1 + $0x154] ss:$24 sps:$4 sm:$0xff]   ;;  %v9017_v52 = vcombine.high %v751_v46, %v755_v47  ;;  %v807_v43 = vld [vmem:[%s13810_s3 + $0x958] sm:$0xff] }
 0x120   :  { %3802 = vmatprep.mubr.bf16.mxu0 %v10387_v61  ;;  %4141 = vmatprep.mubr.bf16.mxu1 %v10387_v61  ;;  %v766_v61 = vld [vmem:[%s13810_s3 + $0x810] sm:$0xff] }
 0x122   :  { %3858 = vmatpush1.bf16.msra.mxu0 %v8958_v58  ;;  %4197 = vmatpush1.bf16.msra.mxu1 %v8960_v59  ;;  %v9016_v58 = vcombine.low %v751_v46, %v755_v47  ;;  %v9023_v59 = vcombine.high %v758_v53, %v762_v54  ;;  %v811_v46 = vld [vmem:[%s13810_s3 + $0x978] sm:$0xff] }
 0x123   :  { %3859 = vmatprep.subr.bf16.mxu0 %v8967_v60  ;;  %4198 = vmatprep.subr.bf16.mxu1 %v8969_v62  ;;  %v9025_v60 = vcombine.high %v759_v55, %v763_v56  ;;  %v770_v62 = vld [vmem:[%s13810_s3 + $0x830] sm:$0xff]  ;;  %v815_v53 = vld [vmem:[%s13810_s3 + $0x998] sm:$0xff] }
 0x124   :  { %v9030_v11 = vcombine.low %v766_v61, %v770_v62  ;;  %v819_v54 = vld [vmem:[%s13810_s3 + $0x9b8] sm:$0xff] }
 0x125   :  { %3803 = vmatmul.mubr.bf16.gmra.mrb[48].mxu0 %v10388_v9  ;;  %4142 = vmatmul.mubr.bf16.gmra.mrb[48].mxu1 %v10388_v9  ;;  %v775_v9 = vld [vmem:[%s13810_s3 + $0x858] sm:$0xff] }
 0x126   :  { %3860 = vmatpush1.bf16.msra.mxu0 %v8966_v3  ;;  %4199 = vmatpush1.bf16.msra.mxu1 %v8968_v4  ;;  %v9024_v3 = vcombine.low %v759_v55, %v763_v56  ;;  %v9031_v4 = vcombine.high %v766_v61, %v770_v62  ;;  %v10400_v55 = vld [vmem:[%s13811_s1 + $0x68] ss:$24 sps:$4 sm:$0xff]   ;;  %v823_v61 = vld [vmem:[%s13810_s3 + $0x9d8] sm:$0xff] }
 0x127   :  { %3861 = vmatprep.subr.bf16.mxu0 %v8975_v5  ;;  %4200 = vmatprep.subr.bf16.mxu1 %v8977_v6  ;;  %v10395_v5 = vld [vmem:[%s13811_s1 + $0xc] ss:$24 sps:$4 sm:$0xff]   ;;  %v9033_v6 = vcombine.high %v767_v0, %v771_v1  ;;  %v10401_v62 = vld [vmem:[%s13811_s1 + $0x9c] ss:$24 sps:$4 sm:$0xff]  }
 0x128   :  { %3812 = vmatprep.mubr.bf16.mxu0 %v10389_v15  ;;  %4151 = vmatprep.mubr.bf16.mxu1 %v10389_v15  ;;  %v782_v15 = vld [vmem:[%s13810_s3 + $0x890] sm:$0xff] }
 0x12a   :  { %3862 = vmatpush1.bf16.msra.mxu0 %v8974_v12  ;;  %4201 = vmatpush1.bf16.msra.mxu1 %v8976_v13  ;;  %v9032_v12 = vcombine.low %v767_v0, %v771_v1  ;;  %v9039_v13 = vcombine.high %v774_v7, %v778_v8  ;;  %v827_v0 = vld [vmem:[%s13810_s3 + $0x9f8] sm:$0xff] }
 0x12b   :  { %3863 = vmatprep.subr.bf16.mxu0 %v8983_v14  ;;  %4202 = vmatprep.subr.bf16.mxu1 %v8985_v16  ;;  %v9041_v14 = vcombine.high %v775_v9, %v779_v10  ;;  %v786_v16 = vld [vmem:[%s13810_s3 + $0x8b0] sm:$0xff]  ;;  %v831_v7 = vld [vmem:[%s13810_s3 + $0xa18] sm:$0xff] }
 0x12c   :  { %v9046_v29 = vcombine.low %v782_v15, %v786_v16  ;;  %v835_v8 = vld [vmem:[%s13810_s3 + $0xa38] sm:$0xff] }
 0x12d   :  { %3813 = vmatmul.mubr.bf16.gmra.mrb[52].mxu0 %v10390_v27  ;;  %4152 = vmatmul.mubr.bf16.gmra.mrb[52].mxu1 %v10390_v27  ;;  %v9049_v27 = vcombine.high %v783_v18, %v787_v19 }
 0x12e   :  { %3864 = vmatpush1.bf16.msra.mxu0 %v8982_v21  ;;  %4203 = vmatpush1.bf16.msra.mxu1 %v8984_v22  ;;  %v9040_v21 = vcombine.low %v775_v9, %v779_v10  ;;  %v9047_v22 = vcombine.high %v782_v15, %v786_v16  ;;  %v10402_v9 = vld [vmem:[%s13811_s1 + $0x98] ss:$24 sps:$4 sm:$0xff]  }
 0x12f   :  { %3865 = vmatprep.subr.bf16.mxu0 %v8991_v23  ;;  %4204 = vmatprep.subr.bf16.mxu1 %v8993_v24  ;;  %v790_v23 = vld [vmem:[%s13810_s3 + $0x8d0] sm:$0xff] }
 0x130   :  { %3822 = vmatprep.mubr.bf16.mxu0 %v10391_v33  ;;  %4161 = vmatprep.mubr.bf16.mxu1 %v10391_v33  ;;  %v794_v24 = vld [vmem:[%s13810_s3 + $0x8f0] sm:$0xff]  ;;  %v9057_v33 = vcombine.high %v791_v25, %v795_v28 }
 0x131   :  { %v9054_v38 = vcombine.low %v790_v23, %v794_v24  ;;  %v838_v15 = vld [vmem:[%s13810_s3 + $0xa50] sm:$0xff] }
 0x132   :  { %3866 = vmatpush1.bf16.msra.mxu0 %v8990_v30  ;;  %4205 = vmatpush1.bf16.msra.mxu1 %v8992_v31  ;;  %v9048_v30 = vcombine.low %v783_v18, %v787_v19  ;;  %v9055_v31 = vcombine.high %v790_v23, %v794_v24  ;;  %v842_v16 = vld [vmem:[%s13810_s3 + $0xa70] sm:$0xff]  ;;  %v843_v18 = vld [vmem:[%s13810_s3 + $0xa78] sm:$0xff] }
 0x133   :  { %3867 = vmatprep.subr.bf16.mxu0 %v8999_v32  ;;  %4206 = vmatprep.subr.bf16.mxu1 %v9001_v34  ;;  %v798_v32 = vld [vmem:[%s13810_s3 + $0x910] sm:$0xff] }
 0x134   :  { %v802_v34 = vld [vmem:[%s13810_s3 + $0x930] sm:$0xff] }
 0x135   :  { %3823 = vmatmul.mubr.bf16.gmra.mrb[56].mxu0 %v10392_v45  ;;  %4162 = vmatmul.mubr.bf16.gmra.mrb[56].mxu1 %v10392_v45  ;;  %v9065_v45 = vcombine.high %v799_v35, %v803_v36  ;;  %v9062_v47 = vcombine.low %v798_v32, %v802_v34  ;;  %v846_v23 = vld [vmem:[%s13810_s3 + $0xa90] sm:$0xff] }
 0x136   :  { %3868 = vmatpush1.bf16.msra.mxu0 %v8998_v39  ;;  %4207 = vmatpush1.bf16.msra.mxu1 %v9000_v40  ;;  %v9056_v39 = vcombine.low %v791_v25, %v795_v28  ;;  %v9063_v40 = vcombine.high %v798_v32, %v802_v34  ;;  %v850_v24 = vld [vmem:[%s13810_s3 + $0xab0] sm:$0xff]  ;;  %v10404_v25 = vld [vmem:[%s13811_s1 + $0xc8] ss:$24 sps:$4 sm:$0xff]   ;;  %v9102_v28 = vcombine.low %v838_v15, %v842_v16 }
 0x137   :  { %3869 = vmatprep.subr.bf16.mxu0 %v9007_v41  ;;  %4208 = vmatprep.subr.bf16.mxu1 %v9009_v42  ;;  %v806_v41 = vld [vmem:[%s13810_s3 + $0x950] sm:$0xff] }
 0x138   :  { %3832 = vmatprep.mubr.bf16.mxu0 %v10393_v51  ;;  %4171 = vmatprep.mubr.bf16.mxu1 %v10393_v51  ;;  %v810_v42 = vld [vmem:[%s13810_s3 + $0x970] sm:$0xff]  ;;  %v9073_v51 = vcombine.high %v807_v43, %v811_v46 }
 0x139   :  { %v9070_v56 = vcombine.low %v806_v41, %v810_v42  ;;  %v858_v34 = vld [vmem:[%s13810_s3 + $0xaf0] sm:$0xff] }
 0x13a   :  { %3870 = vmatpush1.bf16.msra.mxu0 %v9006_v48  ;;  %4209 = vmatpush1.bf16.msra.mxu1 %v9008_v49  ;;  %v9064_v48 = vcombine.low %v799_v35, %v803_v36  ;;  %v9071_v49 = vcombine.high %v806_v41, %v810_v42  ;;  %v855_v35 = vld [vmem:[%s13810_s3 + $0xad8] sm:$0xff]  ;;  %v862_v41 = vld [vmem:[%s13810_s3 + $0xb10] sm:$0xff] }
 0x13b   :  { %3871 = vmatprep.subr.bf16.mxu0 %v9015_v50  ;;  %4210 = vmatprep.subr.bf16.mxu1 %v9017_v52  ;;  %v814_v50 = vld [vmem:[%s13810_s3 + $0x990] sm:$0xff]  ;;  %v859_v36 = vld [vmem:[%s13810_s3 + $0xaf8] sm:$0xff] }
 0x13c   :  { %v818_v52 = vld [vmem:[%s13810_s3 + $0x9b0] sm:$0xff] }
 0x13d   :  { %3833 = vmatmul.mubr.bf16.gmra.mrb[60].mxu0 %v10394_v63  ;;  %4172 = vmatmul.mubr.bf16.gmra.mrb[60].mxu1 %v10394_v63  ;;  %v9081_v63 = vcombine.high %v815_v53, %v819_v54  ;;  %v9078_v1 = vcombine.low %v814_v50, %v818_v52  ;;  %v866_v42 = vld [vmem:[%s13810_s3 + $0xb30] sm:$0xff] }
 0x13e   :  { %3872 = vmatpush1.bf16.msra.mxu0 %v9014_v57  ;;  %4211 = vmatpush1.bf16.msra.mxu1 %v9016_v58  ;;  %v9072_v57 = vcombine.low %v807_v43, %v811_v46  ;;  %v9079_v58 = vcombine.high %v814_v50, %v818_v52  ;;  %v10406_v43 = vld [vmem:[%s13811_s1 + $0xf8] ss:$24 sps:$4 sm:$0xff]  }
 0x13f   :  { %3873 = vmatprep.subr.bf16.mxu0 %v9023_v59  ;;  %4212 = vmatprep.subr.bf16.mxu1 %v9025_v60  ;;  %v822_v59 = vld [vmem:[%s13810_s3 + $0x9d0] sm:$0xff] }
 0x140   :  { %3875 = vmatprep.mubr.bf16.mxu0 %v10395_v5  ;;  %4214 = vmatprep.mubr.bf16.mxu1 %v10395_v5  ;;  %v826_v60 = vld [vmem:[%s13810_s3 + $0x9f0] sm:$0xff]  ;;  %v9089_v5 = vcombine.high %v823_v61, %v827_v0 }
 0x141   :  { %v9086_v10 = vcombine.low %v822_v59, %v826_v60  ;;  %v874_v52 = vld [vmem:[%s13810_s3 + $0xb70] sm:$0xff] }
 0x142   :  { %3874 = vmatpush1.bf16.msra.mxu0 %v9022_v2  ;;  %4213 = vmatpush1.bf16.msra.mxu1 %v9024_v3  ;;  %v9080_v2 = vcombine.low %v815_v53, %v819_v54  ;;  %v9087_v3 = vcombine.high %v822_v59, %v826_v60  ;;  %v871_v53 = vld [vmem:[%s13810_s3 + $0xb58] sm:$0xff]  ;;  %v878_v59 = vld [vmem:[%s13810_s3 + $0xb90] sm:$0xff] }
 0x143   :  { %3956 = vmatprep.subr.bf16.mxu0 %v9031_v4  ;;  %4295 = vmatprep.subr.bf16.mxu1 %v9033_v6  ;;  %v830_v4 = vld [vmem:[%s13810_s3 + $0xa10] sm:$0xff]  ;;  %v875_v54 = vld [vmem:[%s13810_s3 + $0xb78] sm:$0xff] }
 0x144   :  { %v834_v6 = vld [vmem:[%s13810_s3 + $0xa30] sm:$0xff] }
 0x145   :  { %3876 = vmatmul.mubr.bf16.vlgmr.msra.gmra.mrb[32].mxu0 %v10396_v17  ;;  %4215 = vmatmul.mubr.bf16.vlgmr.msra.gmra.mrb[32].mxu1 %v10396_v17  ;;  %v839_v17 = vld [vmem:[%s13810_s3 + $0xa58] sm:$0xff]  ;;  %v9094_v19 = vcombine.low %v830_v4, %v834_v6  ;;  %v882_v60 = vld [vmem:[%s13810_s3 + $0xbb0] sm:$0xff] }
 0x146   :  { %3957 = vmatpush1.bf16.msra.mxu0 %v9030_v11  ;;  %4296 = vmatpush1.bf16.msra.mxu1 %v9032_v12  ;;  %v9088_v11 = vcombine.low %v823_v61, %v827_v0  ;;  %v9095_v12 = vcombine.high %v830_v4, %v834_v6  ;;  %v10408_v61 = vld [vmem:[%s13811_s1 + $0x128] ss:$24 sps:$4 sm:$0xff]   ;;  %v890_v6 = vld [vmem:[%s13810_s3 + $0xbf0] sm:$0xff] }
 0x147   :  { %3958 = vmatprep.subr.bf16.mxu0 %v9039_v13  ;;  %4297 = vmatprep.subr.bf16.mxu1 %v9041_v14  ;;  %v10403_v13 = vld [vmem:[%s13811_s1 + $0xcc] ss:$24 sps:$4 sm:$0xff]   ;;  %v9097_v14 = vcombine.high %v831_v7, %v835_v8 }
 0x148   :  { %3885 = vmatprep.mubr.bf16.mxu0 %v10397_v26  ;;  %4224 = vmatprep.mubr.bf16.mxu1 %v10397_v26  ;;  %v847_v26 = vld [vmem:[%s13810_s3 + $0xa98] sm:$0xff] }
 0x14a   :  { %3959 = vmatpush1.bf16.msra.mxu0 %v9038_v20  ;;  %4298 = vmatpush1.bf16.msra.mxu1 %v9040_v21  ;;  %v9096_v20 = vcombine.low %v831_v7, %v835_v8  ;;  %v9103_v21 = vcombine.high %v838_v15, %v842_v16  ;;  %v887_v7 = vld [vmem:[%s13810_s3 + $0xbd8] sm:$0xff]  ;;  %v77_v16 = vld [vmem:[%s13813_s2 + $0x8] sm:$0xff] }
 0x14b   :  { %3960 = vmatprep.subr.bf16.mxu0 %v9047_v22  ;;  %4299 = vmatprep.subr.bf16.mxu1 %v9049_v27  ;;  %v9105_v22 = vcombine.high %v839_v17, %v843_v18  ;;  %v851_v27 = vld [vmem:[%s13810_s3 + $0xab8] sm:$0xff] }
 0x14c   :  { %v9113_v32 = vcombine.high %v847_v26, %v851_v27  ;;  %v891_v8 = vld [vmem:[%s13810_s3 + $0xbf8] sm:$0xff] }
 0x14d   :  { %3886 = vmatmul.mubr.bf16.gmra.mrb[36].mxu0 %v10398_v37  ;;  %4225 = vmatmul.mubr.bf16.gmra.mrb[36].mxu1 %v10398_v37  ;;  %v9110_v37 = vcombine.low %v846_v23, %v850_v24  ;;  %v10410_v15 = vld [vmem:[%s13811_s1 + $0x158] ss:$24 sps:$4 sm:$0xff]  }
 0x14e   :  { %3961 = vmatpush1.bf16.msra.mxu0 %v9046_v29  ;;  %4300 = vmatpush1.bf16.msra.mxu1 %v9048_v30  ;;  %v9104_v29 = vcombine.low %v839_v17, %v843_v18  ;;  %v9111_v30 = vcombine.high %v846_v23, %v850_v24  ;;  %v81_v17 = vld [vmem:[%s13813_s2 + $0x28] sm:$0xff]  ;;  %v84_v23 = vld [vmem:[%s13813_s2 + $0x40] sm:$0xff] }
 0x14f   :  { %3962 = vmatprep.subr.bf16.mxu0 %v9055_v31  ;;  %4301 = vmatprep.subr.bf16.mxu1 %v9057_v33  ;;  %v10405_v31 = vld [vmem:[%s13811_s1 + $0xfc] ss:$24 sps:$4 sm:$0xff]   ;;  %v88_v24 = vld [vmem:[%s13813_s2 + $0x60] sm:$0xff] }
 0x150   :  { %3895 = vmatprep.mubr.bf16.mxu0 %v10399_v44  ;;  %4234 = vmatprep.mubr.bf16.mxu1 %v10399_v44  ;;  %v854_v33 = vld [vmem:[%s13810_s3 + $0xad0] sm:$0xff]  ;;  %v863_v44 = vld [vmem:[%s13810_s3 + $0xb18] sm:$0xff] }
 0x151   :  { %v9118_v46 = vcombine.low %v854_v33, %v858_v34 }
 0x152   :  { %3963 = vmatpush1.bf16.msra.mxu0 %v9054_v38  ;;  %4302 = vmatpush1.bf16.msra.mxu1 %v9056_v39  ;;  %v9112_v38 = vcombine.low %v847_v26, %v851_v27  ;;  %v9119_v39 = vcombine.high %v854_v33, %v858_v34  ;;  %v89_v26 = vld [vmem:[%s13813_s2 + $0x68] sm:$0xff] }
 0x153   :  { %3964 = vmatprep.subr.bf16.mxu0 %v9063_v40  ;;  %4303 = vmatprep.subr.bf16.mxu1 %v9065_v45  ;;  %v9121_v40 = vcombine.high %v855_v35, %v859_v36  ;;  %v867_v45 = vld [vmem:[%s13810_s3 + $0xb38] sm:$0xff]  ;;  %v10412_v33 = vld [vmem:[%s13811_s1 + $0x10] ss:$24 sps:$4 sm:$0xff]  }
 0x154   :  { %v9129_v50 = vcombine.high %v863_v44, %v867_v45  ;;  %v93_v34 = vld [vmem:[%s13813_s2 + $0x88] sm:$0xff] }
 0x155   :  { %3896 = vmatmul.mubr.bf16.gmra.mrb[40].mxu0 %v10400_v55  ;;  %4235 = vmatmul.mubr.bf16.gmra.mrb[40].mxu1 %v10400_v55  ;;  %v9126_v55 = vcombine.low %v862_v41, %v866_v42 }
 0x156   :  { %3965 = vmatpush1.bf16.msra.mxu0 %v9062_v47  ;;  %4304 = vmatpush1.bf16.msra.mxu1 %v9064_v48  ;;  %v9120_v47 = vcombine.low %v855_v35, %v859_v36  ;;  %v9127_v48 = vcombine.high %v862_v41, %v866_v42  ;;  %v97_v35 = vld [vmem:[%s13813_s2 + $0xa8] sm:$0xff]  ;;  %v9210_v36 = vcombine.low %v84_v23, %v88_v24  ;;  %v100_v41 = vld [vmem:[%s13813_s2 + $0xc0] sm:$0xff] }
 0x157   :  { %3966 = vmatprep.subr.bf16.mxu0 %v9071_v49  ;;  %4305 = vmatprep.subr.bf16.mxu1 %v9073_v51  ;;  %v10407_v49 = vld [vmem:[%s13811_s1 + $0x12c] ss:$24 sps:$4 sm:$0xff]   ;;  %v870_v51 = vld [vmem:[%s13810_s3 + $0xb50] sm:$0xff] }
 0x158   :  { %3905 = vmatprep.mubr.bf16.mxu0 %v10401_v62  ;;  %4244 = vmatprep.mubr.bf16.mxu1 %v10401_v62  ;;  %v879_v62 = vld [vmem:[%s13810_s3 + $0xb98] sm:$0xff]  ;;  %v9134_v0 = vcombine.low %v870_v51, %v874_v52  ;;  %v104_v42 = vld [vmem:[%s13813_s2 + $0xe0] sm:$0xff] }
 0x15a   :  { %3967 = vmatpush1.bf16.msra.mxu0 %v9070_v56  ;;  %4306 = vmatpush1.bf16.msra.mxu1 %v9072_v57  ;;  %v9128_v56 = vcombine.low %v863_v44, %v867_v45  ;;  %v9135_v57 = vcombine.high %v870_v51, %v874_v52  ;;  %v105_v44 = vld [vmem:[%s13813_s2 + $0xe8] sm:$0xff]  ;;  %v10414_v51 = vld [vmem:[%s13811_s1 + $0x40] ss:$24 sps:$4 sm:$0xff]  }
 0x15b   :  { %3968 = vmatprep.subr.bf16.mxu0 %v9079_v58  ;;  %4307 = vmatprep.subr.bf16.mxu1 %v9081_v63  ;;  %v9137_v58 = vcombine.high %v871_v53, %v875_v54  ;;  %v883_v63 = vld [vmem:[%s13810_s3 + $0xbb8] sm:$0xff]  ;;  %v109_v52 = vld [vmem:[%s13813_s2 + $0x108] sm:$0xff] }
 0x15c   :  { %v9145_v4 = vcombine.high %v879_v62, %v883_v63 }
 0x15d   :  { %3906 = vmatmul.mubr.bf16.gmra.mrb[44].mxu0 %v10402_v9  ;;  %4245 = vmatmul.mubr.bf16.gmra.mrb[44].mxu1 %v10402_v9  ;;  %v9142_v9 = vcombine.low %v878_v59, %v882_v60 }
 0x15e   :  { %3969 = vmatpush1.bf16.msra.mxu0 %v9078_v1  ;;  %4308 = vmatpush1.bf16.msra.mxu1 %v9080_v2  ;;  %v9136_v1 = vcombine.low %v871_v53, %v875_v54  ;;  %v9143_v2 = vcombine.high %v878_v59, %v882_v60  ;;  %v113_v53 = vld [vmem:[%s13813_s2 + $0x128] sm:$0xff]  ;;  %v9226_v54 = vcombine.low %v100_v41, %v104_v42  ;;  %v116_v59 = vld [vmem:[%s13813_s2 + $0x140] sm:$0xff] }
 0x15f   :  { %3970 = vmatprep.subr.bf16.mxu0 %v9087_v3  ;;  %4309 = vmatprep.subr.bf16.mxu1 %v9089_v5  ;;  %v10409_v3 = vld [vmem:[%s13811_s1 + $0x15c] ss:$24 sps:$4 sm:$0xff]   ;;  %v120_v60 = vld [vmem:[%s13813_s2 + $0x160] sm:$0xff] }
 0x160   :  { %3915 = vmatprep.mubr.bf16.mxu0 %v10403_v13  ;;  %4254 = vmatprep.mubr.bf16.mxu1 %v10403_v13  ;;  %v886_v5 = vld [vmem:[%s13810_s3 + $0xbd0] sm:$0xff]  ;;  %v76_v13 = vld [vmem:[%s13813_s2] sm:$0xff] }
 0x161   :  { %v9150_v18 = vcombine.low %v886_v5, %v890_v6 }
 0x162   :  { %3971 = vmatpush1.bf16.msra.mxu0 %v9086_v10  ;;  %4310 = vmatpush1.bf16.msra.mxu1 %v9088_v11  ;;  %v9144_v10 = vcombine.low %v879_v62, %v883_v63  ;;  %v9151_v11 = vcombine.high %v886_v5, %v890_v6  ;;  %v121_v62 = vld [vmem:[%s13813_s2 + $0x168] sm:$0xff] }
 0x163   :  { %3972 = vmatprep.subr.bf16.mxu0 %v9095_v12  ;;  %4311 = vmatprep.subr.bf16.mxu1 %v9097_v14  ;;  %v9153_v12 = vcombine.high %v887_v7, %v891_v8  ;;  %v80_v14 = vld [vmem:[%s13813_s2 + $0x20] sm:$0xff]  ;;  %v10416_v5 = vld [vmem:[%s13811_s1 + $0x70] ss:$24 sps:$4 sm:$0xff]  }
 0x164   :  { %v9202_v27 = vcombine.low %v76_v13, %v80_v14  ;;  %v125_v6 = vld [vmem:[%s13813_s2 + $0x188] sm:$0xff] }
 0x165   :  { %3916 = vmatmul.mubr.bf16.gmra.mrb[48].mxu0 %v10404_v25  ;;  %4255 = vmatmul.mubr.bf16.gmra.mrb[48].mxu1 %v10404_v25  ;;  %v85_v25 = vld [vmem:[%s13813_s2 + $0x48] sm:$0xff] }
 0x166   :  { %3973 = vmatpush1.bf16.msra.mxu0 %v9094_v19  ;;  %4312 = vmatpush1.bf16.msra.mxu1 %v9096_v20  ;;  %v9152_v19 = vcombine.low %v887_v7, %v891_v8  ;;  %v9203_v20 = vcombine.high %v76_v13, %v80_v14  ;;  %v129_v7 = vld [vmem:[%s13813_s2 + $0x1a8] sm:$0xff]  ;;  %v9242_v8 = vcombine.low %v116_v59, %v120_v60  ;;  %v132_v13 = vld [vmem:[%s13813_s2 + $0x1c0] sm:$0xff] }
 0x167   :  { %3974 = vmatprep.subr.bf16.mxu0 %v9103_v21  ;;  %4313 = vmatprep.subr.bf16.mxu1 %v9105_v22  ;;  %v10411_v21 = vld [vmem:[%s13811_s1 + $0x14] ss:$24 sps:$4 sm:$0xff]   ;;  %v9205_v22 = vcombine.high %v77_v16, %v81_v17  ;;  %v136_v14 = vld [vmem:[%s13813_s2 + $0x1e0] sm:$0xff] }
 0x168   :  { %3925 = vmatprep.mubr.bf16.mxu0 %v10405_v31  ;;  %4264 = vmatprep.mubr.bf16.mxu1 %v10405_v31  ;;  %v92_v31 = vld [vmem:[%s13813_s2 + $0x80] sm:$0xff] }
 0x16a   :  { %3975 = vmatpush1.bf16.msra.mxu0 %v9102_v28  ;;  %4314 = vmatpush1.bf16.msra.mxu1 %v9104_v29  ;;  %v9204_v28 = vcombine.low %v77_v16, %v81_v17  ;;  %v9211_v29 = vcombine.high %v84_v23, %v88_v24  ;;  %v137_v16 = vld [vmem:[%s13813_s2 + $0x1e8] sm:$0xff]  ;;  %v10418_v23 = vld [vmem:[%s13811_s1 + $0xa0] ss:$24 sps:$4 sm:$0xff]  }
 0x16b   :  { %3976 = vmatprep.subr.bf16.mxu0 %v9111_v30  ;;  %4315 = vmatprep.subr.bf16.mxu1 %v9113_v32  ;;  %v9213_v30 = vcombine.high %v85_v25, %v89_v26  ;;  %v96_v32 = vld [vmem:[%s13813_s2 + $0xa0] sm:$0xff]  ;;  %v141_v24 = vld [vmem:[%s13813_s2 + $0x208] sm:$0xff] }
 0x16c   :  { %v9218_v45 = vcombine.low %v92_v31, %v96_v32 }
 0x16d   :  { %3926 = vmatmul.mubr.bf16.gmra.mrb[52].mxu0 %v10406_v43  ;;  %4265 = vmatmul.mubr.bf16.gmra.mrb[52].mxu1 %v10406_v43  ;;  %v101_v43 = vld [vmem:[%s13813_s2 + $0xc8] sm:$0xff] }
 0x16e   :  { %3977 = vmatpush1.bf16.msra.mxu0 %v9110_v37  ;;  %4316 = vmatpush1.bf16.msra.mxu1 %v9112_v38  ;;  %v9212_v37 = vcombine.low %v85_v25, %v89_v26  ;;  %v9219_v38 = vcombine.high %v92_v31, %v96_v32  ;;  %v145_v25 = vld [vmem:[%s13813_s2 + $0x228] sm:$0xff]  ;;  %v9258_v26 = vcombine.low %v132_v13, %v136_v14  ;;  %v148_v31 = vld [vmem:[%s13813_s2 + $0x240] sm:$0xff] }
 0x16f   :  { %3978 = vmatprep.subr.bf16.mxu0 %v9119_v39  ;;  %4317 = vmatprep.subr.bf16.mxu1 %v9121_v40  ;;  %v10413_v39 = vld [vmem:[%s13811_s1 + $0x44] ss:$24 sps:$4 sm:$0xff]   ;;  %v9221_v40 = vcombine.high %v93_v34, %v97_v35 }
 0x170   :  { %3935 = vmatprep.mubr.bf16.mxu0 %v10407_v49  ;;  %4274 = vmatprep.mubr.bf16.mxu1 %v10407_v49  ;;  %v108_v49 = vld [vmem:[%s13813_s2 + $0x100] sm:$0xff] }
 0x171   :  { %v152_v32 = vld [vmem:[%s13813_s2 + $0x260] sm:$0xff] }
 0x172   :  { %3979 = vmatpush1.bf16.msra.mxu0 %v9118_v46  ;;  %4318 = vmatpush1.bf16.msra.mxu1 %v9120_v47  ;;  %v9220_v46 = vcombine.low %v93_v34, %v97_v35  ;;  %v9227_v47 = vcombine.high %v100_v41, %v104_v42  ;;  %v153_v34 = vld [vmem:[%s13813_s2 + $0x268] sm:$0xff] }
 0x173   :  { %3980 = vmatprep.subr.bf16.mxu0 %v9127_v48  ;;  %4319 = vmatprep.subr.bf16.mxu1 %v9129_v50  ;;  %v9229_v48 = vcombine.high %v101_v43, %v105_v44  ;;  %v112_v50 = vld [vmem:[%s13813_s2 + $0x120] sm:$0xff]  ;;  %v10420_v41 = vld [vmem:[%s13811_s1 + $0xd0] ss:$24 sps:$4 sm:$0xff]  }
 0x174   :  { %v9234_v63 = vcombine.low %v108_v49, %v112_v50  ;;  %v157_v42 = vld [vmem:[%s13813_s2 + $0x288] sm:$0xff] }
 0x175   :  { %3936 = vmatmul.mubr.bf16.gmra.mrb[56].mxu0 %v10408_v61  ;;  %4275 = vmatmul.mubr.bf16.gmra.mrb[56].mxu1 %v10408_v61  ;;  %v117_v61 = vld [vmem:[%s13813_s2 + $0x148] sm:$0xff] }
 0x176   :  { %3981 = vmatpush1.bf16.msra.mxu0 %v9126_v55  ;;  %4320 = vmatpush1.bf16.msra.mxu1 %v9128_v56  ;;  %v9228_v55 = vcombine.low %v101_v43, %v105_v44  ;;  %v9235_v56 = vcombine.high %v108_v49, %v112_v50  ;;  %v161_v43 = vld [vmem:[%s13813_s2 + $0x2a8] sm:$0xff]  ;;  %v9274_v44 = vcombine.low %v148_v31, %v152_v32  ;;  %v164_v49 = vld [vmem:[%s13813_s2 + $0x2c0] sm:$0xff] }
 0x177   :  { %3982 = vmatprep.subr.bf16.mxu0 %v9135_v57  ;;  %4321 = vmatprep.subr.bf16.mxu1 %v9137_v58  ;;  %v10415_v57 = vld [vmem:[%s13811_s1 + $0x74] ss:$24 sps:$4 sm:$0xff]   ;;  %v9237_v58 = vcombine.high %v109_v52, %v113_v53  ;;  %v168_v50 = vld [vmem:[%s13813_s2 + $0x2e0] sm:$0xff] }
 0x178   :  { %3945 = vmatprep.mubr.bf16.mxu0 %v10409_v3  ;;  %4284 = vmatprep.mubr.bf16.mxu1 %v10409_v3  ;;  %v124_v3 = vld [vmem:[%s13813_s2 + $0x180] sm:$0xff] }
 0x17a   :  { %3983 = vmatpush1.bf16.msra.mxu0 %v9134_v0  ;;  %4322 = vmatpush1.bf16.msra.mxu1 %v9136_v1  ;;  %v9236_v0 = vcombine.low %v109_v52, %v113_v53  ;;  %v9243_v1 = vcombine.high %v116_v59, %v120_v60  ;;  %v169_v52 = vld [vmem:[%s13813_s2 + $0x2e8] sm:$0xff]  ;;  %v10422_v59 = vld [vmem:[%s13811_s1 + $0x100] ss:$24 sps:$4 sm:$0xff]  }
 0x17b   :  { %3984 = vmatprep.subr.bf16.mxu0 %v9143_v2  ;;  %4323 = vmatprep.subr.bf16.mxu1 %v9145_v4  ;;  %v9245_v2 = vcombine.high %v117_v61, %v121_v62  ;;  %v128_v4 = vld [vmem:[%s13813_s2 + $0x1a0] sm:$0xff]  ;;  %v173_v60 = vld [vmem:[%s13813_s2 + $0x308] sm:$0xff] }
 0x17c   :  { %v9250_v17 = vcombine.low %v124_v3, %v128_v4 }
 0x17d   :  { %3946 = vmatmul.mubr.bf16.gmra.mrb[60].mxu0 %v10410_v15  ;;  %4285 = vmatmul.mubr.bf16.gmra.mrb[60].mxu1 %v10410_v15  ;;  %v133_v15 = vld [vmem:[%s13813_s2 + $0x1c8] sm:$0xff] }
 0x17e   :  { %3985 = vmatpush1.bf16.msra.mxu0 %v9142_v9  ;;  %4324 = vmatpush1.bf16.msra.mxu1 %v9144_v10  ;;  %v9244_v9 = vcombine.low %v117_v61, %v121_v62  ;;  %v9251_v10 = vcombine.high %v124_v3, %v128_v4  ;;  %v177_v61 = vld [vmem:[%s13813_s2 + $0x328] sm:$0xff]  ;;  %v9290_v62 = vcombine.low %v164_v49, %v168_v50  ;;  %v180_v3 = vld [vmem:[%s13813_s2 + $0x340] sm:$0xff] }
 0x17f   :  { %3986 = vmatprep.subr.bf16.mxu0 %v9151_v11  ;;  %4325 = vmatprep.subr.bf16.mxu1 %v9153_v12  ;;  %v10417_v11 = vld [vmem:[%s13811_s1 + $0xa4] ss:$24 sps:$4 sm:$0xff]   ;;  %v9253_v12 = vcombine.high %v125_v6, %v129_v7 }
 0x180   :  { %3988 = vmatprep.mubr.bf16.mxu0 %v10411_v21  ;;  %4327 = vmatprep.mubr.bf16.mxu1 %v10411_v21  ;;  %v140_v21 = vld [vmem:[%s13813_s2 + $0x200] sm:$0xff] }
 0x181   :  { %v184_v4 = vld [vmem:[%s13813_s2 + $0x360] sm:$0xff] }
 0x182   :  { %3987 = vmatpush1.bf16.msra.mxu0 %v9150_v18  ;;  %4326 = vmatpush1.bf16.msra.mxu1 %v9152_v19  ;;  %v9252_v18 = vcombine.low %v125_v6, %v129_v7  ;;  %v9259_v19 = vcombine.high %v132_v13, %v136_v14  ;;  %v185_v6 = vld [vmem:[%s13813_s2 + $0x368] sm:$0xff] }
 0x183   :  { %6568 = vmatprep.subr.bf16.mxu0 %v9203_v20  ;;  %6907 = vmatprep.subr.bf16.mxu1 %v9205_v22  ;;  %v9261_v20 = vcombine.high %v133_v15, %v137_v16  ;;  %v144_v22 = vld [vmem:[%s13813_s2 + $0x220] sm:$0xff]  ;;  %v10424_v13 = vld [vmem:[%s13811_s1 + $0x130] ss:$24 sps:$4 sm:$0xff]  }
 0x184   :  { %v9266_v35 = vcombine.low %v140_v21, %v144_v22  ;;  %v189_v14 = vld [vmem:[%s13813_s2 + $0x388] sm:$0xff] }
 0x185   :  { %3989 = vmatmul.mubr.bf16.vlgmr.msra.gmra.mrb[32].mxu0 %v10412_v33  ;;  %4328 = vmatmul.mubr.bf16.vlgmr.msra.gmra.mrb[32].mxu1 %v10412_v33  ;;  %v149_v33 = vld [vmem:[%s13813_s2 + $0x248] sm:$0xff] }
 0x186   :  { %6569 = vmatpush1.bf16.msra.mxu0 %v9202_v27  ;;  %6908 = vmatpush1.bf16.msra.mxu1 %v9204_v28  ;;  %v9260_v27 = vcombine.low %v133_v15, %v137_v16  ;;  %v9267_v28 = vcombine.high %v140_v21, %v144_v22  ;;  %v193_v15 = vld [vmem:[%s13813_s2 + $0x3a8] sm:$0xff]  ;;  %v9306_v16 = vcombine.low %v180_v3, %v184_v4  ;;  %v196_v21 = vld [vmem:[%s13813_s2 + $0x3c0] sm:$0xff] }
 0x187   :  { %6570 = vmatprep.subr.bf16.mxu0 %v9211_v29  ;;  %6909 = vmatprep.subr.bf16.mxu1 %v9213_v30  ;;  %v10419_v29 = vld [vmem:[%s13811_s1 + $0xd4] ss:$24 sps:$4 sm:$0xff]   ;;  %v9269_v30 = vcombine.high %v141_v24, %v145_v25  ;;  %v200_v22 = vld [vmem:[%s13813_s2 + $0x3e0] sm:$0xff] }
 0x188   :  { %3998 = vmatprep.mubr.bf16.mxu0 %v10413_v39  ;;  %4337 = vmatprep.mubr.bf16.mxu1 %v10413_v39  ;;  %v156_v39 = vld [vmem:[%s13813_s2 + $0x280] sm:$0xff] }
 0x18a   :  { %6571 = vmatpush1.bf16.msra.mxu0 %v9210_v36  ;;  %6910 = vmatpush1.bf16.msra.mxu1 %v9212_v37  ;;  %v9268_v36 = vcombine.low %v141_v24, %v145_v25  ;;  %v9275_v37 = vcombine.high %v148_v31, %v152_v32  ;;  %v201_v24 = vld [vmem:[%s13813_s2 + $0x3e8] sm:$0xff]  ;;  %v208_v31 = vld [vmem:[%s13813_s2 + $0x420] sm:$0xff] }
 0x18b   :  { %6572 = vmatprep.subr.bf16.mxu0 %v9219_v38  ;;  %6911 = vmatprep.subr.bf16.mxu1 %v9221_v40  ;;  %v9277_v38 = vcombine.high %v149_v33, %v153_v34  ;;  %v160_v40 = vld [vmem:[%s13813_s2 + $0x2a0] sm:$0xff] }
 0x18c   :  { %v9282_v53 = vcombine.low %v156_v39, %v160_v40  ;;  %v10426_v32 = vld [vmem:[%s13811_s1 + $0x160] ss:$24 sps:$4 sm:$0xff]  }
 0x18d   :  { %3999 = vmatmul.mubr.bf16.gmra.mrb[36].mxu0 %v10414_v51  ;;  %4338 = vmatmul.mubr.bf16.gmra.mrb[36].mxu1 %v10414_v51  ;;  %v165_v51 = vld [vmem:[%s13813_s2 + $0x2c8] sm:$0xff] }
 0x18e   :  { %6573 = vmatpush1.bf16.msra.mxu0 %v9218_v45  ;;  %6912 = vmatpush1.bf16.msra.mxu1 %v9220_v46  ;;  %v9276_v45 = vcombine.low %v149_v33, %v153_v34  ;;  %v9283_v46 = vcombine.high %v156_v39, %v160_v40  ;;  %v205_v33 = vld [vmem:[%s13813_s2 + $0x408] sm:$0xff]  ;;  %v212_v39 = vld [vmem:[%s13813_s2 + $0x440] sm:$0xff] }
 0x18f   :  { %6574 = vmatprep.subr.bf16.mxu0 %v9227_v47  ;;  %6913 = vmatprep.subr.bf16.mxu1 %v9229_v48  ;;  %v10421_v47 = vld [vmem:[%s13811_s1 + $0x104] ss:$24 sps:$4 sm:$0xff]   ;;  %v9285_v48 = vcombine.high %v157_v42, %v161_v43  ;;  %v209_v34 = vld [vmem:[%s13813_s2 + $0x428] sm:$0xff] }
 0x190   :  { %4008 = vmatprep.mubr.bf16.mxu0 %v10415_v57  ;;  %4347 = vmatprep.mubr.bf16.mxu1 %v10415_v57  ;;  %v172_v57 = vld [vmem:[%s13813_s2 + $0x300] sm:$0xff] }
 0x191   :  { %v216_v40 = vld [vmem:[%s13813_s2 + $0x460] sm:$0xff] }
 0x192   :  { %6575 = vmatpush1.bf16.msra.mxu0 %v9226_v54  ;;  %6914 = vmatpush1.bf16.msra.mxu1 %v9228_v55  ;;  %v9284_v54 = vcombine.low %v157_v42, %v161_v43  ;;  %v9291_v55 = vcombine.high %v164_v49, %v168_v50  ;;  %v213_v42 = vld [vmem:[%s13813_s2 + $0x448] sm:$0xff]  ;;  %v220_v49 = vld [vmem:[%s13813_s2 + $0x480] sm:$0xff] }
 0x193   :  { %6576 = vmatprep.subr.bf16.mxu0 %v9235_v56  ;;  %6915 = vmatprep.subr.bf16.mxu1 %v9237_v58  ;;  %v9293_v56 = vcombine.high %v165_v51, %v169_v52  ;;  %v176_v58 = vld [vmem:[%s13813_s2 + $0x320] sm:$0xff]  ;;  %v217_v43 = vld [vmem:[%s13813_s2 + $0x468] sm:$0xff] }
 0x194   :  { %v9298_v7 = vcombine.low %v172_v57, %v176_v58  ;;  %v224_v50 = vld [vmem:[%s13813_s2 + $0x4a0] sm:$0xff] }
 0x195   :  { %4009 = vmatmul.mubr.bf16.gmra.mrb[40].mxu0 %v10416_v5  ;;  %4348 = vmatmul.mubr.bf16.gmra.mrb[40].mxu1 %v10416_v5  ;;  %v181_v5 = vld [vmem:[%s13813_s2 + $0x348] sm:$0xff] }
 0x196   :  { %6577 = vmatpush1.bf16.msra.mxu0 %v9234_v63  ;;  %6916 = vmatpush1.bf16.msra.mxu1 %v9236_v0  ;;  %v9292_v63 = vcombine.low %v165_v51, %v169_v52  ;;  %v9299_v0 = vcombine.high %v172_v57, %v176_v58  ;;  %v221_v51 = vld [vmem:[%s13813_s2 + $0x488] sm:$0xff]  ;;  %v228_v57 = vld [vmem:[%s13813_s2 + $0x4c0] sm:$0xff] }
 0x197   :  { %6578 = vmatprep.subr.bf16.mxu0 %v9243_v1  ;;  %6917 = vmatprep.subr.bf16.mxu1 %v9245_v2  ;;  %v10423_v1 = vld [vmem:[%s13811_s1 + $0x134] ss:$24 sps:$4 sm:$0xff]   ;;  %v9301_v2 = vcombine.high %v173_v60, %v177_v61  ;;  %v232_v58 = vld [vmem:[%s13813_s2 + $0x4e0] sm:$0xff] }
 0x198   :  { %4018 = vmatprep.mubr.bf16.mxu0 %v10417_v11  ;;  %4357 = vmatprep.mubr.bf16.mxu1 %v10417_v11  ;;  %v188_v11 = vld [vmem:[%s13813_s2 + $0x380] sm:$0xff]  ;;  %v225_v52 = vld [vmem:[%s13813_s2 + $0x4a8] sm:$0xff] }
 0x19a   :  { %6579 = vmatpush1.bf16.msra.mxu0 %v9242_v8  ;;  %6918 = vmatpush1.bf16.msra.mxu1 %v9244_v9  ;;  %v9300_v8 = vcombine.low %v173_v60, %v177_v61  ;;  %v9307_v9 = vcombine.high %v180_v3, %v184_v4  ;;  %v229_v60 = vld [vmem:[%s13813_s2 + $0x4c8] sm:$0xff]  ;;  %v236_v3 = vld [vmem:[%s13813_s2 + $0x500] sm:$0xff] }
 0x19b   :  { %6580 = vmatprep.subr.bf16.mxu0 %v9251_v10  ;;  %6919 = vmatprep.subr.bf16.mxu1 %v9253_v12  ;;  %v9309_v10 = vcombine.high %v181_v5, %v185_v6  ;;  %v192_v12 = vld [vmem:[%s13813_s2 + $0x3a0] sm:$0xff]  ;;  %v233_v61 = vld [vmem:[%s13813_s2 + $0x4e8] sm:$0xff] }
 0x19c   :  { %v9314_v25 = vcombine.low %v188_v11, %v192_v12  ;;  %v240_v4 = vld [vmem:[%s13813_s2 + $0x520] sm:$0xff] }
 0x19d   :  { %4019 = vmatmul.mubr.bf16.gmra.mrb[44].mxu0 %v10418_v23  ;;  %4358 = vmatmul.mubr.bf16.gmra.mrb[44].mxu1 %v10418_v23  ;;  %v197_v23 = vld [vmem:[%s13813_s2 + $0x3c8] sm:$0xff] }
 0x19e   :  { %6581 = vmatpush1.bf16.msra.mxu0 %v9250_v17  ;;  %6920 = vmatpush1.bf16.msra.mxu1 %v9252_v18  ;;  %v9308_v17 = vcombine.low %v181_v5, %v185_v6  ;;  %v9315_v18 = vcombine.high %v188_v11, %v192_v12  ;;  %v237_v5 = vld [vmem:[%s13813_s2 + $0x508] sm:$0xff]  ;;  %v244_v11 = vld [vmem:[%s13813_s2 + $0x540] sm:$0xff] }
 0x19f   :  { %6582 = vmatprep.subr.bf16.mxu0 %v9259_v19  ;;  %6921 = vmatprep.subr.bf16.mxu1 %v9261_v20  ;;  %v10425_v19 = vld [vmem:[%s13811_s1 + $0x164] ss:$24 sps:$4 sm:$0xff]   ;;  %v9317_v20 = vcombine.high %v189_v14, %v193_v15  ;;  %v241_v6 = vld [vmem:[%s13813_s2 + $0x528] sm:$0xff] }
 0x1a0   :  { %4028 = vmatprep.mubr.bf16.mxu0 %v10419_v29  ;;  %4367 = vmatprep.mubr.bf16.mxu1 %v10419_v29  ;;  %v10305_v29 = vld [vmem:[%s13812_s0 + $0x4] ss:$24 sps:$4 sm:$0xff]  }
 0x1a1   :  { %v248_v12 = vld [vmem:[%s13813_s2 + $0x560] sm:$0xff] }
 0x1a2   :  { %6583 = vmatpush1.bf16.msra.mxu0 %v9258_v26  ;;  %6922 = vmatpush1.bf16.msra.mxu1 %v9260_v27  ;;  %v9316_v26 = vcombine.low %v189_v14, %v193_v15  ;;  %v9323_v27 = vcombine.high %v196_v21, %v200_v22  ;;  %v245_v14 = vld [vmem:[%s13813_s2 + $0x548] sm:$0xff] }
 0x1a3   :  { %6584 = vmatprep.subr.bf16.mxu0 %v9267_v28  ;;  %6923 = vmatprep.subr.bf16.mxu1 %v9269_v30  ;;  %v9325_v28 = vcombine.high %v197_v23, %v201_v24  ;;  %v204_v30 = vld [vmem:[%s13813_s2 + $0x400] sm:$0xff]  ;;  %v249_v15 = vld [vmem:[%s13813_s2 + $0x568] sm:$0xff] }
 0x1a5   :  { %4029 = vmatmul.mubr.bf16.gmra.mrb[48].mxu0 %v10420_v41  ;;  %4368 = vmatmul.mubr.bf16.gmra.mrb[48].mxu1 %v10420_v41  ;;  %v10303_v41 = vld [vmem:[%s13812_s0] ss:$24 sps:$4 sm:$0xff]  }
 0x1a6   :  { %6585 = vmatpush1.bf16.msra.mxu0 %v9266_v35  ;;  %6924 = vmatpush1.bf16.msra.mxu1 %v9268_v36  ;;  %v9322_v35 = vcombine.low %v196_v21, %v200_v22  ;;  %v9324_v36 = vcombine.low %v197_v23, %v201_v24  ;;  %v252_v21 = vld [vmem:[%s13813_s2 + $0x580] sm:$0xff]  ;;  %v253_v23 = vld [vmem:[%s13813_s2 + $0x588] sm:$0xff] }
 0x1a7   :  { %6586 = vmatprep.subr.bf16.mxu0 %v9275_v37  ;;  %6925 = vmatprep.subr.bf16.mxu1 %v9277_v38  ;;  %v9331_v37 = vcombine.high %v204_v30, %v208_v31  ;;  %v9333_v38 = vcombine.high %v205_v33, %v209_v34  ;;  %v256_v22 = vld [vmem:[%s13813_s2 + $0x5a0] sm:$0xff]  ;;  %v257_v24 = vld [vmem:[%s13813_s2 + $0x5a8] sm:$0xff] }
 0x1a8   :  { %4038 = vmatprep.mubr.bf16.mxu0 %v10421_v47  ;;  %4377 = vmatprep.mubr.bf16.mxu1 %v10421_v47  ;;  %v9341_v47 = vcombine.high %v213_v42, %v217_v43 }
 0x1aa   :  { %6587 = vmatpush1.bf16.msra.mxu0 %v9274_v44  ;;  %6926 = vmatpush1.bf16.msra.mxu1 %v9276_v45  ;;  %v9330_v44 = vcombine.low %v204_v30, %v208_v31  ;;  %v9332_v45 = vcombine.low %v205_v33, %v209_v34  ;;  %v264_v30 = vld [vmem:[%s13813_s2 + $0x5e0] sm:$0xff]  ;;  %v10314_v31 = vld [vmem:[%s13812_s0 + $0x90] ss:$24 sps:$4 sm:$0xff]   ;;  %v9378_v34 = vcombine.low %v252_v21, %v256_v22 }
 0x1ab   :  { %6588 = vmatprep.subr.bf16.mxu0 %v9283_v46  ;;  %6927 = vmatprep.subr.bf16.mxu1 %v9285_v48  ;;  %v9339_v46 = vcombine.high %v212_v39, %v216_v40  ;;  %v10306_v48 = vld [vmem:[%s13812_s0 + $0x34] ss:$24 sps:$4 sm:$0xff]  }
 0x1ac   :  { %v265_v33 = vld [vmem:[%s13813_s2 + $0x5e8] sm:$0xff] }
 0x1ad   :  { %4039 = vmatmul.mubr.bf16.gmra.mrb[52].mxu0 %v10422_v59  ;;  %4378 = vmatmul.mubr.bf16.gmra.mrb[52].mxu1 %v10422_v59  ;;  %v10308_v59 = vld [vmem:[%s13812_s0 + $0x30] ss:$24 sps:$4 sm:$0xff]  }
 0x1ae   :  { %6589 = vmatpush1.bf16.msra.mxu0 %v9282_v53  ;;  %6928 = vmatpush1.bf16.msra.mxu1 %v9284_v54  ;;  %v9338_v53 = vcombine.low %v212_v39, %v216_v40  ;;  %v9340_v54 = vcombine.low %v213_v42, %v217_v43  ;;  %v268_v39 = vld [vmem:[%s13813_s2 + $0x600] sm:$0xff]  ;;  %v273_v42 = vld [vmem:[%s13813_s2 + $0x628] sm:$0xff] }
 0x1af   :  { %6590 = vmatprep.subr.bf16.mxu0 %v9291_v55  ;;  %6929 = vmatprep.subr.bf16.mxu1 %v9293_v56  ;;  %v9347_v55 = vcombine.high %v220_v49, %v224_v50  ;;  %v9349_v56 = vcombine.high %v221_v51, %v225_v52  ;;  %v272_v40 = vld [vmem:[%s13813_s2 + $0x620] sm:$0xff] }
 0x1b0   :  { %4048 = vmatprep.mubr.bf16.mxu0 %v10423_v1  ;;  %4387 = vmatprep.mubr.bf16.mxu1 %v10423_v1  ;;  %v9357_v1 = vcombine.high %v229_v60, %v233_v61 }
 0x1b2   :  { %6591 = vmatpush1.bf16.msra.mxu0 %v9290_v62  ;;  %6930 = vmatpush1.bf16.msra.mxu1 %v9292_v63  ;;  %v9346_v62 = vcombine.low %v220_v49, %v224_v50  ;;  %v9348_v63 = vcombine.low %v221_v51, %v225_v52  ;;  %v10317_v49 = vld [vmem:[%s13812_s0 + $0xc0] ss:$24 sps:$4 sm:$0xff]   ;;  %v277_v50 = vld [vmem:[%s13813_s2 + $0x648] sm:$0xff]  ;;  %v9394_v52 = vcombine.low %v268_v39, %v272_v40 }
 0x1b3   :  { %6592 = vmatprep.subr.bf16.mxu0 %v9299_v0  ;;  %6931 = vmatprep.subr.bf16.mxu1 %v9301_v2  ;;  %v9355_v0 = vcombine.high %v228_v57, %v232_v58  ;;  %v10309_v2 = vld [vmem:[%s13812_s0 + $0x64] ss:$24 sps:$4 sm:$0xff]   ;;  %v281_v51 = vld [vmem:[%s13813_s2 + $0x668] sm:$0xff] }
 0x1b5   :  { %4049 = vmatmul.mubr.bf16.gmra.mrb[56].mxu0 %v10424_v13  ;;  %4388 = vmatmul.mubr.bf16.gmra.mrb[56].mxu1 %v10424_v13  ;;  %v10311_v13 = vld [vmem:[%s13812_s0 + $0x60] ss:$24 sps:$4 sm:$0xff]  }
 0x1b6   :  { %6593 = vmatpush1.bf16.msra.mxu0 %v9298_v7  ;;  %6932 = vmatpush1.bf16.msra.mxu1 %v9300_v8  ;;  %v9354_v7 = vcombine.low %v228_v57, %v232_v58  ;;  %v9356_v8 = vcombine.low %v229_v60, %v233_v61  ;;  %v284_v57 = vld [vmem:[%s13813_s2 + $0x680] sm:$0xff]  ;;  %v289_v60 = vld [vmem:[%s13813_s2 + $0x6a8] sm:$0xff] }
 0x1b7   :  { %6594 = vmatprep.subr.bf16.mxu0 %v9307_v9  ;;  %6933 = vmatprep.subr.bf16.mxu1 %v9309_v10  ;;  %v9363_v9 = vcombine.high %v236_v3, %v240_v4  ;;  %v9365_v10 = vcombine.high %v237_v5, %v241_v6  ;;  %v288_v58 = vld [vmem:[%s13813_s2 + $0x6a0] sm:$0xff] }
 0x1b8   :  { %4058 = vmatprep.mubr.bf16.mxu0 %v10425_v19  ;;  %4397 = vmatprep.mubr.bf16.mxu1 %v10425_v19  ;;  %v9373_v19 = vcombine.high %v245_v14, %v249_v15 }
 0x1ba   :  { %6595 = vmatpush1.bf16.msra.mxu0 %v9306_v16  ;;  %6934 = vmatpush1.bf16.msra.mxu1 %v9308_v17  ;;  %v9362_v16 = vcombine.low %v236_v3, %v240_v4  ;;  %v9364_v17 = vcombine.low %v237_v5, %v241_v6  ;;  %v10320_v3 = vld [vmem:[%s13812_s0 + $0xf0] ss:$24 sps:$4 sm:$0xff]   ;;  %v9410_v6 = vcombine.low %v284_v57, %v288_v58 }
 0x1bb   :  { %6596 = vmatprep.subr.bf16.mxu0 %v9315_v18  ;;  %6935 = vmatprep.subr.bf16.mxu1 %v9317_v20  ;;  %v9371_v18 = vcombine.high %v244_v11, %v248_v12  ;;  %v10312_v20 = vld [vmem:[%s13812_s0 + $0x94] ss:$24 sps:$4 sm:$0xff]  }
 0x1bc   :  { %v293_v4 = vld [vmem:[%s13813_s2 + $0x6c8] sm:$0xff] }
 0x1bd   :  { %4059 = vmatmul.mubr.bf16.gmra.mrb[60].mxu0 %v10426_v32  ;;  %4398 = vmatmul.mubr.bf16.gmra.mrb[60].mxu1 %v10426_v32  ;;  %v261_v32 = vld [vmem:[%s13813_s2 + $0x5c8] sm:$0xff] }
 0x1be   :  { %6597 = vmatpush1.bf16.msra.mxu0 %v9314_v25  ;;  %6936 = vmatpush1.bf16.msra.mxu1 %v9316_v26  ;;  %v9370_v25 = vcombine.low %v244_v11, %v248_v12  ;;  %v9372_v26 = vcombine.low %v245_v14, %v249_v15  ;;  %v297_v5 = vld [vmem:[%s13813_s2 + $0x6e8] sm:$0xff]  ;;  %v300_v11 = vld [vmem:[%s13813_s2 + $0x700] sm:$0xff] }
 0x1bf   :  { %6598 = vmatprep.subr.bf16.mxu0 %v9323_v27  ;;  %6937 = vmatprep.subr.bf16.mxu1 %v9325_v28  ;;  %v9379_v27 = vcombine.high %v252_v21, %v256_v22  ;;  %v9381_v28 = vcombine.high %v253_v23, %v257_v24  ;;  %v304_v12 = vld [vmem:[%s13813_s2 + $0x720] sm:$0xff]  ;;  %v305_v14 = vld [vmem:[%s13813_s2 + $0x728] sm:$0xff] }
 0x1c0   :  { %6600 = vmatprep.mubr.bf16.mxu0 %v10305_v29  ;;  %6939 = vmatprep.mubr.bf16.mxu1 %v10305_v29  ;;  %v260_v29 = vld [vmem:[%s13813_s2 + $0x5c0] sm:$0xff]  ;;  %v309_v22 = vld [vmem:[%s13813_s2 + $0x748] sm:$0xff] }
 0x1c1   :  { %v9386_v43 = vcombine.low %v260_v29, %v264_v30  ;;  %v10323_v21 = vld [vmem:[%s13812_s0 + $0x120] ss:$24 sps:$4 sm:$0xff]  }
 0x1c2   :  { %6599 = vmatpush1.bf16.msra.mxu0 %v9322_v35  ;;  %6938 = vmatpush1.bf16.msra.mxu1 %v9324_v36  ;;  %v9380_v35 = vcombine.low %v253_v23, %v257_v24  ;;  %v9387_v36 = vcombine.high %v260_v29, %v264_v30  ;;  %v313_v23 = vld [vmem:[%s13813_s2 + $0x768] sm:$0xff]  ;;  %v9426_v24 = vcombine.low %v300_v11, %v304_v12  ;;  %v316_v29 = vld [vmem:[%s13813_s2 + $0x780] sm:$0xff] }
 0x1c3   :  { %6681 = vmatprep.subr.bf16.mxu0 %v9331_v37  ;;  %7020 = vmatprep.subr.bf16.mxu1 %v9333_v38  ;;  %v9389_v37 = vcombine.high %v261_v32, %v265_v33  ;;  %v10315_v38 = vld [vmem:[%s13812_s0 + $0xc4] ss:$24 sps:$4 sm:$0xff]  }
 0x1c4   :  { %v320_v30 = vld [vmem:[%s13813_s2 + $0x7a0] sm:$0xff] }
 0x1c5   :  { %6601 = vmatmul.mubr.bf16.vlgmr.msra.gmra.mrb[0].mxu0 %v10303_v41  ;;  %6940 = vmatmul.mubr.bf16.vlgmr.msra.gmra.mrb[0].mxu1 %v10303_v41  ;;  %v269_v41 = vld [vmem:[%s13813_s2 + $0x608] sm:$0xff] }
 0x1c6   :  { %6682 = vmatpush1.bf16.msra.mxu0 %v9330_v44  ;;  %7021 = vmatpush1.bf16.msra.mxu1 %v9332_v45  ;;  %v9388_v44 = vcombine.low %v261_v32, %v265_v33  ;;  %v9395_v45 = vcombine.high %v268_v39, %v272_v40  ;;  %v321_v32 = vld [vmem:[%s13813_s2 + $0x7a8] sm:$0xff] }
 0x1c7   :  { %6683 = vmatprep.subr.bf16.mxu0 %v9339_v46  ;;  %7022 = vmatprep.subr.bf16.mxu1 %v9341_v47  ;;  %v9397_v46 = vcombine.high %v269_v41, %v273_v42  ;;  %v276_v47 = vld [vmem:[%s13813_s2 + $0x640] sm:$0xff]  ;;  %v10326_v39 = vld [vmem:[%s13812_s0 + $0x150] ss:$24 sps:$4 sm:$0xff]  }
 0x1c8   :  { %6610 = vmatprep.mubr.bf16.mxu0 %v10306_v48  ;;  %6949 = vmatprep.mubr.bf16.mxu1 %v10306_v48  ;;  %v280_v48 = vld [vmem:[%s13813_s2 + $0x660] sm:$0xff]  ;;  %v325_v40 = vld [vmem:[%s13813_s2 + $0x7c8] sm:$0xff] }
 0x1c9   :  { %v9402_v61 = vcombine.low %v276_v47, %v280_v48 }
 0x1ca   :  { %6684 = vmatpush1.bf16.msra.mxu0 %v9338_v53  ;;  %7023 = vmatpush1.bf16.msra.mxu1 %v9340_v54  ;;  %v9396_v53 = vcombine.low %v269_v41, %v273_v42  ;;  %v9403_v54 = vcombine.high %v276_v47, %v280_v48  ;;  %v329_v41 = vld [vmem:[%s13813_s2 + $0x7e8] sm:$0xff]  ;;  %v9442_v42 = vcombine.low %v316_v29, %v320_v30  ;;  %v332_v47 = vld [vmem:[%s13813_s2 + $0x800] sm:$0xff] }
 0x1cb   :  { %6685 = vmatprep.subr.bf16.mxu0 %v9347_v55  ;;  %7024 = vmatprep.subr.bf16.mxu1 %v9349_v56  ;;  %v9405_v55 = vcombine.high %v277_v50, %v281_v51  ;;  %v10318_v56 = vld [vmem:[%s13812_s0 + $0xf4] ss:$24 sps:$4 sm:$0xff]   ;;  %v336_v48 = vld [vmem:[%s13813_s2 + $0x820] sm:$0xff] }
 0x1cd   :  { %6611 = vmatmul.mubr.bf16.gmra.mrb[4].mxu0 %v10308_v59  ;;  %6950 = vmatmul.mubr.bf16.gmra.mrb[4].mxu1 %v10308_v59  ;;  %v285_v59 = vld [vmem:[%s13813_s2 + $0x688] sm:$0xff] }
 0x1ce   :  { %6686 = vmatpush1.bf16.msra.mxu0 %v9346_v62  ;;  %7025 = vmatpush1.bf16.msra.mxu1 %v9348_v63  ;;  %v9404_v62 = vcombine.low %v277_v50, %v281_v51  ;;  %v9411_v63 = vcombine.high %v284_v57, %v288_v58  ;;  %v337_v50 = vld [vmem:[%s13813_s2 + $0x828] sm:$0xff] }
 0x1cf   :  { %6687 = vmatprep.subr.bf16.mxu0 %v9355_v0  ;;  %7026 = vmatprep.subr.bf16.mxu1 %v9357_v1  ;;  %v9413_v0 = vcombine.high %v285_v59, %v289_v60  ;;  %v292_v1 = vld [vmem:[%s13813_s2 + $0x6c0] sm:$0xff]  ;;  %v341_v58 = vld [vmem:[%s13813_s2 + $0x848] sm:$0xff] }
 0x1d0   :  { %6620 = vmatprep.mubr.bf16.mxu0 %v10309_v2  ;;  %6959 = vmatprep.mubr.bf16.mxu1 %v10309_v2  ;;  %v296_v2 = vld [vmem:[%s13813_s2 + $0x6e0] sm:$0xff] }
 0x1d1   :  { %v9418_v15 = vcombine.low %v292_v1, %v296_v2  ;;  %v10327_v57 = vld [vmem:[%s13812_s0 + $0x8] ss:$24 sps:$4 sm:$0xff]  }
 0x1d2   :  { %6688 = vmatpush1.bf16.msra.mxu0 %v9354_v7  ;;  %7027 = vmatpush1.bf16.msra.mxu1 %v9356_v8  ;;  %v9412_v7 = vcombine.low %v285_v59, %v289_v60  ;;  %v9419_v8 = vcombine.high %v292_v1, %v296_v2  ;;  %v345_v59 = vld [vmem:[%s13813_s2 + $0x868] sm:$0xff]  ;;  %v9458_v60 = vcombine.low %v332_v47, %v336_v48  ;;  %v348_v1 = vld [vmem:[%s13813_s2 + $0x880] sm:$0xff] }
 0x1d3   :  { %6689 = vmatprep.subr.bf16.mxu0 %v9363_v9  ;;  %7028 = vmatprep.subr.bf16.mxu1 %v9365_v10  ;;  %v9421_v9 = vcombine.high %v293_v4, %v297_v5  ;;  %v10321_v10 = vld [vmem:[%s13812_s0 + $0x124] ss:$24 sps:$4 sm:$0xff]  }
 0x1d4   :  { %v352_v2 = vld [vmem:[%s13813_s2 + $0x8a0] sm:$0xff] }
 0x1d5   :  { %6621 = vmatmul.mubr.bf16.gmra.mrb[8].mxu0 %v10311_v13  ;;  %6960 = vmatmul.mubr.bf16.gmra.mrb[8].mxu1 %v10311_v13  ;;  %v301_v13 = vld [vmem:[%s13813_s2 + $0x708] sm:$0xff] }
 0x1d6   :  { %6690 = vmatpush1.bf16.msra.mxu0 %v9362_v16  ;;  %7029 = vmatpush1.bf16.msra.mxu1 %v9364_v17  ;;  %v9420_v16 = vcombine.low %v293_v4, %v297_v5  ;;  %v9427_v17 = vcombine.high %v300_v11, %v304_v12  ;;  %v353_v4 = vld [vmem:[%s13813_s2 + $0x8a8] sm:$0xff]  ;;  %v10332_v11 = vld [vmem:[%s13812_s0 + $0x38] ss:$24 sps:$4 sm:$0xff]  }
 0x1d7   :  { %6691 = vmatprep.subr.bf16.mxu0 %v9371_v18  ;;  %7030 = vmatprep.subr.bf16.mxu1 %v9373_v19  ;;  %v9429_v18 = vcombine.high %v301_v13, %v305_v14  ;;  %v308_v19 = vld [vmem:[%s13813_s2 + $0x740] sm:$0xff]  ;;  %v357_v12 = vld [vmem:[%s13813_s2 + $0x8c8] sm:$0xff] }
 0x1d8   :  { %6630 = vmatprep.mubr.bf16.mxu0 %v10312_v20  ;;  %6969 = vmatprep.mubr.bf16.mxu1 %v10312_v20  ;;  %v312_v20 = vld [vmem:[%s13813_s2 + $0x760] sm:$0xff] }
 0x1d9   :  { %v9434_v33 = vcombine.low %v308_v19, %v312_v20 }
 0x1da   :  { %6692 = vmatpush1.bf16.msra.mxu0 %v9370_v25  ;;  %7031 = vmatpush1.bf16.msra.mxu1 %v9372_v26  ;;  %v9428_v25 = vcombine.low %v301_v13, %v305_v14  ;;  %v9435_v26 = vcombine.high %v308_v19, %v312_v20  ;;  %v361_v13 = vld [vmem:[%s13813_s2 + $0x8e8] sm:$0xff]  ;;  %v9474_v14 = vcombine.low %v348_v1, %v352_v2  ;;  %v364_v19 = vld [vmem:[%s13813_s2 + $0x900] sm:$0xff] }
 0x1db   :  { %6693 = vmatprep.subr.bf16.mxu0 %v9379_v27  ;;  %7032 = vmatprep.subr.bf16.mxu1 %v9381_v28  ;;  %v9437_v27 = vcombine.high %v309_v22, %v313_v23  ;;  %v10324_v28 = vld [vmem:[%s13812_s0 + $0x154] ss:$24 sps:$4 sm:$0xff]   ;;  %v368_v20 = vld [vmem:[%s13813_s2 + $0x920] sm:$0xff] }
 0x1dd   :  { %6631 = vmatmul.mubr.bf16.gmra.mrb[12].mxu0 %v10314_v31  ;;  %6970 = vmatmul.mubr.bf16.gmra.mrb[12].mxu1 %v10314_v31  ;;  %v317_v31 = vld [vmem:[%s13813_s2 + $0x788] sm:$0xff] }
 0x1de   :  { %6694 = vmatpush1.bf16.msra.mxu0 %v9378_v34  ;;  %7033 = vmatpush1.bf16.msra.mxu1 %v9380_v35  ;;  %v9436_v34 = vcombine.low %v309_v22, %v313_v23  ;;  %v9443_v35 = vcombine.high %v316_v29, %v320_v30  ;;  %v369_v22 = vld [vmem:[%s13813_s2 + $0x928] sm:$0xff] }
 0x1df   :  { %6695 = vmatprep.subr.bf16.mxu0 %v9387_v36  ;;  %7034 = vmatprep.subr.bf16.mxu1 %v9389_v37  ;;  %v9445_v36 = vcombine.high %v317_v31, %v321_v32  ;;  %v324_v37 = vld [vmem:[%s13813_s2 + $0x7c0] sm:$0xff]  ;;  %v373_v30 = vld [vmem:[%s13813_s2 + $0x948] sm:$0xff] }
 0x1e0   :  { %6640 = vmatprep.mubr.bf16.mxu0 %v10315_v38  ;;  %6979 = vmatprep.mubr.bf16.mxu1 %v10315_v38  ;;  %v328_v38 = vld [vmem:[%s13813_s2 + $0x7e0] sm:$0xff] }
 0x1e1   :  { %v9450_v51 = vcombine.low %v324_v37, %v328_v38  ;;  %v10335_v29 = vld [vmem:[%s13812_s0 + $0x68] ss:$24 sps:$4 sm:$0xff]  }
 0x1e2   :  { %6696 = vmatpush1.bf16.msra.mxu0 %v9386_v43  ;;  %7035 = vmatpush1.bf16.msra.mxu1 %v9388_v44  ;;  %v9444_v43 = vcombine.low %v317_v31, %v321_v32  ;;  %v9451_v44 = vcombine.high %v324_v37, %v328_v38  ;;  %v377_v31 = vld [vmem:[%s13813_s2 + $0x968] sm:$0xff]  ;;  %v9490_v32 = vcombine.low %v364_v19, %v368_v20  ;;  %v380_v37 = vld [vmem:[%s13813_s2 + $0x980] sm:$0xff] }
 0x1e3   :  { %6697 = vmatprep.subr.bf16.mxu0 %v9395_v45  ;;  %7036 = vmatprep.subr.bf16.mxu1 %v9397_v46  ;;  %v9453_v45 = vcombine.high %v325_v40, %v329_v41  ;;  %v10329_v46 = vld [vmem:[%s13812_s0 + $0xc] ss:$24 sps:$4 sm:$0xff]  }
 0x1e4   :  { %v384_v38 = vld [vmem:[%s13813_s2 + $0x9a0] sm:$0xff] }
 0x1e5   :  { %6641 = vmatmul.mubr.bf16.gmra.mrb[16].mxu0 %v10317_v49  ;;  %6980 = vmatmul.mubr.bf16.gmra.mrb[16].mxu1 %v10317_v49  ;;  %v333_v49 = vld [vmem:[%s13813_s2 + $0x808] sm:$0xff] }
 0x1e6   :  { %6698 = vmatpush1.bf16.msra.mxu0 %v9394_v52  ;;  %7037 = vmatpush1.bf16.msra.mxu1 %v9396_v53  ;;  %v9452_v52 = vcombine.low %v325_v40, %v329_v41  ;;  %v9459_v53 = vcombine.high %v332_v47, %v336_v48  ;;  %v385_v40 = vld [vmem:[%s13813_s2 + $0x9a8] sm:$0xff]  ;;  %v10338_v47 = vld [vmem:[%s13812_s0 + $0x98] ss:$24 sps:$4 sm:$0xff]  }
 0x1e7   :  { %6699 = vmatprep.subr.bf16.mxu0 %v9403_v54  ;;  %7038 = vmatprep.subr.bf16.mxu1 %v9405_v55  ;;  %v9461_v54 = vcombine.high %v333_v49, %v337_v50  ;;  %v340_v55 = vld [vmem:[%s13813_s2 + $0x840] sm:$0xff]  ;;  %v389_v48 = vld [vmem:[%s13813_s2 + $0x9c8] sm:$0xff] }
 0x1e8   :  { %6650 = vmatprep.mubr.bf16.mxu0 %v10318_v56  ;;  %6989 = vmatprep.mubr.bf16.mxu1 %v10318_v56  ;;  %v344_v56 = vld [vmem:[%s13813_s2 + $0x860] sm:$0xff] }
 0x1e9   :  { %v9466_v5 = vcombine.low %v340_v55, %v344_v56 }
 0x1ea   :  { %6700 = vmatpush1.bf16.msra.mxu0 %v9402_v61  ;;  %7039 = vmatpush1.bf16.msra.mxu1 %v9404_v62  ;;  %v9460_v61 = vcombine.low %v333_v49, %v337_v50  ;;  %v9467_v62 = vcombine.high %v340_v55, %v344_v56  ;;  %v393_v49 = vld [vmem:[%s13813_s2 + $0x9e8] sm:$0xff]  ;;  %v9506_v50 = vcombine.low %v380_v37, %v384_v38  ;;  %v396_v55 = vld [vmem:[%s13813_s2 + $0xa00] sm:$0xff] }
 0x1eb   :  { %6701 = vmatprep.subr.bf16.mxu0 %v9411_v63  ;;  %7040 = vmatprep.subr.bf16.mxu1 %v9413_v0  ;;  %v9469_v63 = vcombine.high %v341_v58, %v345_v59  ;;  %v10330_v0 = vld [vmem:[%s13812_s0 + $0x3c] ss:$24 sps:$4 sm:$0xff]   ;;  %v400_v56 = vld [vmem:[%s13813_s2 + $0xa20] sm:$0xff] }
 0x1ed   :  { %6651 = vmatmul.mubr.bf16.gmra.mrb[20].mxu0 %v10320_v3  ;;  %6990 = vmatmul.mubr.bf16.gmra.mrb[20].mxu1 %v10320_v3  ;;  %v349_v3 = vld [vmem:[%s13813_s2 + $0x888] sm:$0xff] }
 0x1ee   :  { %6702 = vmatpush1.bf16.msra.mxu0 %v9410_v6  ;;  %7041 = vmatpush1.bf16.msra.mxu1 %v9412_v7  ;;  %v9468_v6 = vcombine.low %v341_v58, %v345_v59  ;;  %v9475_v7 = vcombine.high %v348_v1, %v352_v2  ;;  %v401_v58 = vld [vmem:[%s13813_s2 + $0xa28] sm:$0xff] }
 0x1ef   :  { %6703 = vmatprep.subr.bf16.mxu0 %v9419_v8  ;;  %7042 = vmatprep.subr.bf16.mxu1 %v9421_v9  ;;  %v9477_v8 = vcombine.high %v349_v3, %v353_v4  ;;  %v356_v9 = vld [vmem:[%s13813_s2 + $0x8c0] sm:$0xff]  ;;  %v405_v2 = vld [vmem:[%s13813_s2 + $0xa48] sm:$0xff] }
 0x1f0   :  { %6660 = vmatprep.mubr.bf16.mxu0 %v10321_v10  ;;  %6999 = vmatprep.mubr.bf16.mxu1 %v10321_v10  ;;  %v360_v10 = vld [vmem:[%s13813_s2 + $0x8e0] sm:$0xff] }
 0x1f1   :  { %v9482_v23 = vcombine.low %v356_v9, %v360_v10  ;;  %v10341_v1 = vld [vmem:[%s13812_s0 + $0xc8] ss:$24 sps:$4 sm:$0xff]  }
 0x1f2   :  { %6704 = vmatpush1.bf16.msra.mxu0 %v9418_v15  ;;  %7043 = vmatpush1.bf16.msra.mxu1 %v9420_v16  ;;  %v9476_v15 = vcombine.low %v349_v3, %v353_v4  ;;  %v9483_v16 = vcombine.high %v356_v9, %v360_v10  ;;  %v409_v3 = vld [vmem:[%s13813_s2 + $0xa68] sm:$0xff]  ;;  %v9522_v4 = vcombine.low %v396_v55, %v400_v56  ;;  %v412_v9 = vld [vmem:[%s13813_s2 + $0xa80] sm:$0xff] }
 0x1f3   :  { %6705 = vmatprep.subr.bf16.mxu0 %v9427_v17  ;;  %7044 = vmatprep.subr.bf16.mxu1 %v9429_v18  ;;  %v9485_v17 = vcombine.high %v357_v12, %v361_v13  ;;  %v10333_v18 = vld [vmem:[%s13812_s0 + $0x6c] ss:$24 sps:$4 sm:$0xff]  }
 0x1f4   :  { %v416_v10 = vld [vmem:[%s13813_s2 + $0xaa0] sm:$0xff] }
 0x1f5   :  { %6661 = vmatmul.mubr.bf16.gmra.mrb[24].mxu0 %v10323_v21  ;;  %7000 = vmatmul.mubr.bf16.gmra.mrb[24].mxu1 %v10323_v21  ;;  %v365_v21 = vld [vmem:[%s13813_s2 + $0x908] sm:$0xff] }
 0x1f6   :  { %6706 = vmatpush1.bf16.msra.mxu0 %v9426_v24  ;;  %7045 = vmatpush1.bf16.msra.mxu1 %v9428_v25  ;;  %v9484_v24 = vcombine.low %v357_v12, %v361_v13  ;;  %v9491_v25 = vcombine.high %v364_v19, %v368_v20  ;;  %v417_v12 = vld [vmem:[%s13813_s2 + $0xaa8] sm:$0xff]  ;;  %v10344_v19 = vld [vmem:[%s13812_s0 + $0xf8] ss:$24 sps:$4 sm:$0xff]  }
 0x1f7   :  { %6707 = vmatprep.subr.bf16.mxu0 %v9435_v26  ;;  %7046 = vmatprep.subr.bf16.mxu1 %v9437_v27  ;;  %v9493_v26 = vcombine.high %v365_v21, %v369_v22  ;;  %v372_v27 = vld [vmem:[%s13813_s2 + $0x940] sm:$0xff]  ;;  %v421_v20 = vld [vmem:[%s13813_s2 + $0xac8] sm:$0xff] }
 0x1f8   :  { %6670 = vmatprep.mubr.bf16.mxu0 %v10324_v28  ;;  %7009 = vmatprep.mubr.bf16.mxu1 %v10324_v28  ;;  %v376_v28 = vld [vmem:[%s13813_s2 + $0x960] sm:$0xff] }
 0x1f9   :  { %v9498_v41 = vcombine.low %v372_v27, %v376_v28 }
 0x1fa   :  { %6708 = vmatpush1.bf16.msra.mxu0 %v9434_v33  ;;  %7047 = vmatpush1.bf16.msra.mxu1 %v9436_v34  ;;  %v9492_v33 = vcombine.low %v365_v21, %v369_v22  ;;  %v9499_v34 = vcombine.high %v372_v27, %v376_v28  ;;  %v425_v21 = vld [vmem:[%s13813_s2 + $0xae8] sm:$0xff]  ;;  %v9538_v22 = vcombine.low %v412_v9, %v416_v10  ;;  %v428_v27 = vld [vmem:[%s13813_s2 + $0xb00] sm:$0xff] }
 0x1fb   :  { %6709 = vmatprep.subr.bf16.mxu0 %v9443_v35  ;;  %7048 = vmatprep.subr.bf16.mxu1 %v9445_v36  ;;  %v9501_v35 = vcombine.high %v373_v30, %v377_v31  ;;  %v10336_v36 = vld [vmem:[%s13812_s0 + $0x9c] ss:$24 sps:$4 sm:$0xff]   ;;  %v432_v28 = vld [vmem:[%s13813_s2 + $0xb20] sm:$0xff] }
 0x1fd   :  { %6671 = vmatmul.mubr.bf16.gmra.mrb[28].mxu0 %v10326_v39  ;;  %7010 = vmatmul.mubr.bf16.gmra.mrb[28].mxu1 %v10326_v39  ;;  %v381_v39 = vld [vmem:[%s13813_s2 + $0x988] sm:$0xff] }
 0x1fe   :  { %6710 = vmatpush1.bf16.msra.mxu0 %v9442_v42  ;;  %7049 = vmatpush1.bf16.msra.mxu1 %v9444_v43  ;;  %v9500_v42 = vcombine.low %v373_v30, %v377_v31  ;;  %v9507_v43 = vcombine.high %v380_v37, %v384_v38  ;;  %v433_v30 = vld [vmem:[%s13813_s2 + $0xb28] sm:$0xff] }
 0x1ff   :  { %6711 = vmatprep.subr.bf16.mxu0 %v9451_v44  ;;  %7050 = vmatprep.subr.bf16.mxu1 %v9453_v45  ;;  %v9509_v44 = vcombine.high %v381_v39, %v385_v40  ;;  %v388_v45 = vld [vmem:[%s13813_s2 + $0x9c0] sm:$0xff]  ;;  %v437_v38 = vld [vmem:[%s13813_s2 + $0xb48] sm:$0xff] }
 0x200   :  { %6713 = vmatprep.mubr.bf16.mxu0 %v10329_v46  ;;  %7052 = vmatprep.mubr.bf16.mxu1 %v10329_v46  ;;  %v392_v46 = vld [vmem:[%s13813_s2 + $0x9e0] sm:$0xff] }
 0x201   :  { %v9514_v59 = vcombine.low %v388_v45, %v392_v46  ;;  %v10347_v37 = vld [vmem:[%s13812_s0 + $0x128] ss:$24 sps:$4 sm:$0xff]  }
 0x202   :  { %6712 = vmatpush1.bf16.msra.mxu0 %v9450_v51  ;;  %7051 = vmatpush1.bf16.msra.mxu1 %v9452_v52  ;;  %v9508_v51 = vcombine.low %v381_v39, %v385_v40  ;;  %v9515_v52 = vcombine.high %v388_v45, %v392_v46  ;;  %v441_v39 = vld [vmem:[%s13813_s2 + $0xb68] sm:$0xff]  ;;  %v9554_v40 = vcombine.low %v428_v27, %v432_v28  ;;  %v444_v45 = vld [vmem:[%s13813_s2 + $0xb80] sm:$0xff] }
 0x203   :  { %6794 = vmatprep.subr.bf16.mxu0 %v9459_v53  ;;  %7133 = vmatprep.subr.bf16.mxu1 %v9461_v54  ;;  %v9517_v53 = vcombine.high %v389_v48, %v393_v49  ;;  %v10339_v54 = vld [vmem:[%s13812_s0 + $0xcc] ss:$24 sps:$4 sm:$0xff]  }
 0x204   :  { %v448_v46 = vld [vmem:[%s13813_s2 + $0xba0] sm:$0xff] }
 0x205   :  { %6714 = vmatmul.mubr.bf16.vlgmr.msra.gmra.mrb[0].mxu0 %v10327_v57  ;;  %7053 = vmatmul.mubr.bf16.vlgmr.msra.gmra.mrb[0].mxu1 %v10327_v57  ;;  %v397_v57 = vld [vmem:[%s13813_s2 + $0xa08] sm:$0xff] }
 0x206   :  { %6795 = vmatpush1.bf16.msra.mxu0 %v9458_v60  ;;  %7134 = vmatpush1.bf16.msra.mxu1 %v9460_v61  ;;  %v9516_v60 = vcombine.low %v389_v48, %v393_v49  ;;  %v9523_v61 = vcombine.high %v396_v55, %v400_v56  ;;  %v449_v48 = vld [vmem:[%s13813_s2 + $0xba8] sm:$0xff]  ;;  %v10350_v55 = vld [vmem:[%s13812_s0 + $0x158] ss:$24 sps:$4 sm:$0xff]  }
 0x207   :  { %6796 = vmatprep.subr.bf16.mxu0 %v9467_v62  ;;  %7135 = vmatprep.subr.bf16.mxu1 %v9469_v63  ;;  %v9525_v62 = vcombine.high %v397_v57, %v401_v58  ;;  %v404_v63 = vld [vmem:[%s13813_s2 + $0xa40] sm:$0xff]  ;;  %v453_v56 = vld [vmem:[%s13813_s2 + $0xbc8] sm:$0xff] }
 0x208   :  { %6723 = vmatprep.mubr.bf16.mxu0 %v10330_v0  ;;  %7062 = vmatprep.mubr.bf16.mxu1 %v10330_v0  ;;  %v408_v0 = vld [vmem:[%s13813_s2 + $0xa60] sm:$0xff] }
 0x209   :  { %v9530_v13 = vcombine.low %v404_v63, %v408_v0 }
 0x20a   :  { %6797 = vmatpush1.bf16.msra.mxu0 %v9466_v5  ;;  %7136 = vmatpush1.bf16.msra.mxu1 %v9468_v6  ;;  %v9524_v5 = vcombine.low %v397_v57, %v401_v58  ;;  %v9531_v6 = vcombine.high %v404_v63, %v408_v0  ;;  %v457_v57 = vld [vmem:[%s13813_s2 + $0xbe8] sm:$0xff]  ;;  %v9570_v58 = vcombine.low %v444_v45, %v448_v46  ;;  %v78_v63 = vld [vmem:[%s13813_s2 + $0x10] sm:$0xff] }
 0x20b   :  { %6798 = vmatprep.subr.bf16.mxu0 %v9475_v7  ;;  %7137 = vmatprep.subr.bf16.mxu1 %v9477_v8  ;;  %v9533_v7 = vcombine.high %v405_v2, %v409_v3  ;;  %v10342_v8 = vld [vmem:[%s13812_s0 + $0xfc] ss:$24 sps:$4 sm:$0xff]  }
 0x20c   :  { %v82_v0 = vld [vmem:[%s13813_s2 + $0x30] sm:$0xff] }
 0x20d   :  { %6724 = vmatmul.mubr.bf16.gmra.mrb[4].mxu0 %v10332_v11  ;;  %7063 = vmatmul.mubr.bf16.gmra.mrb[4].mxu1 %v10332_v11  ;;  %v413_v11 = vld [vmem:[%s13813_s2 + $0xa88] sm:$0xff] }
 0x20e   :  { %6799 = vmatpush1.bf16.msra.mxu0 %v9474_v14  ;;  %7138 = vmatpush1.bf16.msra.mxu1 %v9476_v15  ;;  %v9532_v14 = vcombine.low %v405_v2, %v409_v3  ;;  %v9539_v15 = vcombine.high %v412_v9, %v416_v10  ;;  %v83_v2 = vld [vmem:[%s13813_s2 + $0x38] sm:$0xff]  ;;  %v10351_v9 = vld [vmem:[%s13812_s0 + $0x10] ss:$24 sps:$4 sm:$0xff]  }
 0x20f   :  { %6800 = vmatprep.subr.bf16.mxu0 %v9483_v16  ;;  %7139 = vmatprep.subr.bf16.mxu1 %v9485_v17  ;;  %v9541_v16 = vcombine.high %v413_v11, %v417_v12  ;;  %v420_v17 = vld [vmem:[%s13813_s2 + $0xac0] sm:$0xff]  ;;  %v87_v10 = vld [vmem:[%s13813_s2 + $0x58] sm:$0xff] }
 0x210   :  { %6733 = vmatprep.mubr.bf16.mxu0 %v10333_v18  ;;  %7072 = vmatprep.mubr.bf16.mxu1 %v10333_v18  ;;  %v424_v18 = vld [vmem:[%s13813_s2 + $0xae0] sm:$0xff] }
 0x211   :  { %v9546_v31 = vcombine.low %v420_v17, %v424_v18 }
 0x212   :  { %6801 = vmatpush1.bf16.msra.mxu0 %v9482_v23  ;;  %7140 = vmatpush1.bf16.msra.mxu1 %v9484_v24  ;;  %v9540_v23 = vcombine.low %v413_v11, %v417_v12  ;;  %v9547_v24 = vcombine.high %v420_v17, %v424_v18  ;;  %v91_v11 = vld [vmem:[%s13813_s2 + $0x78] sm:$0xff]  ;;  %v9206_v12 = vcombine.low %v78_v63, %v82_v0  ;;  %v94_v17 = vld [vmem:[%s13813_s2 + $0x90] sm:$0xff] }
 0x213   :  { %6802 = vmatprep.subr.bf16.mxu0 %v9491_v25  ;;  %7141 = vmatprep.subr.bf16.mxu1 %v9493_v26  ;;  %v9549_v25 = vcombine.high %v421_v20, %v425_v21  ;;  %v10345_v26 = vld [vmem:[%s13812_s0 + $0x12c] ss:$24 sps:$4 sm:$0xff]   ;;  %v98_v18 = vld [vmem:[%s13813_s2 + $0xb0] sm:$0xff] }
 0x215   :  { %6734 = vmatmul.mubr.bf16.gmra.mrb[8].mxu0 %v10335_v29  ;;  %7073 = vmatmul.mubr.bf16.gmra.mrb[8].mxu1 %v10335_v29  ;;  %v429_v29 = vld [vmem:[%s13813_s2 + $0xb08] sm:$0xff] }
 0x216   :  { %6803 = vmatpush1.bf16.msra.mxu0 %v9490_v32  ;;  %7142 = vmatpush1.bf16.msra.mxu1 %v9492_v33  ;;  %v9548_v32 = vcombine.low %v421_v20, %v425_v21  ;;  %v9555_v33 = vcombine.high %v428_v27, %v432_v28  ;;  %v99_v20 = vld [vmem:[%s13813_s2 + $0xb8] sm:$0xff] }
 0x217   :  { %6804 = vmatprep.subr.bf16.mxu0 %v9499_v34  ;;  %7143 = vmatprep.subr.bf16.mxu1 %v9501_v35  ;;  %v9557_v34 = vcombine.high %v429_v29, %v433_v30  ;;  %v436_v35 = vld [vmem:[%s13813_s2 + $0xb40] sm:$0xff]  ;;  %v103_v28 = vld [vmem:[%s13813_s2 + $0xd8] sm:$0xff] }
 0x218   :  { %6743 = vmatprep.mubr.bf16.mxu0 %v10336_v36  ;;  %7082 = vmatprep.mubr.bf16.mxu1 %v10336_v36  ;;  %v440_v36 = vld [vmem:[%s13813_s2 + $0xb60] sm:$0xff] }
 0x219   :  { %v9562_v49 = vcombine.low %v436_v35, %v440_v36  ;;  %v10356_v27 = vld [vmem:[%s13812_s0 + $0x40] ss:$24 sps:$4 sm:$0xff]  }
 0x21a   :  { %6805 = vmatpush1.bf16.msra.mxu0 %v9498_v41  ;;  %7144 = vmatpush1.bf16.msra.mxu1 %v9500_v42  ;;  %v9556_v41 = vcombine.low %v429_v29, %v433_v30  ;;  %v9563_v42 = vcombine.high %v436_v35, %v440_v36  ;;  %v107_v29 = vld [vmem:[%s13813_s2 + $0xf8] sm:$0xff]  ;;  %v9222_v30 = vcombine.low %v94_v17, %v98_v18  ;;  %v110_v35 = vld [vmem:[%s13813_s2 + $0x110] sm:$0xff] }
 0x21b   :  { %6806 = vmatprep.subr.bf16.mxu0 %v9507_v43  ;;  %7145 = vmatprep.subr.bf16.mxu1 %v9509_v44  ;;  %v9565_v43 = vcombine.high %v437_v38, %v441_v39  ;;  %v10348_v44 = vld [vmem:[%s13812_s0 + $0x15c] ss:$24 sps:$4 sm:$0xff]  }
 0x21c   :  { %v114_v36 = vld [vmem:[%s13813_s2 + $0x130] sm:$0xff] }
 0x21d   :  { %6744 = vmatmul.mubr.bf16.gmra.mrb[12].mxu0 %v10338_v47  ;;  %7083 = vmatmul.mubr.bf16.gmra.mrb[12].mxu1 %v10338_v47  ;;  %v445_v47 = vld [vmem:[%s13813_s2 + $0xb88] sm:$0xff] }
 0x21e   :  { %6807 = vmatpush1.bf16.msra.mxu0 %v9506_v50  ;;  %7146 = vmatpush1.bf16.msra.mxu1 %v9508_v51  ;;  %v9564_v50 = vcombine.low %v437_v38, %v441_v39  ;;  %v9571_v51 = vcombine.high %v444_v45, %v448_v46  ;;  %v115_v38 = vld [vmem:[%s13813_s2 + $0x138] sm:$0xff]  ;;  %v10359_v45 = vld [vmem:[%s13812_s0 + $0x70] ss:$24 sps:$4 sm:$0xff]  }
 0x21f   :  { %6808 = vmatprep.subr.bf16.mxu0 %v9515_v52  ;;  %7147 = vmatprep.subr.bf16.mxu1 %v9517_v53  ;;  %v9573_v52 = vcombine.high %v445_v47, %v449_v48  ;;  %v452_v53 = vld [vmem:[%s13813_s2 + $0xbc0] sm:$0xff]  ;;  %v119_v46 = vld [vmem:[%s13813_s2 + $0x158] sm:$0xff] }
 0x220   :  { %6753 = vmatprep.mubr.bf16.mxu0 %v10339_v54  ;;  %7092 = vmatprep.mubr.bf16.mxu1 %v10339_v54  ;;  %v456_v54 = vld [vmem:[%s13813_s2 + $0xbe0] sm:$0xff] }
 0x221   :  { %v9578_v3 = vcombine.low %v452_v53, %v456_v54 }
 0x222   :  { %6809 = vmatpush1.bf16.msra.mxu0 %v9514_v59  ;;  %7148 = vmatpush1.bf16.msra.mxu1 %v9516_v60  ;;  %v9572_v59 = vcombine.low %v445_v47, %v449_v48  ;;  %v9579_v60 = vcombine.high %v452_v53, %v456_v54  ;;  %v123_v47 = vld [vmem:[%s13813_s2 + $0x178] sm:$0xff]  ;;  %v9238_v48 = vcombine.low %v110_v35, %v114_v36  ;;  %v126_v53 = vld [vmem:[%s13813_s2 + $0x190] sm:$0xff] }
 0x223   :  { %6810 = vmatprep.subr.bf16.mxu0 %v9523_v61  ;;  %7149 = vmatprep.subr.bf16.mxu1 %v9525_v62  ;;  %v9581_v61 = vcombine.high %v453_v56, %v457_v57  ;;  %v10353_v62 = vld [vmem:[%s13812_s0 + $0x14] ss:$24 sps:$4 sm:$0xff]  }
 0x224   :  { %v130_v54 = vld [vmem:[%s13813_s2 + $0x1b0] sm:$0xff] }
 0x225   :  { %6754 = vmatmul.mubr.bf16.gmra.mrb[16].mxu0 %v10341_v1  ;;  %7093 = vmatmul.mubr.bf16.gmra.mrb[16].mxu1 %v10341_v1  ;;  %v79_v1 = vld [vmem:[%s13813_s2 + $0x18] sm:$0xff] }
 0x226   :  { %6811 = vmatpush1.bf16.msra.mxu0 %v9522_v4  ;;  %7150 = vmatpush1.bf16.msra.mxu1 %v9524_v5  ;;  %v9580_v4 = vcombine.low %v453_v56, %v457_v57  ;;  %v9207_v5 = vcombine.high %v78_v63, %v82_v0  ;;  %v131_v56 = vld [vmem:[%s13813_s2 + $0x1b8] sm:$0xff] }
 0x227   :  { %6812 = vmatprep.subr.bf16.mxu0 %v9531_v6  ;;  %7151 = vmatprep.subr.bf16.mxu1 %v9533_v7  ;;  %v9209_v6 = vcombine.high %v79_v1, %v83_v2  ;;  %v86_v7 = vld [vmem:[%s13813_s2 + $0x50] sm:$0xff]  ;;  %v10362_v63 = vld [vmem:[%s13812_s0 + $0xa0] ss:$24 sps:$4 sm:$0xff]  }
 0x228   :  { %6763 = vmatprep.mubr.bf16.mxu0 %v10342_v8  ;;  %7102 = vmatprep.mubr.bf16.mxu1 %v10342_v8  ;;  %v90_v8 = vld [vmem:[%s13813_s2 + $0x70] sm:$0xff]  ;;  %v135_v0 = vld [vmem:[%s13813_s2 + $0x1d8] sm:$0xff] }
 0x229   :  { %v9214_v21 = vcombine.low %v86_v7, %v90_v8 }
 0x22a   :  { %6813 = vmatpush1.bf16.msra.mxu0 %v9530_v13  ;;  %7152 = vmatpush1.bf16.msra.mxu1 %v9532_v14  ;;  %v9208_v13 = vcombine.low %v79_v1, %v83_v2  ;;  %v9215_v14 = vcombine.high %v86_v7, %v90_v8  ;;  %v139_v1 = vld [vmem:[%s13813_s2 + $0x1f8] sm:$0xff]  ;;  %v9254_v2 = vcombine.low %v126_v53, %v130_v54  ;;  %v142_v7 = vld [vmem:[%s13813_s2 + $0x210] sm:$0xff] }
 0x22b   :  { %6814 = vmatprep.subr.bf16.mxu0 %v9539_v15  ;;  %7153 = vmatprep.subr.bf16.mxu1 %v9541_v16  ;;  %v9217_v15 = vcombine.high %v87_v10, %v91_v11  ;;  %v10354_v16 = vld [vmem:[%s13812_s0 + $0x44] ss:$24 sps:$4 sm:$0xff]   ;;  %v146_v8 = vld [vmem:[%s13813_s2 + $0x230] sm:$0xff] }
 0x22d   :  { %6764 = vmatmul.mubr.bf16.gmra.mrb[20].mxu0 %v10344_v19  ;;  %7103 = vmatmul.mubr.bf16.gmra.mrb[20].mxu1 %v10344_v19  ;;  %v95_v19 = vld [vmem:[%s13813_s2 + $0x98] sm:$0xff] }
 0x22e   :  { %6815 = vmatpush1.bf16.msra.mxu0 %v9538_v22  ;;  %7154 = vmatpush1.bf16.msra.mxu1 %v9540_v23  ;;  %v9216_v22 = vcombine.low %v87_v10, %v91_v11  ;;  %v9223_v23 = vcombine.high %v94_v17, %v98_v18  ;;  %v147_v10 = vld [vmem:[%s13813_s2 + $0x238] sm:$0xff]  ;;  %v10365_v17 = vld [vmem:[%s13812_s0 + $0xd0] ss:$24 sps:$4 sm:$0xff]  }
 0x22f   :  { %6816 = vmatprep.subr.bf16.mxu0 %v9547_v24  ;;  %7155 = vmatprep.subr.bf16.mxu1 %v9549_v25  ;;  %v9225_v24 = vcombine.high %v95_v19, %v99_v20  ;;  %v102_v25 = vld [vmem:[%s13813_s2 + $0xd0] sm:$0xff]  ;;  %v151_v18 = vld [vmem:[%s13813_s2 + $0x258] sm:$0xff] }
 0x230   :  { %6773 = vmatprep.mubr.bf16.mxu0 %v10345_v26  ;;  %7112 = vmatprep.mubr.bf16.mxu1 %v10345_v26  ;;  %v106_v26 = vld [vmem:[%s13813_s2 + $0xf0] sm:$0xff] }
 0x231   :  { %v9230_v39 = vcombine.low %v102_v25, %v106_v26 }
 0x232   :  { %6817 = vmatpush1.bf16.msra.mxu0 %v9546_v31  ;;  %7156 = vmatpush1.bf16.msra.mxu1 %v9548_v32  ;;  %v9224_v31 = vcombine.low %v95_v19, %v99_v20  ;;  %v9231_v32 = vcombine.high %v102_v25, %v106_v26  ;;  %v155_v19 = vld [vmem:[%s13813_s2 + $0x278] sm:$0xff]  ;;  %v9270_v20 = vcombine.low %v142_v7, %v146_v8  ;;  %v158_v25 = vld [vmem:[%s13813_s2 + $0x290] sm:$0xff] }
 0x233   :  { %6818 = vmatprep.subr.bf16.mxu0 %v9555_v33  ;;  %7157 = vmatprep.subr.bf16.mxu1 %v9557_v34  ;;  %v9233_v33 = vcombine.high %v103_v28, %v107_v29  ;;  %v10357_v34 = vld [vmem:[%s13812_s0 + $0x74] ss:$24 sps:$4 sm:$0xff]  }
 0x234   :  { %v162_v26 = vld [vmem:[%s13813_s2 + $0x2b0] sm:$0xff] }
 0x235   :  { %6774 = vmatmul.mubr.bf16.gmra.mrb[24].mxu0 %v10347_v37  ;;  %7113 = vmatmul.mubr.bf16.gmra.mrb[24].mxu1 %v10347_v37  ;;  %v111_v37 = vld [vmem:[%s13813_s2 + $0x118] sm:$0xff] }
 0x236   :  { %6819 = vmatpush1.bf16.msra.mxu0 %v9554_v40  ;;  %7158 = vmatpush1.bf16.msra.mxu1 %v9556_v41  ;;  %v9232_v40 = vcombine.low %v103_v28, %v107_v29  ;;  %v9239_v41 = vcombine.high %v110_v35, %v114_v36  ;;  %v163_v28 = vld [vmem:[%s13813_s2 + $0x2b8] sm:$0xff] }
 0x237   :  { %6820 = vmatprep.subr.bf16.mxu0 %v9563_v42  ;;  %7159 = vmatprep.subr.bf16.mxu1 %v9565_v43  ;;  %v9241_v42 = vcombine.high %v111_v37, %v115_v38  ;;  %v118_v43 = vld [vmem:[%s13813_s2 + $0x150] sm:$0xff]  ;;  %v10368_v35 = vld [vmem:[%s13812_s0 + $0x100] ss:$24 sps:$4 sm:$0xff]  }
 0x238   :  { %6783 = vmatprep.mubr.bf16.mxu0 %v10348_v44  ;;  %7122 = vmatprep.mubr.bf16.mxu1 %v10348_v44  ;;  %v122_v44 = vld [vmem:[%s13813_s2 + $0x170] sm:$0xff]  ;;  %v167_v36 = vld [vmem:[%s13813_s2 + $0x2d8] sm:$0xff] }
 0x239   :  { %v9246_v57 = vcombine.low %v118_v43, %v122_v44 }
 0x23a   :  { %6821 = vmatpush1.bf16.msra.mxu0 %v9562_v49  ;;  %7160 = vmatpush1.bf16.msra.mxu1 %v9564_v50  ;;  %v9240_v49 = vcombine.low %v111_v37, %v115_v38  ;;  %v9247_v50 = vcombine.high %v118_v43, %v122_v44  ;;  %v171_v37 = vld [vmem:[%s13813_s2 + $0x2f8] sm:$0xff]  ;;  %v9286_v38 = vcombine.low %v158_v25, %v162_v26  ;;  %v174_v43 = vld [vmem:[%s13813_s2 + $0x310] sm:$0xff] }
 0x23b   :  { %6822 = vmatprep.subr.bf16.mxu0 %v9571_v51  ;;  %7161 = vmatprep.subr.bf16.mxu1 %v9573_v52  ;;  %v9249_v51 = vcombine.high %v119_v46, %v123_v47  ;;  %v10360_v52 = vld [vmem:[%s13812_s0 + $0xa4] ss:$24 sps:$4 sm:$0xff]   ;;  %v178_v44 = vld [vmem:[%s13813_s2 + $0x330] sm:$0xff] }
 0x23d   :  { %6784 = vmatmul.mubr.bf16.gmra.mrb[28].mxu0 %v10350_v55  ;;  %7123 = vmatmul.mubr.bf16.gmra.mrb[28].mxu1 %v10350_v55  ;;  %v127_v55 = vld [vmem:[%s13813_s2 + $0x198] sm:$0xff] }
 0x23e   :  { %6823 = vmatpush1.bf16.msra.mxu0 %v9570_v58  ;;  %7162 = vmatpush1.bf16.msra.mxu1 %v9572_v59  ;;  %v9248_v58 = vcombine.low %v119_v46, %v123_v47  ;;  %v9255_v59 = vcombine.high %v126_v53, %v130_v54  ;;  %v179_v46 = vld [vmem:[%s13813_s2 + $0x338] sm:$0xff]  ;;  %v10371_v53 = vld [vmem:[%s13812_s0 + $0x130] ss:$24 sps:$4 sm:$0xff]  }
 0x23f   :  { %6824 = vmatprep.subr.bf16.mxu0 %v9579_v60  ;;  %7163 = vmatprep.subr.bf16.mxu1 %v9581_v61  ;;  %v9257_v60 = vcombine.high %v127_v55, %v131_v56  ;;  %v134_v61 = vld [vmem:[%s13813_s2 + $0x1d0] sm:$0xff]  ;;  %v183_v54 = vld [vmem:[%s13813_s2 + $0x358] sm:$0xff] }
 0x240   :  { %6826 = vmatprep.mubr.bf16.mxu0 %v10353_v62  ;;  %7165 = vmatprep.mubr.bf16.mxu1 %v10353_v62  ;;  %v138_v62 = vld [vmem:[%s13813_s2 + $0x1f0] sm:$0xff] }
 0x241   :  { %v9262_v11 = vcombine.low %v134_v61, %v138_v62 }
 0x242   :  { %6825 = vmatpush1.bf16.msra.mxu0 %v9578_v3  ;;  %7164 = vmatpush1.bf16.msra.mxu1 %v9580_v4  ;;  %v9256_v3 = vcombine.low %v127_v55, %v131_v56  ;;  %v9263_v4 = vcombine.high %v134_v61, %v138_v62  ;;  %v187_v55 = vld [vmem:[%s13813_s2 + $0x378] sm:$0xff]  ;;  %v9302_v56 = vcombine.low %v174_v43, %v178_v44  ;;  %v190_v61 = vld [vmem:[%s13813_s2 + $0x390] sm:$0xff] }
 0x243   :  { %7246 = vmatprep.subr.bf16.mxu0 %v9207_v5  ;;  %7585 = vmatprep.subr.bf16.mxu1 %v9209_v6  ;;  %v9265_v5 = vcombine.high %v135_v0, %v139_v1  ;;  %v10363_v6 = vld [vmem:[%s13812_s0 + $0xd4] ss:$24 sps:$4 sm:$0xff]  }
 0x244   :  { %v194_v62 = vld [vmem:[%s13813_s2 + $0x3b0] sm:$0xff] }
 0x245   :  { %6827 = vmatmul.mubr.bf16.vlgmr.msra.gmra.mrb[0].mxu0 %v10351_v9  ;;  %7166 = vmatmul.mubr.bf16.vlgmr.msra.gmra.mrb[0].mxu1 %v10351_v9  ;;  %v143_v9 = vld [vmem:[%s13813_s2 + $0x218] sm:$0xff] }
 0x246   :  { %7247 = vmatpush1.bf16.msra.mxu0 %v9206_v12  ;;  %7586 = vmatpush1.bf16.msra.mxu1 %v9208_v13  ;;  %v9264_v12 = vcombine.low %v135_v0, %v139_v1  ;;  %v9271_v13 = vcombine.high %v142_v7, %v146_v8  ;;  %v195_v0 = vld [vmem:[%s13813_s2 + $0x3b8] sm:$0xff] }
 0x247   :  { %7248 = vmatprep.subr.bf16.mxu0 %v9215_v14  ;;  %7587 = vmatprep.subr.bf16.mxu1 %v9217_v15  ;;  %v9273_v14 = vcombine.high %v143_v9, %v147_v10  ;;  %v150_v15 = vld [vmem:[%s13813_s2 + $0x250] sm:$0xff]  ;;  %v10374_v7 = vld [vmem:[%s13812_s0 + $0x160] ss:$24 sps:$4 sm:$0xff]  }
 0x248   :  { %6836 = vmatprep.mubr.bf16.mxu0 %v10354_v16  ;;  %7175 = vmatprep.mubr.bf16.mxu1 %v10354_v16  ;;  %v154_v16 = vld [vmem:[%s13813_s2 + $0x270] sm:$0xff]  ;;  %v199_v8 = vld [vmem:[%s13813_s2 + $0x3d8] sm:$0xff] }
 0x249   :  { %v9278_v29 = vcombine.low %v150_v15, %v154_v16 }
 0x24a   :  { %7249 = vmatpush1.bf16.msra.mxu0 %v9214_v21  ;;  %7588 = vmatpush1.bf16.msra.mxu1 %v9216_v22  ;;  %v9272_v21 = vcombine.low %v143_v9, %v147_v10  ;;  %v9279_v22 = vcombine.high %v150_v15, %v154_v16  ;;  %v203_v9 = vld [vmem:[%s13813_s2 + $0x3f8] sm:$0xff]  ;;  %v9318_v10 = vcombine.low %v190_v61, %v194_v62  ;;  %v210_v15 = vld [vmem:[%s13813_s2 + $0x430] sm:$0xff] }
 0x24b   :  { %7250 = vmatprep.subr.bf16.mxu0 %v9223_v23  ;;  %7589 = vmatprep.subr.bf16.mxu1 %v9225_v24  ;;  %v9281_v23 = vcombine.high %v151_v18, %v155_v19  ;;  %v10366_v24 = vld [vmem:[%s13812_s0 + $0x104] ss:$24 sps:$4 sm:$0xff]  }
 0x24c   :  { %v207_v16 = vld [vmem:[%s13813_s2 + $0x418] sm:$0xff] }
 0x24d   :  { %6837 = vmatmul.mubr.bf16.gmra.mrb[4].mxu0 %v10356_v27  ;;  %7176 = vmatmul.mubr.bf16.gmra.mrb[4].mxu1 %v10356_v27  ;;  %v159_v27 = vld [vmem:[%s13813_s2 + $0x298] sm:$0xff] }
 0x24e   :  { %7251 = vmatpush1.bf16.msra.mxu0 %v9222_v30  ;;  %7590 = vmatpush1.bf16.msra.mxu1 %v9224_v31  ;;  %v9280_v30 = vcombine.low %v151_v18, %v155_v19  ;;  %v9287_v31 = vcombine.high %v158_v25, %v162_v26  ;;  %v9328_v19 = vcombine.low %v199_v8, %v203_v9  ;;  %v215_v25 = vld [vmem:[%s13813_s2 + $0x458] sm:$0xff] }
 0x24f   :  { %7252 = vmatprep.subr.bf16.mxu0 %v9231_v32  ;;  %7591 = vmatprep.subr.bf16.mxu1 %v9233_v33  ;;  %v9289_v32 = vcombine.high %v159_v27, %v163_v28  ;;  %v166_v33 = vld [vmem:[%s13813_s2 + $0x2d0] sm:$0xff]  ;;  %v219_v26 = vld [vmem:[%s13813_s2 + $0x478] sm:$0xff] }
 0x250   :  { %6846 = vmatprep.mubr.bf16.mxu0 %v10357_v34  ;;  %7185 = vmatprep.mubr.bf16.mxu1 %v10357_v34  ;;  %v170_v34 = vld [vmem:[%s13813_s2 + $0x2f0] sm:$0xff] }
 0x251   :  { %v9294_v47 = vcombine.low %v166_v33, %v170_v34 }
 0x252   :  { %7253 = vmatpush1.bf16.msra.mxu0 %v9230_v39  ;;  %7592 = vmatpush1.bf16.msra.mxu1 %v9232_v40  ;;  %v9288_v39 = vcombine.low %v159_v27, %v163_v28  ;;  %v9295_v40 = vcombine.high %v166_v33, %v170_v34  ;;  %v10428_v33 = vld [vmem:[%s13812_s0] ss:$24 sps:$4 sm:$0xff]  }
 0x253   :  { %7254 = vmatprep.subr.bf16.mxu0 %v9239_v41  ;;  %7593 = vmatprep.subr.bf16.mxu1 %v9241_v42  ;;  %v9297_v41 = vcombine.high %v167_v36, %v171_v37  ;;  %v10369_v42 = vld [vmem:[%s13812_s0 + $0x134] ss:$24 sps:$4 sm:$0xff]   ;;  %v223_v34 = vld [vmem:[%s13813_s2 + $0x498] sm:$0xff] }
 0x255   :  { %6847 = vmatmul.mubr.bf16.gmra.mrb[8].mxu0 %v10359_v45  ;;  %7186 = vmatmul.mubr.bf16.gmra.mrb[8].mxu1 %v10359_v45  ;;  %v175_v45 = vld [vmem:[%s13813_s2 + $0x318] sm:$0xff] }
 0x256   :  { %7255 = vmatpush1.bf16.msra.mxu0 %v9238_v48  ;;  %7594 = vmatpush1.bf16.msra.mxu1 %v9240_v49  ;;  %v9296_v48 = vcombine.low %v167_v36, %v171_v37  ;;  %v9303_v49 = vcombine.high %v174_v43, %v178_v44  ;;  %v9344_v37 = vcombine.low %v215_v25, %v219_v26  ;;  %v231_v43 = vld [vmem:[%s13813_s2 + $0x4d8] sm:$0xff] }
 0x257   :  { %7256 = vmatprep.subr.bf16.mxu0 %v9247_v50  ;;  %7595 = vmatprep.subr.bf16.mxu1 %v9249_v51  ;;  %v9305_v50 = vcombine.high %v175_v45, %v179_v46  ;;  %v182_v51 = vld [vmem:[%s13813_s2 + $0x350] sm:$0xff]  ;;  %v235_v44 = vld [vmem:[%s13813_s2 + $0x4f8] sm:$0xff] }
 0x258   :  { %6856 = vmatprep.mubr.bf16.mxu0 %v10360_v52  ;;  %7195 = vmatprep.mubr.bf16.mxu1 %v10360_v52  ;;  %v186_v52 = vld [vmem:[%s13813_s2 + $0x370] sm:$0xff] }
 0x259   :  { %v9310_v1 = vcombine.low %v182_v51, %v186_v52 }
 0x25a   :  { %7257 = vmatpush1.bf16.msra.mxu0 %v9246_v57  ;;  %7596 = vmatpush1.bf16.msra.mxu1 %v9248_v58  ;;  %v9304_v57 = vcombine.low %v175_v45, %v179_v46  ;;  %v9311_v58 = vcombine.high %v182_v51, %v186_v52  ;;  %v10430_v51 = vld [vmem:[%s13812_s0 + $0x30] ss:$24 sps:$4 sm:$0xff]   ;;  %v239_v52 = vld [vmem:[%s13813_s2 + $0x518] sm:$0xff] }
 0x25b   :  { %7258 = vmatprep.subr.bf16.mxu0 %v9255_v59  ;;  %7597 = vmatprep.subr.bf16.mxu1 %v9257_v60  ;;  %v9313_v59 = vcombine.high %v183_v54, %v187_v55  ;;  %v10372_v60 = vld [vmem:[%s13812_s0 + $0x164] ss:$24 sps:$4 sm:$0xff]  }
 0x25d   :  { %6857 = vmatmul.mubr.bf16.gmra.mrb[12].mxu0 %v10362_v63  ;;  %7196 = vmatmul.mubr.bf16.gmra.mrb[12].mxu1 %v10362_v63  ;;  %v191_v63 = vld [vmem:[%s13813_s2 + $0x398] sm:$0xff] }
 0x25e   :  { %7259 = vmatpush1.bf16.msra.mxu0 %v9254_v2  ;;  %7598 = vmatpush1.bf16.msra.mxu1 %v9256_v3  ;;  %v9312_v2 = vcombine.low %v183_v54, %v187_v55  ;;  %v9319_v3 = vcombine.high %v190_v61, %v194_v62  ;;  %v9360_v55 = vcombine.low %v231_v43, %v235_v44  ;;  %v247_v61 = vld [vmem:[%s13813_s2 + $0x558] sm:$0xff] }
 0x25f   :  { %7260 = vmatprep.subr.bf16.mxu0 %v9263_v4  ;;  %7599 = vmatprep.subr.bf16.mxu1 %v9265_v5  ;;  %v9321_v4 = vcombine.high %v191_v63, %v195_v0  ;;  %v198_v5 = vld [vmem:[%s13813_s2 + $0x3d0] sm:$0xff]  ;;  %v251_v62 = vld [vmem:[%s13813_s2 + $0x578] sm:$0xff] }
 0x260   :  { %6866 = vmatprep.mubr.bf16.mxu0 %v10363_v6  ;;  %7205 = vmatprep.mubr.bf16.mxu1 %v10363_v6  ;;  %v202_v6 = vld [vmem:[%s13813_s2 + $0x3f0] sm:$0xff] }
 0x261   :  { %v9326_v18 = vcombine.low %v198_v5, %v202_v6 }
 0x262   :  { %7261 = vmatpush1.bf16.msra.mxu0 %v9262_v11  ;;  %7600 = vmatpush1.bf16.msra.mxu1 %v9264_v12  ;;  %v9320_v11 = vcombine.low %v191_v63, %v195_v0  ;;  %v9327_v12 = vcombine.high %v198_v5, %v202_v6  ;;  %v10432_v5 = vld [vmem:[%s13812_s0 + $0x60] ss:$24 sps:$4 sm:$0xff]  }
 0x263   :  { %7262 = vmatprep.subr.bf16.mxu0 %v9271_v13  ;;  %7601 = vmatprep.subr.bf16.mxu1 %v9273_v14  ;;  %v9329_v13 = vcombine.high %v199_v8, %v203_v9  ;;  %v206_v14 = vld [vmem:[%s13813_s2 + $0x410] sm:$0xff]  ;;  %v255_v6 = vld [vmem:[%s13813_s2 + $0x598] sm:$0xff]  ;;  %v9376_v9 = vcombine.low %v247_v61, %v251_v62 }
 0x264   :  { %v9334_v27 = vcombine.low %v206_v14, %v210_v15 }
 0x265   :  { %6867 = vmatmul.mubr.bf16.gmra.mrb[16].mxu0 %v10365_v17  ;;  %7206 = vmatmul.mubr.bf16.gmra.mrb[16].mxu1 %v10365_v17  ;;  %v211_v17 = vld [vmem:[%s13813_s2 + $0x438] sm:$0xff] }
 0x266   :  { %7263 = vmatpush1.bf16.msra.mxu0 %v9270_v20  ;;  %7602 = vmatpush1.bf16.msra.mxu1 %v9272_v21  ;;  %v9335_v20 = vcombine.high %v206_v14, %v210_v15  ;;  %v10427_v21 = vld [vmem:[%s13812_s0 + $0x4] ss:$24 sps:$4 sm:$0xff]   ;;  %v9336_v28 = vcombine.low %v207_v16, %v211_v17  ;;  %v266_v14 = vld [vmem:[%s13813_s2 + $0x5f0] sm:$0xff] }
 0x267   :  { %7264 = vmatprep.subr.bf16.mxu0 %v9279_v22  ;;  %7603 = vmatprep.subr.bf16.mxu1 %v9281_v23  ;;  %v9337_v22 = vcombine.high %v207_v16, %v211_v17  ;;  %v214_v23 = vld [vmem:[%s13813_s2 + $0x450] sm:$0xff]  ;;  %v263_v15 = vld [vmem:[%s13813_s2 + $0x5d8] sm:$0xff] }
 0x268   :  { %6876 = vmatprep.mubr.bf16.mxu0 %v10366_v24  ;;  %7215 = vmatprep.mubr.bf16.mxu1 %v10366_v24  ;;  %v218_v24 = vld [vmem:[%s13813_s2 + $0x470] sm:$0xff]  ;;  %v267_v16 = vld [vmem:[%s13813_s2 + $0x5f8] sm:$0xff] }
 0x269   :  { %v9342_v36 = vcombine.low %v214_v23, %v218_v24 }
 0x26a   :  { %7265 = vmatpush1.bf16.msra.mxu0 %v9278_v29  ;;  %7604 = vmatpush1.bf16.msra.mxu1 %v9280_v30  ;;  %v9343_v29 = vcombine.high %v214_v23, %v218_v24  ;;  %v9345_v30 = vcombine.high %v215_v25, %v219_v26  ;;  %v10434_v23 = vld [vmem:[%s13812_s0 + $0x90] ss:$24 sps:$4 sm:$0xff]   ;;  %v271_v24 = vld [vmem:[%s13813_s2 + $0x618] sm:$0xff] }
 0x26b   :  { %7266 = vmatprep.subr.bf16.mxu0 %v9287_v31  ;;  %7605 = vmatprep.subr.bf16.mxu1 %v9289_v32  ;;  %v222_v31 = vld [vmem:[%s13813_s2 + $0x490] sm:$0xff]  ;;  %v275_v25 = vld [vmem:[%s13813_s2 + $0x638] sm:$0xff] }
 0x26c   :  { %v226_v32 = vld [vmem:[%s13813_s2 + $0x4b0] sm:$0xff] }
 0x26d   :  { %6877 = vmatmul.mubr.bf16.gmra.mrb[20].mxu0 %v10368_v35  ;;  %7216 = vmatmul.mubr.bf16.gmra.mrb[20].mxu1 %v10368_v35  ;;  %v227_v35 = vld [vmem:[%s13813_s2 + $0x4b8] sm:$0xff]  ;;  %v9350_v45 = vcombine.low %v222_v31, %v226_v32 }
 0x26e   :  { %7267 = vmatpush1.bf16.msra.mxu0 %v9286_v38  ;;  %7606 = vmatpush1.bf16.msra.mxu1 %v9288_v39  ;;  %v9351_v38 = vcombine.high %v222_v31, %v226_v32  ;;  %v10429_v39 = vld [vmem:[%s13812_s0 + $0x34] ss:$24 sps:$4 sm:$0xff]   ;;  %v9352_v46 = vcombine.low %v223_v34, %v227_v35 }
 0x26f   :  { %7268 = vmatprep.subr.bf16.mxu0 %v9295_v40  ;;  %7607 = vmatprep.subr.bf16.mxu1 %v9297_v41  ;;  %v9353_v40 = vcombine.high %v223_v34, %v227_v35  ;;  %v230_v41 = vld [vmem:[%s13813_s2 + $0x4d0] sm:$0xff]  ;;  %v283_v34 = vld [vmem:[%s13813_s2 + $0x678] sm:$0xff] }
 0x270   :  { %6886 = vmatprep.mubr.bf16.mxu0 %v10369_v42  ;;  %7225 = vmatprep.mubr.bf16.mxu1 %v10369_v42  ;;  %v234_v42 = vld [vmem:[%s13813_s2 + $0x4f0] sm:$0xff] }
 0x271   :  { %v9358_v54 = vcombine.low %v230_v41, %v234_v42  ;;  %v278_v31 = vld [vmem:[%s13813_s2 + $0x650] sm:$0xff] }
 0x272   :  { %7269 = vmatpush1.bf16.msra.mxu0 %v9294_v47  ;;  %7608 = vmatpush1.bf16.msra.mxu1 %v9296_v48  ;;  %v9359_v47 = vcombine.high %v230_v41, %v234_v42  ;;  %v9361_v48 = vcombine.high %v231_v43, %v235_v44  ;;  %v282_v32 = vld [vmem:[%s13813_s2 + $0x670] sm:$0xff]  ;;  %v10436_v41 = vld [vmem:[%s13812_s0 + $0xc0] ss:$24 sps:$4 sm:$0xff]  }
 0x273   :  { %7270 = vmatprep.subr.bf16.mxu0 %v9303_v49  ;;  %7609 = vmatprep.subr.bf16.mxu1 %v9305_v50  ;;  %v238_v49 = vld [vmem:[%s13813_s2 + $0x510] sm:$0xff]  ;;  %v287_v42 = vld [vmem:[%s13813_s2 + $0x698] sm:$0xff]  ;;  %v9406_v44 = vcombine.low %v278_v31, %v282_v32 }
 0x274   :  { %v242_v50 = vld [vmem:[%s13813_s2 + $0x530] sm:$0xff]  ;;  %v291_v43 = vld [vmem:[%s13813_s2 + $0x6b8] sm:$0xff] }
 0x275   :  { %6887 = vmatmul.mubr.bf16.gmra.mrb[24].mxu0 %v10371_v53  ;;  %7226 = vmatmul.mubr.bf16.gmra.mrb[24].mxu1 %v10371_v53  ;;  %v243_v53 = vld [vmem:[%s13813_s2 + $0x538] sm:$0xff]  ;;  %v9366_v63 = vcombine.low %v238_v49, %v242_v50 }
 0x276   :  { %7271 = vmatpush1.bf16.msra.mxu0 %v9302_v56  ;;  %7610 = vmatpush1.bf16.msra.mxu1 %v9304_v57  ;;  %v9367_v56 = vcombine.high %v238_v49, %v242_v50  ;;  %v10431_v57 = vld [vmem:[%s13812_s0 + $0x64] ss:$24 sps:$4 sm:$0xff]   ;;  %v9368_v0 = vcombine.low %v239_v52, %v243_v53  ;;  %v294_v49 = vld [vmem:[%s13813_s2 + $0x6d0] sm:$0xff] }
 0x277   :  { %7272 = vmatprep.subr.bf16.mxu0 %v9311_v58  ;;  %7611 = vmatprep.subr.bf16.mxu1 %v9313_v59  ;;  %v9369_v58 = vcombine.high %v239_v52, %v243_v53  ;;  %v246_v59 = vld [vmem:[%s13813_s2 + $0x550] sm:$0xff]  ;;  %v299_v52 = vld [vmem:[%s13813_s2 + $0x6f8] sm:$0xff] }
 0x278   :  { %6896 = vmatprep.mubr.bf16.mxu0 %v10372_v60  ;;  %7235 = vmatprep.mubr.bf16.mxu1 %v10372_v60  ;;  %v250_v60 = vld [vmem:[%s13813_s2 + $0x570] sm:$0xff] }
 0x279   :  { %v9374_v8 = vcombine.low %v246_v59, %v250_v60  ;;  %v298_v50 = vld [vmem:[%s13813_s2 + $0x6f0] sm:$0xff] }
 0x27a   :  { %7273 = vmatpush1.bf16.msra.mxu0 %v9310_v1  ;;  %7612 = vmatpush1.bf16.msra.mxu1 %v9312_v2  ;;  %v9375_v1 = vcombine.high %v246_v59, %v250_v60  ;;  %v9377_v2 = vcombine.high %v247_v61, %v251_v62  ;;  %v10438_v59 = vld [vmem:[%s13812_s0 + $0xf0] ss:$24 sps:$4 sm:$0xff]   ;;  %v303_v60 = vld [vmem:[%s13813_s2 + $0x718] sm:$0xff]  ;;  %v9422_v62 = vcombine.low %v294_v49, %v298_v50 }
 0x27b   :  { %7274 = vmatprep.subr.bf16.mxu0 %v9319_v3  ;;  %7613 = vmatprep.subr.bf16.mxu1 %v9321_v4  ;;  %v254_v3 = vld [vmem:[%s13813_s2 + $0x590] sm:$0xff]  ;;  %v307_v61 = vld [vmem:[%s13813_s2 + $0x738] sm:$0xff] }
 0x27c   :  { %v258_v4 = vld [vmem:[%s13813_s2 + $0x5b0] sm:$0xff] }
 0x27d   :  { %6897 = vmatmul.mubr.bf16.gmra.mrb[28].mxu0 %v10374_v7  ;;  %7236 = vmatmul.mubr.bf16.gmra.mrb[28].mxu1 %v10374_v7  ;;  %v259_v7 = vld [vmem:[%s13813_s2 + $0x5b8] sm:$0xff]  ;;  %v9382_v17 = vcombine.low %v254_v3, %v258_v4 }
 0x27e   :  { %7275 = vmatpush1.bf16.msra.mxu0 %v9318_v10  ;;  %7614 = vmatpush1.bf16.msra.mxu1 %v9320_v11  ;;  %v9383_v10 = vcombine.high %v254_v3, %v258_v4  ;;  %v10433_v11 = vld [vmem:[%s13812_s0 + $0x94] ss:$24 sps:$4 sm:$0xff]  }
 0x27f   :  { %7276 = vmatprep.subr.bf16.mxu0 %v9327_v12  ;;  %7615 = vmatprep.subr.bf16.mxu1 %v9329_v13  ;;  %v9385_v12 = vcombine.high %v255_v6, %v259_v7  ;;  %v262_v13 = vld [vmem:[%s13813_s2 + $0x5d0] sm:$0xff] }
 0x280   :  { %7278 = vmatprep.mubr.bf16.mxu0 %v10427_v21  ;;  %7617 = vmatprep.mubr.bf16.mxu1 %v10427_v21  ;;  %v270_v21 = vld [vmem:[%s13813_s2 + $0x610] sm:$0xff]  ;;  %v9390_v26 = vcombine.low %v262_v13, %v266_v14 }
 0x281   :  { %v310_v3 = vld [vmem:[%s13813_s2 + $0x750] sm:$0xff] }
 0x282   :  { %7277 = vmatpush1.bf16.msra.mxu0 %v9326_v18  ;;  %7616 = vmatpush1.bf16.msra.mxu1 %v9328_v19  ;;  %v9384_v18 = vcombine.low %v255_v6, %v259_v7  ;;  %v9391_v19 = vcombine.high %v262_v13, %v266_v14  ;;  %v314_v4 = vld [vmem:[%s13813_s2 + $0x770] sm:$0xff]  ;;  %v315_v6 = vld [vmem:[%s13813_s2 + $0x778] sm:$0xff] }
 0x283   :  { %7359 = vmatprep.subr.bf16.mxu0 %v9335_v20  ;;  %7698 = vmatprep.subr.bf16.mxu1 %v9337_v22  ;;  %v9393_v20 = vcombine.high %v263_v15, %v267_v16  ;;  %v274_v22 = vld [vmem:[%s13813_s2 + $0x630] sm:$0xff]  ;;  %v10440_v13 = vld [vmem:[%s13812_s0 + $0x120] ss:$24 sps:$4 sm:$0xff]  }
 0x284   :  { %v9398_v35 = vcombine.low %v270_v21, %v274_v22  ;;  %v319_v14 = vld [vmem:[%s13813_s2 + $0x798] sm:$0xff] }
 0x285   :  { %7279 = vmatmul.mubr.bf16.vlgmr.msra.gmra.mrb[32].mxu0 %v10428_v33  ;;  %7618 = vmatmul.mubr.bf16.vlgmr.msra.gmra.mrb[32].mxu1 %v10428_v33  ;;  %v279_v33 = vld [vmem:[%s13813_s2 + $0x658] sm:$0xff] }
 0x286   :  { %7360 = vmatpush1.bf16.msra.mxu0 %v9334_v27  ;;  %7699 = vmatpush1.bf16.msra.mxu1 %v9336_v28  ;;  %v9392_v27 = vcombine.low %v263_v15, %v267_v16  ;;  %v9399_v28 = vcombine.high %v270_v21, %v274_v22  ;;  %v323_v15 = vld [vmem:[%s13813_s2 + $0x7b8] sm:$0xff]  ;;  %v9438_v16 = vcombine.low %v310_v3, %v314_v4  ;;  %v326_v21 = vld [vmem:[%s13813_s2 + $0x7d0] sm:$0xff] }
 0x287   :  { %7361 = vmatprep.subr.bf16.mxu0 %v9343_v29  ;;  %7700 = vmatprep.subr.bf16.mxu1 %v9345_v30  ;;  %v10435_v29 = vld [vmem:[%s13812_s0 + $0xc4] ss:$24 sps:$4 sm:$0xff]   ;;  %v9401_v30 = vcombine.high %v271_v24, %v275_v25  ;;  %v330_v22 = vld [vmem:[%s13813_s2 + $0x7f0] sm:$0xff] }
 0x288   :  { %7288 = vmatprep.mubr.bf16.mxu0 %v10429_v39  ;;  %7627 = vmatprep.mubr.bf16.mxu1 %v10429_v39  ;;  %v286_v39 = vld [vmem:[%s13813_s2 + $0x690] sm:$0xff] }
 0x28a   :  { %7362 = vmatpush1.bf16.msra.mxu0 %v9342_v36  ;;  %7701 = vmatpush1.bf16.msra.mxu1 %v9344_v37  ;;  %v9400_v36 = vcombine.low %v271_v24, %v275_v25  ;;  %v9407_v37 = vcombine.high %v278_v31, %v282_v32  ;;  %v331_v24 = vld [vmem:[%s13813_s2 + $0x7f8] sm:$0xff]  ;;  %v10442_v31 = vld [vmem:[%s13812_s0 + $0x150] ss:$24 sps:$4 sm:$0xff]  }
 0x28b   :  { %7363 = vmatprep.subr.bf16.mxu0 %v9351_v38  ;;  %7702 = vmatprep.subr.bf16.mxu1 %v9353_v40  ;;  %v9409_v38 = vcombine.high %v279_v33, %v283_v34  ;;  %v290_v40 = vld [vmem:[%s13813_s2 + $0x6b0] sm:$0xff]  ;;  %v335_v32 = vld [vmem:[%s13813_s2 + $0x818] sm:$0xff] }
 0x28c   :  { %v9414_v53 = vcombine.low %v286_v39, %v290_v40 }
 0x28d   :  { %7289 = vmatmul.mubr.bf16.gmra.mrb[36].mxu0 %v10430_v51  ;;  %7628 = vmatmul.mubr.bf16.gmra.mrb[36].mxu1 %v10430_v51  ;;  %v295_v51 = vld [vmem:[%s13813_s2 + $0x6d8] sm:$0xff] }
 0x28e   :  { %7364 = vmatpush1.bf16.msra.mxu0 %v9350_v45  ;;  %7703 = vmatpush1.bf16.msra.mxu1 %v9352_v46  ;;  %v9408_v45 = vcombine.low %v279_v33, %v283_v34  ;;  %v9415_v46 = vcombine.high %v286_v39, %v290_v40  ;;  %v339_v33 = vld [vmem:[%s13813_s2 + $0x838] sm:$0xff]  ;;  %v9454_v34 = vcombine.low %v326_v21, %v330_v22  ;;  %v342_v39 = vld [vmem:[%s13813_s2 + $0x850] sm:$0xff] }
 0x28f   :  { %7365 = vmatprep.subr.bf16.mxu0 %v9359_v47  ;;  %7704 = vmatprep.subr.bf16.mxu1 %v9361_v48  ;;  %v10437_v47 = vld [vmem:[%s13812_s0 + $0xf4] ss:$24 sps:$4 sm:$0xff]   ;;  %v9417_v48 = vcombine.high %v287_v42, %v291_v43 }
 0x290   :  { %7298 = vmatprep.mubr.bf16.mxu0 %v10431_v57  ;;  %7637 = vmatprep.mubr.bf16.mxu1 %v10431_v57  ;;  %v302_v57 = vld [vmem:[%s13813_s2 + $0x710] sm:$0xff] }
 0x291   :  { %v346_v40 = vld [vmem:[%s13813_s2 + $0x870] sm:$0xff] }
 0x292   :  { %7366 = vmatpush1.bf16.msra.mxu0 %v9358_v54  ;;  %7705 = vmatpush1.bf16.msra.mxu1 %v9360_v55  ;;  %v9416_v54 = vcombine.low %v287_v42, %v291_v43  ;;  %v9423_v55 = vcombine.high %v294_v49, %v298_v50  ;;  %v347_v42 = vld [vmem:[%s13813_s2 + $0x878] sm:$0xff]  ;;  %v10444_v49 = vld [vmem:[%s13812_s0 + $0x8] ss:$24 sps:$4 sm:$0xff]  }
 0x293   :  { %7367 = vmatprep.subr.bf16.mxu0 %v9367_v56  ;;  %7706 = vmatprep.subr.bf16.mxu1 %v9369_v58  ;;  %v9425_v56 = vcombine.high %v295_v51, %v299_v52  ;;  %v306_v58 = vld [vmem:[%s13813_s2 + $0x730] sm:$0xff]  ;;  %v351_v50 = vld [vmem:[%s13813_s2 + $0x898] sm:$0xff] }
 0x294   :  { %v9430_v7 = vcombine.low %v302_v57, %v306_v58 }
 0x295   :  { %7299 = vmatmul.mubr.bf16.gmra.mrb[40].mxu0 %v10432_v5  ;;  %7638 = vmatmul.mubr.bf16.gmra.mrb[40].mxu1 %v10432_v5  ;;  %v311_v5 = vld [vmem:[%s13813_s2 + $0x758] sm:$0xff] }
 0x296   :  { %7368 = vmatpush1.bf16.msra.mxu0 %v9366_v63  ;;  %7707 = vmatpush1.bf16.msra.mxu1 %v9368_v0  ;;  %v9424_v63 = vcombine.low %v295_v51, %v299_v52  ;;  %v9431_v0 = vcombine.high %v302_v57, %v306_v58  ;;  %v355_v51 = vld [vmem:[%s13813_s2 + $0x8b8] sm:$0xff]  ;;  %v9470_v52 = vcombine.low %v342_v39, %v346_v40  ;;  %v358_v57 = vld [vmem:[%s13813_s2 + $0x8d0] sm:$0xff] }
 0x297   :  { %7369 = vmatprep.subr.bf16.mxu0 %v9375_v1  ;;  %7708 = vmatprep.subr.bf16.mxu1 %v9377_v2  ;;  %v10439_v1 = vld [vmem:[%s13812_s0 + $0x124] ss:$24 sps:$4 sm:$0xff]   ;;  %v9433_v2 = vcombine.high %v303_v60, %v307_v61  ;;  %v362_v58 = vld [vmem:[%s13813_s2 + $0x8f0] sm:$0xff] }
 0x298   :  { %7308 = vmatprep.mubr.bf16.mxu0 %v10433_v11  ;;  %7647 = vmatprep.mubr.bf16.mxu1 %v10433_v11  ;;  %v318_v11 = vld [vmem:[%s13813_s2 + $0x790] sm:$0xff] }
 0x29a   :  { %7370 = vmatpush1.bf16.msra.mxu0 %v9374_v8  ;;  %7709 = vmatpush1.bf16.msra.mxu1 %v9376_v9  ;;  %v9432_v8 = vcombine.low %v303_v60, %v307_v61  ;;  %v9439_v9 = vcombine.high %v310_v3, %v314_v4  ;;  %v363_v60 = vld [vmem:[%s13813_s2 + $0x8f8] sm:$0xff] }
 0x29b   :  { %7371 = vmatprep.subr.bf16.mxu0 %v9383_v10  ;;  %7710 = vmatprep.subr.bf16.mxu1 %v9385_v12  ;;  %v9441_v10 = vcombine.high %v311_v5, %v315_v6  ;;  %v322_v12 = vld [vmem:[%s13813_s2 + $0x7b0] sm:$0xff]  ;;  %v367_v4 = vld [vmem:[%s13813_s2 + $0x918] sm:$0xff] }
 0x29c   :  { %v9446_v25 = vcombine.low %v318_v11, %v322_v12  ;;  %v10446_v3 = vld [vmem:[%s13812_s0 + $0x38] ss:$24 sps:$4 sm:$0xff]  }
 0x29d   :  { %7309 = vmatmul.mubr.bf16.gmra.mrb[44].mxu0 %v10434_v23  ;;  %7648 = vmatmul.mubr.bf16.gmra.mrb[44].mxu1 %v10434_v23  ;;  %v327_v23 = vld [vmem:[%s13813_s2 + $0x7d8] sm:$0xff] }
 0x29e   :  { %7372 = vmatpush1.bf16.msra.mxu0 %v9382_v17  ;;  %7711 = vmatpush1.bf16.msra.mxu1 %v9384_v18  ;;  %v9440_v17 = vcombine.low %v311_v5, %v315_v6  ;;  %v9447_v18 = vcombine.high %v318_v11, %v322_v12  ;;  %v371_v5 = vld [vmem:[%s13813_s2 + $0x938] sm:$0xff]  ;;  %v9486_v6 = vcombine.low %v358_v57, %v362_v58  ;;  %v374_v11 = vld [vmem:[%s13813_s2 + $0x950] sm:$0xff] }
 0x29f   :  { %7373 = vmatprep.subr.bf16.mxu0 %v9391_v19  ;;  %7712 = vmatprep.subr.bf16.mxu1 %v9393_v20  ;;  %v10441_v19 = vld [vmem:[%s13812_s0 + $0x154] ss:$24 sps:$4 sm:$0xff]   ;;  %v9449_v20 = vcombine.high %v319_v14, %v323_v15 }
 0x2a0   :  { %7318 = vmatprep.mubr.bf16.mxu0 %v10435_v29  ;;  %7657 = vmatprep.mubr.bf16.mxu1 %v10435_v29  ;;  %v334_v29 = vld [vmem:[%s13813_s2 + $0x810] sm:$0xff] }
 0x2a1   :  { %v378_v12 = vld [vmem:[%s13813_s2 + $0x970] sm:$0xff] }
 0x2a2   :  { %7374 = vmatpush1.bf16.msra.mxu0 %v9390_v26  ;;  %7713 = vmatpush1.bf16.msra.mxu1 %v9392_v27  ;;  %v9448_v26 = vcombine.low %v319_v14, %v323_v15  ;;  %v9455_v27 = vcombine.high %v326_v21, %v330_v22  ;;  %v379_v14 = vld [vmem:[%s13813_s2 + $0x978] sm:$0xff]  ;;  %v10448_v21 = vld [vmem:[%s13812_s0 + $0x68] ss:$24 sps:$4 sm:$0xff]  }
 0x2a3   :  { %7375 = vmatprep.subr.bf16.mxu0 %v9399_v28  ;;  %7714 = vmatprep.subr.bf16.mxu1 %v9401_v30  ;;  %v9457_v28 = vcombine.high %v327_v23, %v331_v24  ;;  %v338_v30 = vld [vmem:[%s13813_s2 + $0x830] sm:$0xff]  ;;  %v383_v22 = vld [vmem:[%s13813_s2 + $0x998] sm:$0xff] }
 0x2a4   :  { %v9462_v43 = vcombine.low %v334_v29, %v338_v30 }
 0x2a5   :  { %7319 = vmatmul.mubr.bf16.gmra.mrb[48].mxu0 %v10436_v41  ;;  %7658 = vmatmul.mubr.bf16.gmra.mrb[48].mxu1 %v10436_v41  ;;  %v343_v41 = vld [vmem:[%s13813_s2 + $0x858] sm:$0xff] }
 0x2a6   :  { %7376 = vmatpush1.bf16.msra.mxu0 %v9398_v35  ;;  %7715 = vmatpush1.bf16.msra.mxu1 %v9400_v36  ;;  %v9456_v35 = vcombine.low %v327_v23, %v331_v24  ;;  %v9463_v36 = vcombine.high %v334_v29, %v338_v30  ;;  %v387_v23 = vld [vmem:[%s13813_s2 + $0x9b8] sm:$0xff]  ;;  %v9502_v24 = vcombine.low %v374_v11, %v378_v12  ;;  %v390_v29 = vld [vmem:[%s13813_s2 + $0x9d0] sm:$0xff] }
 0x2a7   :  { %7377 = vmatprep.subr.bf16.mxu0 %v9407_v37  ;;  %7716 = vmatprep.subr.bf16.mxu1 %v9409_v38  ;;  %v10443_v37 = vld [vmem:[%s13812_s0 + $0xc] ss:$24 sps:$4 sm:$0xff]   ;;  %v9465_v38 = vcombine.high %v335_v32, %v339_v33  ;;  %v394_v30 = vld [vmem:[%s13813_s2 + $0x9f0] sm:$0xff] }
 0x2a8   :  { %7328 = vmatprep.mubr.bf16.mxu0 %v10437_v47  ;;  %7667 = vmatprep.mubr.bf16.mxu1 %v10437_v47  ;;  %v350_v47 = vld [vmem:[%s13813_s2 + $0x890] sm:$0xff] }
 0x2aa   :  { %7378 = vmatpush1.bf16.msra.mxu0 %v9406_v44  ;;  %7717 = vmatpush1.bf16.msra.mxu1 %v9408_v45  ;;  %v9464_v44 = vcombine.low %v335_v32, %v339_v33  ;;  %v9471_v45 = vcombine.high %v342_v39, %v346_v40  ;;  %v395_v32 = vld [vmem:[%s13813_s2 + $0x9f8] sm:$0xff] }
 0x2ab   :  { %7379 = vmatprep.subr.bf16.mxu0 %v9415_v46  ;;  %7718 = vmatprep.subr.bf16.mxu1 %v9417_v48  ;;  %v9473_v46 = vcombine.high %v343_v41, %v347_v42  ;;  %v354_v48 = vld [vmem:[%s13813_s2 + $0x8b0] sm:$0xff]  ;;  %v399_v40 = vld [vmem:[%s13813_s2 + $0xa18] sm:$0xff] }
 0x2ac   :  { %v9478_v61 = vcombine.low %v350_v47, %v354_v48  ;;  %v10450_v39 = vld [vmem:[%s13812_s0 + $0x98] ss:$24 sps:$4 sm:$0xff]  }
 0x2ad   :  { %7329 = vmatmul.mubr.bf16.gmra.mrb[52].mxu0 %v10438_v59  ;;  %7668 = vmatmul.mubr.bf16.gmra.mrb[52].mxu1 %v10438_v59  ;;  %v359_v59 = vld [vmem:[%s13813_s2 + $0x8d8] sm:$0xff] }
 0x2ae   :  { %7380 = vmatpush1.bf16.msra.mxu0 %v9414_v53  ;;  %7719 = vmatpush1.bf16.msra.mxu1 %v9416_v54  ;;  %v9472_v53 = vcombine.low %v343_v41, %v347_v42  ;;  %v9479_v54 = vcombine.high %v350_v47, %v354_v48  ;;  %v403_v41 = vld [vmem:[%s13813_s2 + $0xa38] sm:$0xff]  ;;  %v9518_v42 = vcombine.low %v390_v29, %v394_v30  ;;  %v406_v47 = vld [vmem:[%s13813_s2 + $0xa50] sm:$0xff] }
 0x2af   :  { %7381 = vmatprep.subr.bf16.mxu0 %v9423_v55  ;;  %7720 = vmatprep.subr.bf16.mxu1 %v9425_v56  ;;  %v10445_v55 = vld [vmem:[%s13812_s0 + $0x3c] ss:$24 sps:$4 sm:$0xff]   ;;  %v9481_v56 = vcombine.high %v351_v50, %v355_v51 }
 0x2b0   :  { %7338 = vmatprep.mubr.bf16.mxu0 %v10439_v1  ;;  %7677 = vmatprep.mubr.bf16.mxu1 %v10439_v1  ;;  %v366_v1 = vld [vmem:[%s13813_s2 + $0x910] sm:$0xff] }
 0x2b1   :  { %v410_v48 = vld [vmem:[%s13813_s2 + $0xa70] sm:$0xff] }
 0x2b2   :  { %7382 = vmatpush1.bf16.msra.mxu0 %v9422_v62  ;;  %7721 = vmatpush1.bf16.msra.mxu1 %v9424_v63  ;;  %v9480_v62 = vcombine.low %v351_v50, %v355_v51  ;;  %v9487_v63 = vcombine.high %v358_v57, %v362_v58  ;;  %v411_v50 = vld [vmem:[%s13813_s2 + $0xa78] sm:$0xff]  ;;  %v10452_v57 = vld [vmem:[%s13812_s0 + $0xc8] ss:$24 sps:$4 sm:$0xff]  }
 0x2b3   :  { %7383 = vmatprep.subr.bf16.mxu0 %v9431_v0  ;;  %7722 = vmatprep.subr.bf16.mxu1 %v9433_v2  ;;  %v9489_v0 = vcombine.high %v359_v59, %v363_v60  ;;  %v370_v2 = vld [vmem:[%s13813_s2 + $0x930] sm:$0xff]  ;;  %v415_v58 = vld [vmem:[%s13813_s2 + $0xa98] sm:$0xff] }
 0x2b4   :  { %v9494_v15 = vcombine.low %v366_v1, %v370_v2 }
 0x2b5   :  { %7339 = vmatmul.mubr.bf16.gmra.mrb[56].mxu0 %v10440_v13  ;;  %7678 = vmatmul.mubr.bf16.gmra.mrb[56].mxu1 %v10440_v13  ;;  %v375_v13 = vld [vmem:[%s13813_s2 + $0x958] sm:$0xff] }
 0x2b6   :  { %7384 = vmatpush1.bf16.msra.mxu0 %v9430_v7  ;;  %7723 = vmatpush1.bf16.msra.mxu1 %v9432_v8  ;;  %v9488_v7 = vcombine.low %v359_v59, %v363_v60  ;;  %v9495_v8 = vcombine.high %v366_v1, %v370_v2  ;;  %v419_v59 = vld [vmem:[%s13813_s2 + $0xab8] sm:$0xff]  ;;  %v9534_v60 = vcombine.low %v406_v47, %v410_v48  ;;  %v422_v1 = vld [vmem:[%s13813_s2 + $0xad0] sm:$0xff] }
 0x2b7   :  { %7385 = vmatprep.subr.bf16.mxu0 %v9439_v9  ;;  %7724 = vmatprep.subr.bf16.mxu1 %v9441_v10  ;;  %v10447_v9 = vld [vmem:[%s13812_s0 + $0x6c] ss:$24 sps:$4 sm:$0xff]   ;;  %v9497_v10 = vcombine.high %v367_v4, %v371_v5  ;;  %v426_v2 = vld [vmem:[%s13813_s2 + $0xaf0] sm:$0xff] }
 0x2b8   :  { %7348 = vmatprep.mubr.bf16.mxu0 %v10441_v19  ;;  %7687 = vmatprep.mubr.bf16.mxu1 %v10441_v19  ;;  %v382_v19 = vld [vmem:[%s13813_s2 + $0x990] sm:$0xff] }
 0x2ba   :  { %7386 = vmatpush1.bf16.msra.mxu0 %v9438_v16  ;;  %7725 = vmatpush1.bf16.msra.mxu1 %v9440_v17  ;;  %v9496_v16 = vcombine.low %v367_v4, %v371_v5  ;;  %v9503_v17 = vcombine.high %v374_v11, %v378_v12  ;;  %v427_v4 = vld [vmem:[%s13813_s2 + $0xaf8] sm:$0xff] }
 0x2bb   :  { %7387 = vmatprep.subr.bf16.mxu0 %v9447_v18  ;;  %7726 = vmatprep.subr.bf16.mxu1 %v9449_v20  ;;  %v9505_v18 = vcombine.high %v375_v13, %v379_v14  ;;  %v386_v20 = vld [vmem:[%s13813_s2 + $0x9b0] sm:$0xff]  ;;  %v431_v12 = vld [vmem:[%s13813_s2 + $0xb18] sm:$0xff] }
 0x2bc   :  { %v9510_v33 = vcombine.low %v382_v19, %v386_v20  ;;  %v10454_v11 = vld [vmem:[%s13812_s0 + $0xf8] ss:$24 sps:$4 sm:$0xff]  }
 0x2bd   :  { %7349 = vmatmul.mubr.bf16.gmra.mrb[60].mxu0 %v10442_v31  ;;  %7688 = vmatmul.mubr.bf16.gmra.mrb[60].mxu1 %v10442_v31  ;;  %v391_v31 = vld [vmem:[%s13813_s2 + $0x9d8] sm:$0xff] }
 0x2be   :  { %7388 = vmatpush1.bf16.msra.mxu0 %v9446_v25  ;;  %7727 = vmatpush1.bf16.msra.mxu1 %v9448_v26  ;;  %v9504_v25 = vcombine.low %v375_v13, %v379_v14  ;;  %v9511_v26 = vcombine.high %v382_v19, %v386_v20  ;;  %v435_v13 = vld [vmem:[%s13813_s2 + $0xb38] sm:$0xff]  ;;  %v9550_v14 = vcombine.low %v422_v1, %v426_v2  ;;  %v438_v19 = vld [vmem:[%s13813_s2 + $0xb50] sm:$0xff] }
 0x2bf   :  { %7389 = vmatprep.subr.bf16.mxu0 %v9455_v27  ;;  %7728 = vmatprep.subr.bf16.mxu1 %v9457_v28  ;;  %v10449_v27 = vld [vmem:[%s13812_s0 + $0x9c] ss:$24 sps:$4 sm:$0xff]   ;;  %v9513_v28 = vcombine.high %v383_v22, %v387_v23 }
 0x2c0   :  { %7391 = vmatprep.mubr.bf16.mxu0 %v10443_v37  ;;  %7730 = vmatprep.mubr.bf16.mxu1 %v10443_v37  ;;  %v398_v37 = vld [vmem:[%s13813_s2 + $0xa10] sm:$0xff] }
 0x2c1   :  { %v442_v20 = vld [vmem:[%s13813_s2 + $0xb70] sm:$0xff] }
 0x2c2   :  { %7390 = vmatpush1.bf16.msra.mxu0 %v9454_v34  ;;  %7729 = vmatpush1.bf16.msra.mxu1 %v9456_v35  ;;  %v9512_v34 = vcombine.low %v383_v22, %v387_v23  ;;  %v9519_v35 = vcombine.high %v390_v29, %v394_v30  ;;  %v443_v22 = vld [vmem:[%s13813_s2 + $0xb78] sm:$0xff]  ;;  %v10456_v29 = vld [vmem:[%s13812_s0 + $0x128] ss:$24 sps:$4 sm:$0xff]  }
 0x2c3   :  { %7472 = vmatprep.subr.bf16.mxu0 %v9463_v36  ;;  %7811 = vmatprep.subr.bf16.mxu1 %v9465_v38  ;;  %v9521_v36 = vcombine.high %v391_v31, %v395_v32  ;;  %v402_v38 = vld [vmem:[%s13813_s2 + $0xa30] sm:$0xff]  ;;  %v447_v30 = vld [vmem:[%s13813_s2 + $0xb98] sm:$0xff] }
 0x2c4   :  { %v9526_v51 = vcombine.low %v398_v37, %v402_v38 }
 0x2c5   :  { %7392 = vmatmul.mubr.bf16.vlgmr.msra.gmra.mrb[32].mxu0 %v10444_v49  ;;  %7731 = vmatmul.mubr.bf16.vlgmr.msra.gmra.mrb[32].mxu1 %v10444_v49  ;;  %v407_v49 = vld [vmem:[%s13813_s2 + $0xa58] sm:$0xff] }
 0x2c6   :  { %7473 = vmatpush1.bf16.msra.mxu0 %v9462_v43  ;;  %7812 = vmatpush1.bf16.msra.mxu1 %v9464_v44  ;;  %v9520_v43 = vcombine.low %v391_v31, %v395_v32  ;;  %v9527_v44 = vcombine.high %v398_v37, %v402_v38  ;;  %v451_v31 = vld [vmem:[%s13813_s2 + $0xbb8] sm:$0xff]  ;;  %v9566_v32 = vcombine.low %v438_v19, %v442_v20  ;;  %v454_v37 = vld [vmem:[%s13813_s2 + $0xbd0] sm:$0xff] }
 0x2c7   :  { %7474 = vmatprep.subr.bf16.mxu0 %v9471_v45  ;;  %7813 = vmatprep.subr.bf16.mxu1 %v9473_v46  ;;  %v10451_v45 = vld [vmem:[%s13812_s0 + $0xcc] ss:$24 sps:$4 sm:$0xff]   ;;  %v9529_v46 = vcombine.high %v399_v40, %v403_v41  ;;  %v458_v38 = vld [vmem:[%s13813_s2 + $0xbf0] sm:$0xff] }
 0x2c8   :  { %7401 = vmatprep.mubr.bf16.mxu0 %v10445_v55  ;;  %7740 = vmatprep.mubr.bf16.mxu1 %v10445_v55  ;;  %v414_v55 = vld [vmem:[%s13813_s2 + $0xa90] sm:$0xff] }
 0x2ca   :  { %7475 = vmatpush1.bf16.msra.mxu0 %v9470_v52  ;;  %7814 = vmatpush1.bf16.msra.mxu1 %v9472_v53  ;;  %v9528_v52 = vcombine.low %v399_v40, %v403_v41  ;;  %v9535_v53 = vcombine.high %v406_v47, %v410_v48  ;;  %v459_v40 = vld [vmem:[%s13813_s2 + $0xbf8] sm:$0xff]  ;;  %v10459_v48 = vld [vmem:[%s13812_s0 + $0x14] ss:$24 sps:$4 sm:$0xff]  }
 0x2cb   :  { %7476 = vmatprep.subr.bf16.mxu0 %v9479_v54  ;;  %7815 = vmatprep.subr.bf16.mxu1 %v9481_v56  ;;  %v9537_v54 = vcombine.high %v407_v49, %v411_v50  ;;  %v418_v56 = vld [vmem:[%s13813_s2 + $0xab0] sm:$0xff] }
 0x2cc   :  { %v9542_v5 = vcombine.low %v414_v55, %v418_v56 }
 0x2cd   :  { %7402 = vmatmul.mubr.bf16.gmra.mrb[36].mxu0 %v10446_v3  ;;  %7741 = vmatmul.mubr.bf16.gmra.mrb[36].mxu1 %v10446_v3  ;;  %v423_v3 = vld [vmem:[%s13813_s2 + $0xad8] sm:$0xff] }
 0x2ce   :  { %7477 = vmatpush1.bf16.msra.mxu0 %v9478_v61  ;;  %7816 = vmatpush1.bf16.msra.mxu1 %v9480_v62  ;;  %v9536_v61 = vcombine.low %v407_v49, %v411_v50  ;;  %v9543_v62 = vcombine.high %v414_v55, %v418_v56  ;;  %v10460_v49 = vld [vmem:[%s13812_s0 + $0x10] ss:$24 sps:$4 sm:$0xff]   ;;  %v10461_v50 = vld [vmem:[%s13812_s0 + $0x44] ss:$24 sps:$4 sm:$0xff]  }
 0x2cf   :  { %7478 = vmatprep.subr.bf16.mxu0 %v9487_v63  ;;  %7817 = vmatprep.subr.bf16.mxu1 %v9489_v0  ;;  %v10453_v63 = vld [vmem:[%s13812_s0 + $0xfc] ss:$24 sps:$4 sm:$0xff]   ;;  %v9545_v0 = vcombine.high %v415_v58, %v419_v59  ;;  %v13370_v56 = vld [vmem:[%s13814_s4] sm:$0xff] }
 0x2d0   :  { %7411 = vmatprep.mubr.bf16.mxu0 %v10447_v9  ;;  %7750 = vmatprep.mubr.bf16.mxu1 %v10447_v9  ;;  %v430_v9 = vld [vmem:[%s13813_s2 + $0xb10] sm:$0xff] }
 0x2d2   :  { %7479 = vmatpush1.bf16.msra.mxu0 %v9486_v6  ;;  %7818 = vmatpush1.bf16.msra.mxu1 %v9488_v7  ;;  %v9544_v6 = vcombine.low %v415_v58, %v419_v59  ;;  %v9551_v7 = vcombine.high %v422_v1, %v426_v2  ;;  %v10465_v1 = vld [vmem:[%s13812_s0 + $0xa4] ss:$24 sps:$4 sm:$0xff]  }
 0x2d3   :  { %7480 = vmatprep.subr.bf16.mxu0 %v9495_v8  ;;  %7819 = vmatprep.subr.bf16.mxu1 %v9497_v10  ;;  %v9553_v8 = vcombine.high %v423_v3, %v427_v4  ;;  %v434_v10 = vld [vmem:[%s13813_s2 + $0xb30] sm:$0xff] }
 0x2d4   :  { %v9558_v23 = vcombine.low %v430_v9, %v434_v10 }
 0x2d5   :  { %7412 = vmatmul.mubr.bf16.gmra.mrb[40].mxu0 %v10448_v21  ;;  %7751 = vmatmul.mubr.bf16.gmra.mrb[40].mxu1 %v10448_v21  ;;  %v439_v21 = vld [vmem:[%s13813_s2 + $0xb58] sm:$0xff] }
 0x2d6   :  { %7481 = vmatpush1.bf16.msra.mxu0 %v9494_v15  ;;  %7820 = vmatpush1.bf16.msra.mxu1 %v9496_v16  ;;  %v9552_v15 = vcombine.low %v423_v3, %v427_v4  ;;  %v9559_v16 = vcombine.high %v430_v9, %v434_v10 }
 0x2d7   :  { %7482 = vmatprep.subr.bf16.mxu0 %v9503_v17  ;;  %7821 = vmatprep.subr.bf16.mxu1 %v9505_v18  ;;  %v10455_v17 = vld [vmem:[%s13812_s0 + $0x12c] ss:$24 sps:$4 sm:$0xff]   ;;  %v9561_v18 = vcombine.high %v431_v12, %v435_v13 }
 0x2d8   :  { %7421 = vmatprep.mubr.bf16.mxu0 %v10449_v27  ;;  %7760 = vmatprep.mubr.bf16.mxu1 %v10449_v27  ;;  %v446_v27 = vld [vmem:[%s13813_s2 + $0xb90] sm:$0xff] }
 0x2da   :  { %7483 = vmatpush1.bf16.msra.mxu0 %v9502_v24  ;;  %7822 = vmatpush1.bf16.msra.mxu1 %v9504_v25  ;;  %v9560_v24 = vcombine.low %v431_v12, %v435_v13  ;;  %v9567_v25 = vcombine.high %v438_v19, %v442_v20 }
 0x2db   :  { %7484 = vmatprep.subr.bf16.mxu0 %v9511_v26  ;;  %7823 = vmatprep.subr.bf16.mxu1 %v9513_v28  ;;  %v9569_v26 = vcombine.high %v439_v21, %v443_v22  ;;  %v450_v28 = vld [vmem:[%s13813_s2 + $0xbb0] sm:$0xff] }
 0x2dc   :  { %v9574_v41 = vcombine.low %v446_v27, %v450_v28 }
 0x2dd   :  { %7422 = vmatmul.mubr.bf16.gmra.mrb[44].mxu0 %v10450_v39  ;;  %7761 = vmatmul.mubr.bf16.gmra.mrb[44].mxu1 %v10450_v39  ;;  %v455_v39 = vld [vmem:[%s13813_s2 + $0xbd8] sm:$0xff] }
 0x2de   :  { %7485 = vmatpush1.bf16.msra.mxu0 %v9510_v33  ;;  %7824 = vmatpush1.bf16.msra.mxu1 %v9512_v34  ;;  %v9568_v33 = vcombine.low %v439_v21, %v443_v22  ;;  %v9575_v34 = vcombine.high %v446_v27, %v450_v28  ;;  %v9584_v47 = vcombine.low %v455_v39, %v459_v40 }
 0x2df   :  { %7486 = vmatprep.subr.bf16.mxu0 %v9519_v35  ;;  %7825 = vmatprep.subr.bf16.mxu1 %v9521_v36  ;;  %v10457_v35 = vld [vmem:[%s13812_s0 + $0x15c] ss:$24 sps:$4 sm:$0xff]   ;;  %v9577_v36 = vcombine.high %v447_v30, %v451_v31 }
 0x2e0   :  { %7431 = vmatprep.mubr.bf16.mxu0 %v10451_v45  ;;  %7770 = vmatprep.mubr.bf16.mxu1 %v10451_v45  ;;  %v10458_v45 = vld [vmem:[%s13812_s0 + $0x158] ss:$24 sps:$4 sm:$0xff]  }
 0x2e2   :  { %7487 = vmatpush1.bf16.msra.mxu0 %v9518_v42  ;;  %7826 = vmatpush1.bf16.msra.mxu1 %v9520_v43  ;;  %v9576_v42 = vcombine.low %v447_v30, %v451_v31  ;;  %v9583_v43 = vcombine.high %v454_v37, %v458_v38 }
 0x2e3   :  { %7488 = vmatprep.subr.bf16.mxu0 %v9527_v44  ;;  %7827 = vmatprep.subr.bf16.mxu1 %v9529_v46  ;;  %v9585_v44 = vcombine.high %v455_v39, %v459_v40  ;;  %v9582_v46 = vcombine.low %v454_v37, %v458_v38 }
 0x2e5   :  { %7432 = vmatmul.mubr.bf16.gmra.mrb[48].mxu0 %v10452_v57  ;;  %7771 = vmatmul.mubr.bf16.gmra.mrb[48].mxu1 %v10452_v57 }
 0x2e6   :  { %7489 = vmatpush1.bf16.msra.mxu0 %v9526_v51  ;;  %7828 = vmatpush1.bf16.msra.mxu1 %v9528_v52  ;;  %v7926_v51 = vlaneseq  ;;  %v10462_v52 = vld [vmem:[%s13812_s0 + $0x40] ss:$24 sps:$4 sm:$0xff]  }
 0x2e7   :  { %7490 = vmatprep.subr.bf16.mxu0 %v9535_v53  ;;  %7829 = vmatprep.subr.bf16.mxu1 %v9537_v54  ;;  %v10463_v54 = vld [vmem:[%s13812_s0 + $0x74] ss:$24 sps:$4 sm:$0xff]  }
 0x2e8   :  { %7441 = vmatprep.mubr.bf16.mxu0 %v10453_v63  ;;  %7780 = vmatprep.mubr.bf16.mxu1 %v10453_v63  ;;  %v13361_v53 = vshrl.u32 %v7926_v51, 7 }
 0x2ea   :  { %7491 = vmatpush1.bf16.msra.mxu0 %v9534_v60  ;;  %7830 = vmatpush1.bf16.msra.mxu1 %v9536_v61  ;;  %v7928_v55 = vsub.s32 0, %v13361_v53  ;;  %v7936_v57 = vsub.s32 2, %v13361_v53  ;;  %v7932_v58 = vsub.s32 1, %v13361_v53  ;;  %v7940_v59 = vsub.s32 3, %v13361_v53  ;;  %v10464_v60 = vld [vmem:[%s13812_s0 + $0x70] ss:$24 sps:$4 sm:$0xff]  }
 0x2eb   :  { %7492 = vmatprep.subr.bf16.mxu0 %v9543_v62  ;;  %7831 = vmatprep.subr.bf16.mxu1 %v9545_v0  ;;  %v13384_v62 = vld [vmem:[%s13815_s5] sm:$0xff] }
 0x2ec   :  { %v13379_v61 = vrot.slane %v13370_v56, %v7928_v55  ;;  %v13387_v63 = vrot.slane %v13370_v56, %v7936_v57  ;;  %v13390_v0 = vrot.slane %v13370_v56, %v7932_v58  ;;  %v13396_v2 = vrot.slane %v13370_v56, %v7940_v59 }
 0x2ed   :  { %7442 = vmatmul.mubr.bf16.gmra.mrb[52].mxu0 %v10454_v11  ;;  %7781 = vmatmul.mubr.bf16.gmra.mrb[52].mxu1 %v10454_v11  ;;  %v13404_v9 = vrot.slane %v13384_v62, %v7936_v57  ;;  %v13408_v11 = vrot.slane %v13384_v62, %v7932_v58 }
 0x2ee   :  { %7493 = vmatpush1.bf16.msra.mxu0 %v9542_v5  ;;  %7832 = vmatpush1.bf16.msra.mxu1 %v9544_v6  ;;  %v13400_v5 = vrot.slane %v13384_v62, %v7928_v55 }
 0x2ef   :  { %7494 = vmatprep.subr.bf16.mxu0 %v9551_v7  ;;  %7833 = vmatprep.subr.bf16.mxu1 %v9553_v8 }
 0x2f0   :  { %7451 = vmatprep.mubr.bf16.mxu0 %v10455_v17  ;;  %7790 = vmatprep.mubr.bf16.mxu1 %v10455_v17 }
 0x2f2   :  { %7495 = vmatpush1.bf16.msra.mxu0 %v9550_v14  ;;  %7834 = vmatpush1.bf16.msra.mxu1 %v9552_v15 }
 0x2f3   :  { %7496 = vmatprep.subr.bf16.mxu0 %v9559_v16  ;;  %7835 = vmatprep.subr.bf16.mxu1 %v9561_v18  ;;  %v13412_v16 = vrot.slane %v13384_v62, %v7940_v59 }
 0x2f5   :  { %7452 = vmatmul.mubr.bf16.gmra.mrb[56].mxu0 %v10456_v29  ;;  %7791 = vmatmul.mubr.bf16.gmra.mrb[56].mxu1 %v10456_v29  ;;  %v10466_v29 = vld [vmem:[%s13812_s0 + $0xa0] ss:$24 sps:$4 sm:$0xff]  }
 0x2f6   :  { %7497 = vmatpush1.bf16.msra.mxu0 %v9558_v23  ;;  %7836 = vmatpush1.bf16.msra.mxu1 %v9560_v24 }
 0x2f7   :  { %7498 = vmatprep.subr.bf16.mxu0 %v9567_v25  ;;  %7837 = vmatprep.subr.bf16.mxu1 %v9569_v26 }
 0x2f8   :  { %7461 = vmatprep.mubr.bf16.mxu0 %v10457_v35  ;;  %7800 = vmatprep.mubr.bf16.mxu1 %v10457_v35 }
 0x2fa   :  { %7499 = vmatpush1.bf16.msra.mxu0 %v9566_v32  ;;  %7838 = vmatpush1.bf16.msra.mxu1 %v9568_v33  ;;  %v10467_v33 = vld [vmem:[%s13812_s0 + $0xd4] ss:$24 sps:$4 sm:$0xff]  }
 0x2fb   :  { %7500 = vmatprep.subr.bf16.mxu0 %v9575_v34  ;;  %7839 = vmatprep.subr.bf16.mxu1 %v9577_v36 }
 0x2fd   :  { %7462 = vmatmul.mubr.bf16.gmra.mrb[60].mxu0 %v10458_v45  ;;  %7801 = vmatmul.mubr.bf16.gmra.mrb[60].mxu1 %v10458_v45 }
 0x2fe   :  { %7501 = vmatpush1.bf16.msra.mxu0 %v9574_v41  ;;  %7840 = vmatpush1.bf16.msra.mxu1 %v9576_v42 }
 0x2ff   :  { %7502 = vmatprep.subr.bf16.mxu0 %v9583_v43  ;;  %7841 = vmatprep.subr.bf16.mxu1 %v9585_v44 }
 0x300   :  { %7504 = vmatprep.mubr.bf16.mxu0 %v10459_v48  ;;  %7843 = vmatprep.mubr.bf16.mxu1 %v10459_v48 }
 0x302   :  { %7503 = vmatpush1.bf16.msra.mxu0 %v9582_v46  ;;  %7842 = vmatpush1.bf16.msra.mxu1 %v9584_v47 }
 0x305   :  { %7505 = vmatmul.mubr.bf16.vlgmr.msra.gmra.mrb[32].mxu0 %v10460_v49  ;;  %7844 = vmatmul.mubr.bf16.vlgmr.msra.gmra.mrb[32].mxu1 %v10460_v49 }
 0x306   :  { %7514 = vmatprep.mubr.bf16.mxu0 %v10461_v50  ;;  %7853 = vmatprep.mubr.bf16.mxu1 %v10461_v50 }
 0x30d   :  { %7515 = vmatmul.mubr.bf16.gmra.mrb[36].mxu0 %v10462_v52  ;;  %7854 = vmatmul.mubr.bf16.gmra.mrb[36].mxu1 %v10462_v52 }
 0x30e   :  { %7524 = vmatprep.mubr.bf16.mxu0 %v10463_v54  ;;  %7863 = vmatprep.mubr.bf16.mxu1 %v10463_v54 }
 0x315   :  { %7525 = vmatmul.mubr.bf16.gmra.mrb[40].mxu0 %v10464_v60  ;;  %7864 = vmatmul.mubr.bf16.gmra.mrb[40].mxu1 %v10464_v60 }
 0x316   :  { %7534 = vmatprep.mubr.bf16.mxu0 %v10465_v1  ;;  %7873 = vmatprep.mubr.bf16.mxu1 %v10465_v1 }
 0x318   :  { %v6828_v3 = vpop.f32.mrb[0].mxu0  ;;  %v7167_v6 = vpop.f32.mrb[0].mxu1 }
 0x319   :  { %v7966_v4 = vadd.f32 %v13379_v61, %v6828_v3  ;;  %v6830_v7 = vpop.f32.mrb[1].mxu0  ;;  %v7968_v8 = vadd.f32 %v13387_v63, %v7167_v6  ;;  %v7169_v12 = vpop.f32.mrb[1].mxu1 }
 0x31a   :  { %v7967_v10 = vadd.f32 %v13390_v0, %v6830_v7  ;;  %v6832_v13 = vpop.f32.mrb[2].mxu0  ;;  %v7969_v15 = vadd.f32 %v13396_v2, %v7169_v12  ;;  %v7171_v18 = vpop.f32.mrb[2].mxu1 }
 0x31b   :  { %v8094_v14 = vmax.f32 %v7966_v4, 0.0  ;;  %v7974_v17 = vadd.f32 %v13379_v61, %v6832_v13  ;;  %v6834_v19 = vpop.f32.mrb[3].mxu0  ;;  %v8096_v20 = vmax.f32 %v7968_v8, 0.0  ;;  %v7976_v22 = vadd.f32 %v13387_v63, %v7171_v18  ;;  %v7173_v24 = vpop.f32.mrb[3].mxu1  ;;  %v10468_v13 = vld [vmem:[%s13812_s0 + $0xd0] ss:$24 sps:$4 sm:$0xff]  }
 0x31c   :  { %v8095_v21 = vmax.f32 %v7967_v10, 0.0  ;;  %v7975_v23 = vadd.f32 %v13390_v0, %v6834_v19  ;;  %v8097_v26 = vmax.f32 %v7969_v15, 0.0  ;;  %v7977_v28 = vadd.f32 %v13396_v2, %v7173_v24 }
 0x31d   :  { %v8264_v25 = vmul.f32 %v13400_v5, %v8094_v14  ;;  %v8102_v27 = vmax.f32 %v7974_v17, 0.0  ;;  %7535 = vmatmul.mubr.bf16.gmra.mrb[44].mxu0 %v10466_v29  ;;  %v8104_v31 = vmax.f32 %v7976_v22, 0.0  ;;  %7874 = vmatmul.mubr.bf16.gmra.mrb[44].mxu1 %v10466_v29  ;;  %v8266_v36 = vmul.f32 %v13404_v9, %v8096_v20  ;;  %v10469_v20 = vld [vmem:[%s13812_s0 + $0x104] ss:$24 sps:$4 sm:$0xff]  }
 0x31e   :  { %v8265_v30 = vmul.f32 %v13408_v11, %v8095_v21  ;;  %v8103_v32 = vmax.f32 %v7975_v23, 0.0  ;;  %7544 = vmatprep.mubr.bf16.mxu0 %v10467_v33  ;;  %v8105_v35 = vmax.f32 %v7977_v28, 0.0  ;;  %7883 = vmatprep.mubr.bf16.mxu1 %v10467_v33  ;;  %v8267_v40 = vmul.f32 %v13412_v16, %v8097_v26 }
 0x31f   :  { %v8272_v34 = vmul.f32 %v13400_v5, %v8102_v27  ;;  %v8274_v41 = vmul.f32 %v13404_v9, %v8104_v31 }
 0x320   :  { %v8392_v37 = vadd.f32 %v8265_v30, %v8264_v25  ;;  %v8273_v38 = vmul.f32 %v13408_v11, %v8103_v32  ;;  %v6838_v39 = vpop.f32.mrb[4].mxu0  ;;  %v7177_v43 = vpop.f32.mrb[4].mxu1  ;;  %v8275_v52 = vmul.f32 %v13412_v16, %v8105_v35 }
 0x321   :  { %v7982_v42 = vadd.f32 %v13379_v61, %v6838_v39  ;;  %v6840_v44 = vpop.f32.mrb[5].mxu0  ;;  %v7984_v47 = vadd.f32 %v13387_v63, %v7177_v43  ;;  %v7179_v49 = vpop.f32.mrb[5].mxu1 }
 0x322   :  { %v8393_v45 = vadd.f32 %v8392_v37, %v8266_v36  ;;  %v8401_v46 = vadd.f32 %v8273_v38, %v8272_v34  ;;  %v7983_v48 = vadd.f32 %v13390_v0, %v6840_v44  ;;  %v6842_v50 = vpop.f32.mrb[6].mxu0  ;;  %v7985_v55 = vadd.f32 %v13396_v2, %v7179_v49  ;;  %v7181_v58 = vpop.f32.mrb[6].mxu1 }
 0x323   :  { %v8110_v54 = vmax.f32 %v7982_v42, 0.0  ;;  %v7990_v57 = vadd.f32 %v13379_v61, %v6842_v50  ;;  %v6844_v59 = vpop.f32.mrb[7].mxu0  ;;  %v8112_v3 = vmax.f32 %v7984_v47, 0.0  ;;  %v7183_v6 = vpop.f32.mrb[7].mxu1  ;;  %v7992_v12 = vadd.f32 %v13387_v63, %v7181_v58 }
 0x324   :  { %v13437_v60 = vadd.f32 %v8393_v45, %v8267_v40  ;;  %v8402_v1 = vadd.f32 %v8401_v46, %v8274_v41  ;;  %v8111_v4 = vmax.f32 %v7983_v48, 0.0  ;;  %v8113_v8 = vmax.f32 %v7985_v55, 0.0 }
 0x325   :  { %v8280_v7 = vmul.f32 %v13400_v5, %v8110_v54  ;;  %v8118_v10 = vmax.f32 %v7990_v57, 0.0  ;;  %7545 = vmatmul.mubr.bf16.gmra.mrb[48].mxu0 %v10468_v13  ;;  %v7991_v17 = vadd.f32 %v13390_v0, %v6844_v59  ;;  %7884 = vmatmul.mubr.bf16.gmra.mrb[48].mxu1 %v10468_v13  ;;  %v8120_v18 = vmax.f32 %v7992_v12, 0.0  ;;  %v10470_v54 = vld [vmem:[%s13812_s0 + $0x100] ss:$24 sps:$4 sm:$0xff]  }
 0x326   :  { %v13444_v14 = vadd.f32 %v8402_v1, %v8275_v52  ;;  %v8281_v15 = vmul.f32 %v13408_v11, %v8111_v4  ;;  %v7993_v19 = vadd.f32 %v13396_v2, %v7183_v6  ;;  %7554 = vmatprep.mubr.bf16.mxu0 %v10469_v20  ;;  %7893 = vmatprep.mubr.bf16.mxu1 %v10469_v20  ;;  %v10471_v6 = vld [vmem:[%s13812_s0 + $0x134] ss:$24 sps:$4 sm:$0xff]  }
 0x327   :  { %v8282_v21 = vmul.f32 %v13404_v9, %v8112_v3  ;;  %v8288_v23 = vmul.f32 %v13400_v5, %v8118_v10  ;;  %v8119_v24 = vmax.f32 %v7991_v17, 0.0  ;;  %v8283_v26 = vmul.f32 %v13412_v16, %v8113_v8 }
 0x328   :  { %v8410_v22 = vadd.f32 %v8281_v15, %v8280_v7  ;;  %v6848_v25 = vpop.f32.mrb[8].mxu0  ;;  %v8121_v27 = vmax.f32 %v7993_v19, 0.0  ;;  %v7187_v29 = vpop.f32.mrb[8].mxu1  ;;  %v8290_v37 = vmul.f32 %v13404_v9, %v8120_v18 }
 0x329   :  { %v7998_v28 = vadd.f32 %v13379_v61, %v6848_v25  ;;  %v6850_v30 = vpop.f32.mrb[9].mxu0  ;;  %v8289_v32 = vmul.f32 %v13408_v11, %v8119_v24  ;;  %v8000_v33 = vadd.f32 %v13387_v63, %v7187_v29  ;;  %v7189_v35 = vpop.f32.mrb[9].mxu1 }
 0x32a   :  { %v8411_v31 = vadd.f32 %v8410_v22, %v8282_v21  ;;  %v7999_v34 = vadd.f32 %v13390_v0, %v6850_v30  ;;  %v6852_v36 = vpop.f32.mrb[10].mxu0  ;;  %v8001_v39 = vadd.f32 %v13396_v2, %v7189_v35  ;;  %v7191_v41 = vpop.f32.mrb[10].mxu1  ;;  %v8291_v55 = vmul.f32 %v13412_v16, %v8121_v27 }
 0x32b   :  { %v8126_v38 = vmax.f32 %v7998_v28, 0.0  ;;  %v8006_v40 = vadd.f32 %v13379_v61, %v6852_v36  ;;  %v6854_v42 = vpop.f32.mrb[11].mxu0  ;;  %v8419_v44 = vadd.f32 %v8289_v32, %v8288_v23  ;;  %v8128_v45 = vmax.f32 %v8000_v33, 0.0  ;;  %v7193_v47 = vpop.f32.mrb[11].mxu1 }
 0x32c   :  { %v13462_v43 = vadd.f32 %v8411_v31, %v8283_v26  ;;  %v8127_v46 = vmax.f32 %v7999_v34, 0.0  ;;  %v8129_v49 = vmax.f32 %v8001_v39, 0.0  ;;  %v8008_v52 = vadd.f32 %v13387_v63, %v7191_v41 }
 0x32d   :  { %v8296_v48 = vmul.f32 %v13400_v5, %v8126_v38  ;;  %v8134_v50 = vmax.f32 %v8006_v40, 0.0  ;;  %7555 = vmatmul.mubr.bf16.gmra.mrb[52].mxu0 %v10470_v54  ;;  %v8420_v57 = vadd.f32 %v8419_v44, %v8290_v37  ;;  %v8007_v59 = vadd.f32 %v13390_v0, %v6854_v42  ;;  %7894 = vmatmul.mubr.bf16.gmra.mrb[52].mxu1 %v10470_v54  ;;  %v10472_v42 = vld [vmem:[%s13812_s0 + $0x130] ss:$24 sps:$4 sm:$0xff]  }
 0x32e   :  { %v8297_v58 = vmul.f32 %v13408_v11, %v8127_v46  ;;  %v8298_v1 = vmul.f32 %v13404_v9, %v8128_v45  ;;  %v8136_v3 = vmax.f32 %v8008_v52, 0.0  ;;  %v8009_v4 = vadd.f32 %v13396_v2, %v7193_v47  ;;  %7564 = vmatprep.mubr.bf16.mxu0 %v10471_v6  ;;  %7903 = vmatprep.mubr.bf16.mxu1 %v10471_v6  ;;  %v10473_v52 = vld [vmem:[%s13812_s0 + $0x164] ss:$24 sps:$4 sm:$0xff]  }
 0x32f   :  { %v13477_v7 = vadd.f32 %v8420_v57, %v8291_v55  ;;  %v8304_v10 = vmul.f32 %v13400_v5, %v8134_v50  ;;  %v8135_v12 = vmax.f32 %v8007_v59, 0.0  ;;  %v8299_v15 = vmul.f32 %v13412_v16, %v8129_v49 }
 0x330   :  { %v8428_v8 = vadd.f32 %v8297_v58, %v8296_v48  ;;  %v6858_v13 = vpop.f32.mrb[12].mxu0  ;;  %v8137_v17 = vmax.f32 %v8009_v4, 0.0  ;;  %v7197_v19 = vpop.f32.mrb[12].mxu1  ;;  %v8306_v27 = vmul.f32 %v13404_v9, %v8136_v3 }
 0x331   :  { %v8014_v18 = vadd.f32 %v13379_v61, %v6858_v13  ;;  %v6860_v20 = vpop.f32.mrb[13].mxu0  ;;  %v8305_v22 = vmul.f32 %v13408_v11, %v8135_v12  ;;  %v8016_v23 = vadd.f32 %v13387_v63, %v7197_v19  ;;  %v7199_v25 = vpop.f32.mrb[13].mxu1 }
 0x332   :  { %v8429_v21 = vadd.f32 %v8428_v8, %v8298_v1  ;;  %v8015_v24 = vadd.f32 %v13390_v0, %v6860_v20  ;;  %v6862_v26 = vpop.f32.mrb[14].mxu0  ;;  %v8017_v29 = vadd.f32 %v13396_v2, %v7199_v25  ;;  %v7201_v31 = vpop.f32.mrb[14].mxu1  ;;  %v8307_v44 = vmul.f32 %v13412_v16, %v8137_v17 }
 0x333   :  { %v8142_v28 = vmax.f32 %v8014_v18, 0.0  ;;  %v8022_v30 = vadd.f32 %v13379_v61, %v6862_v26  ;;  %v6864_v32 = vpop.f32.mrb[15].mxu0  ;;  %v8437_v34 = vadd.f32 %v8305_v22, %v8304_v10  ;;  %v8144_v35 = vmax.f32 %v8016_v23, 0.0  ;;  %v7203_v37 = vpop.f32.mrb[15].mxu1 }
 0x334   :  { %v13488_v33 = vadd.f32 %v8429_v21, %v8299_v15  ;;  %v8143_v36 = vmax.f32 %v8015_v24, 0.0  ;;  %v8145_v39 = vmax.f32 %v8017_v29, 0.0  ;;  %v8024_v41 = vadd.f32 %v13387_v63, %v7201_v31 }
 0x335   :  { %v8312_v38 = vmul.f32 %v13400_v5, %v8142_v28  ;;  %v8150_v40 = vmax.f32 %v8022_v30, 0.0  ;;  %7565 = vmatmul.mubr.bf16.gmra.mrb[56].mxu0 %v10472_v42  ;;  %v8438_v45 = vadd.f32 %v8437_v34, %v8306_v27  ;;  %v8023_v47 = vadd.f32 %v13390_v0, %v6864_v32  ;;  %7904 = vmatmul.mubr.bf16.gmra.mrb[56].mxu1 %v10472_v42 }
 0x336   :  { %v8313_v46 = vmul.f32 %v13408_v11, %v8143_v36  ;;  %v8314_v48 = vmul.f32 %v13404_v9, %v8144_v35  ;;  %v8152_v49 = vmax.f32 %v8024_v41, 0.0  ;;  %v8025_v50 = vadd.f32 %v13396_v2, %v7203_v37  ;;  %7574 = vmatprep.mubr.bf16.mxu0 %v10473_v52  ;;  %7913 = vmatprep.mubr.bf16.mxu1 %v10473_v52  ;;  %v10474_v35 = vld [vmem:[%s13812_s0 + $0x160] ss:$24 sps:$4 sm:$0xff]  }
 0x337   :  { %v13503_v54 = vadd.f32 %v8438_v45, %v8307_v44  ;;  %v8320_v57 = vmul.f32 %v13400_v5, %v8150_v40  ;;  %v8151_v58 = vmax.f32 %v8023_v47, 0.0  ;;  %v8315_v1 = vmul.f32 %v13412_v16, %v8145_v39 }
 0x338   :  { %v8446_v55 = vadd.f32 %v8313_v46, %v8312_v38  ;;  %v6868_v59 = vpop.f32.mrb[16].mxu0  ;;  %v8153_v3 = vmax.f32 %v8025_v50, 0.0  ;;  %v7207_v6 = vpop.f32.mrb[16].mxu1  ;;  %v8322_v19 = vmul.f32 %v13404_v9, %v8152_v49 }
 0x339   :  { %v8030_v4 = vadd.f32 %v13379_v61, %v6868_v59  ;;  %v6870_v8 = vpop.f32.mrb[17].mxu0  ;;  %v8321_v12 = vmul.f32 %v13408_v11, %v8151_v58  ;;  %v8032_v13 = vadd.f32 %v13387_v63, %v7207_v6  ;;  %v7209_v17 = vpop.f32.mrb[17].mxu1 }
 0x33a   :  { %v8447_v10 = vadd.f32 %v8446_v55, %v8314_v48  ;;  %v8031_v15 = vadd.f32 %v13390_v0, %v6870_v8  ;;  %v6872_v18 = vpop.f32.mrb[18].mxu0  ;;  %v8033_v21 = vadd.f32 %v13396_v2, %v7209_v17  ;;  %v7211_v23 = vpop.f32.mrb[18].mxu1  ;;  %v8323_v36 = vmul.f32 %v13412_v16, %v8153_v3 }
 0x33b   :  { %v8158_v20 = vmax.f32 %v8030_v4, 0.0  ;;  %v8038_v22 = vadd.f32 %v13379_v61, %v6872_v18  ;;  %v6874_v24 = vpop.f32.mrb[19].mxu0  ;;  %v8455_v26 = vadd.f32 %v8321_v12, %v8320_v57  ;;  %v8160_v27 = vmax.f32 %v8032_v13, 0.0  ;;  %v7213_v29 = vpop.f32.mrb[19].mxu1 }
 0x33c   :  { %v13514_v25 = vadd.f32 %v8447_v10, %v8315_v1  ;;  %v8159_v28 = vmax.f32 %v8031_v15, 0.0  ;;  %v8161_v31 = vmax.f32 %v8033_v21, 0.0  ;;  %v8040_v34 = vadd.f32 %v13387_v63, %v7211_v23 }
 0x33d   :  { %v8328_v30 = vmul.f32 %v13400_v5, %v8158_v20  ;;  %v8166_v32 = vmax.f32 %v8038_v22, 0.0  ;;  %7575 = vmatmul.mubr.bf16.gmra.mrb[60].mxu0 %v10474_v35  ;;  %v8456_v37 = vadd.f32 %v8455_v26, %v8322_v19  ;;  %v8039_v39 = vadd.f32 %v13390_v0, %v6874_v24  ;;  %7914 = vmatmul.mubr.bf16.gmra.mrb[60].mxu1 %v10474_v35 }
 0x33e   :  { %v8329_v38 = vmul.f32 %v13408_v11, %v8159_v28  ;;  %v8330_v40 = vmul.f32 %v13404_v9, %v8160_v27  ;;  %v8168_v41 = vmax.f32 %v8040_v34, 0.0  ;;  %v8041_v42 = vadd.f32 %v13396_v2, %v7213_v29 }
 0x33f   :  { %v13526_v44 = vadd.f32 %v8456_v37, %v8323_v36  ;;  %v8336_v46 = vmul.f32 %v13400_v5, %v8166_v32  ;;  %v8167_v47 = vmax.f32 %v8039_v39, 0.0  ;;  %v8331_v49 = vmul.f32 %v13412_v16, %v8161_v31 }
 0x340   :  { %v8464_v45 = vadd.f32 %v8329_v38, %v8328_v30  ;;  %v6878_v48 = vpop.f32.mrb[20].mxu0  ;;  %v8169_v50 = vmax.f32 %v8041_v42, 0.0  ;;  %v7217_v55 = vpop.f32.mrb[20].mxu1  ;;  %v8338_v8 = vmul.f32 %v13404_v9, %v8168_v41 }
 0x341   :  { %v8046_v52 = vadd.f32 %v13379_v61, %v6878_v48  ;;  %v6880_v57 = vpop.f32.mrb[21].mxu0  ;;  %v8337_v59 = vmul.f32 %v13408_v11, %v8167_v47  ;;  %v8048_v1 = vadd.f32 %v13387_v63, %v7217_v55  ;;  %v7219_v4 = vpop.f32.mrb[21].mxu1 }
 0x342   :  { %v8465_v58 = vadd.f32 %v8464_v45, %v8330_v40  ;;  %v8047_v3 = vadd.f32 %v13390_v0, %v6880_v57  ;;  %v6882_v6 = vpop.f32.mrb[22].mxu0  ;;  %v8049_v12 = vadd.f32 %v13396_v2, %v7219_v4  ;;  %v7221_v15 = vpop.f32.mrb[22].mxu1  ;;  %v8339_v28 = vmul.f32 %v13412_v16, %v8169_v50 }
 0x343   :  { %v8174_v10 = vmax.f32 %v8046_v52, 0.0  ;;  %v8054_v13 = vadd.f32 %v13379_v61, %v6882_v6  ;;  %v6884_v17 = vpop.f32.mrb[23].mxu0  ;;  %v8473_v19 = vadd.f32 %v8337_v59, %v8336_v46  ;;  %v8176_v20 = vmax.f32 %v8048_v1, 0.0  ;;  %v7223_v22 = vpop.f32.mrb[23].mxu1 }
 0x344   :  { %v13537_v18 = vadd.f32 %v8465_v58, %v8331_v49  ;;  %v8175_v21 = vmax.f32 %v8047_v3, 0.0  ;;  %v8177_v24 = vmax.f32 %v8049_v12, 0.0  ;;  %v8056_v27 = vadd.f32 %v13387_v63, %v7221_v15 }
 0x345   :  { %v8344_v23 = vmul.f32 %v13400_v5, %v8174_v10  ;;  %v8182_v26 = vmax.f32 %v8054_v13, 0.0  ;;  %v8474_v29 = vadd.f32 %v8473_v19, %v8338_v8  ;;  %v8055_v31 = vadd.f32 %v13390_v0, %v6884_v17 }
 0x346   :  { %v8345_v30 = vmul.f32 %v13408_v11, %v8175_v21  ;;  %v8346_v32 = vmul.f32 %v13404_v9, %v8176_v20  ;;  %v8184_v34 = vmax.f32 %v8056_v27, 0.0  ;;  %v8057_v35 = vadd.f32 %v13396_v2, %v7223_v22 }
 0x347   :  { %v13546_v36 = vadd.f32 %v8474_v29, %v8339_v28  ;;  %v8352_v38 = vmul.f32 %v13400_v5, %v8182_v26  ;;  %v8183_v39 = vmax.f32 %v8055_v31, 0.0  ;;  %v8347_v41 = vmul.f32 %v13412_v16, %v8177_v24 }
 0x348   :  { %v8482_v37 = vadd.f32 %v8345_v30, %v8344_v23  ;;  %v6888_v40 = vpop.f32.mrb[24].mxu0  ;;  %v8185_v42 = vmax.f32 %v8057_v35, 0.0  ;;  %v7227_v46 = vpop.f32.mrb[24].mxu1  ;;  %v8354_v58 = vmul.f32 %v13404_v9, %v8184_v34 }
 0x349   :  { %v8062_v45 = vadd.f32 %v13379_v61, %v6888_v40  ;;  %v6890_v47 = vpop.f32.mrb[25].mxu0  ;;  %v8353_v49 = vmul.f32 %v13408_v11, %v8183_v39  ;;  %v8064_v50 = vadd.f32 %v13387_v63, %v7227_v46  ;;  %v7229_v55 = vpop.f32.mrb[25].mxu1 }
 0x34a   :  { %v8483_v48 = vadd.f32 %v8482_v37, %v8346_v32  ;;  %v8063_v52 = vadd.f32 %v13390_v0, %v6890_v47  ;;  %v6892_v57 = vpop.f32.mrb[26].mxu0  ;;  %v8065_v1 = vadd.f32 %v13396_v2, %v7229_v55  ;;  %v7231_v4 = vpop.f32.mrb[26].mxu1  ;;  %v8355_v22 = vmul.f32 %v13412_v16, %v8185_v42 }
 0x34b   :  { %v8190_v59 = vmax.f32 %v8062_v45, 0.0  ;;  %v8070_v3 = vadd.f32 %v13379_v61, %v6892_v57  ;;  %v6894_v6 = vpop.f32.mrb[27].mxu0  ;;  %v8491_v10 = vadd.f32 %v8353_v49, %v8352_v38  ;;  %v8192_v12 = vmax.f32 %v8064_v50, 0.0  ;;  %v7233_v15 = vpop.f32.mrb[27].mxu1 }
 0x34c   :  { %v13557_v8 = vadd.f32 %v8483_v48, %v8347_v41  ;;  %v8191_v13 = vmax.f32 %v8063_v52, 0.0  ;;  %v8193_v19 = vmax.f32 %v8065_v1, 0.0  ;;  %v8072_v21 = vadd.f32 %v13387_v63, %v7231_v4 }
 0x34d   :  { %v8360_v17 = vmul.f32 %v13400_v5, %v8190_v59  ;;  %v8198_v20 = vmax.f32 %v8070_v3, 0.0  ;;  %v8492_v23 = vadd.f32 %v8491_v10, %v8354_v58  ;;  %v8071_v26 = vadd.f32 %v13390_v0, %v6894_v6 }
 0x34e   :  { %v8361_v24 = vmul.f32 %v13408_v11, %v8191_v13  ;;  %v8362_v27 = vmul.f32 %v13404_v9, %v8192_v12  ;;  %v8200_v28 = vmax.f32 %v8072_v21, 0.0  ;;  %v8073_v29 = vadd.f32 %v13396_v2, %v7233_v15 }
 0x34f   :  { %v13566_v30 = vadd.f32 %v8492_v23, %v8355_v22  ;;  %v8368_v32 = vmul.f32 %v13400_v5, %v8198_v20  ;;  %v8199_v34 = vmax.f32 %v8071_v26, 0.0  ;;  %v8363_v37 = vmul.f32 %v13412_v16, %v8193_v19 }
 0x350   :  { %v8500_v31 = vadd.f32 %v8361_v24, %v8360_v17  ;;  %v6898_v35 = vpop.f32.mrb[28].mxu0  ;;  %v8201_v38 = vmax.f32 %v8073_v29, 0.0  ;;  %v7237_v40 = vpop.f32.mrb[28].mxu1  ;;  %v8370_v50 = vmul.f32 %v13404_v9, %v8200_v28 }
 0x351   :  { %v8078_v39 = vadd.f32 %v13379_v61, %v6898_v35  ;;  %v6900_v41 = vpop.f32.mrb[29].mxu0  ;;  %v8369_v45 = vmul.f32 %v13408_v11, %v8199_v34  ;;  %v8080_v46 = vadd.f32 %v13387_v63, %v7237_v40  ;;  %v7239_v48 = vpop.f32.mrb[29].mxu1  ;;  %v7944_v40 = vsub.s32 4, %v13361_v53 }
 0x352   :  { %v8501_v42 = vadd.f32 %v8500_v31, %v8362_v27  ;;  %v8079_v47 = vadd.f32 %v13390_v0, %v6900_v41  ;;  %v6902_v49 = vpop.f32.mrb[30].mxu0  ;;  %v8081_v55 = vadd.f32 %v13396_v2, %v7239_v48  ;;  %v7241_v58 = vpop.f32.mrb[30].mxu1  ;;  %v8371_v12 = vmul.f32 %v13412_v16, %v8201_v38 }
 0x353   :  { %v8206_v52 = vmax.f32 %v8078_v39, 0.0  ;;  %v8086_v57 = vadd.f32 %v13379_v61, %v6902_v49  ;;  %v6904_v59 = vpop.f32.mrb[31].mxu0  ;;  %v8509_v3 = vadd.f32 %v8369_v45, %v8368_v32  ;;  %v8208_v4 = vmax.f32 %v8080_v46, 0.0  ;;  %v7243_v10 = vpop.f32.mrb[31].mxu1 }
 0x354   :  { %v13577_v1 = vadd.f32 %v8501_v42, %v8363_v37  ;;  %v8207_v6 = vmax.f32 %v8079_v47, 0.0  ;;  %v8088_v17 = vadd.f32 %v13387_v63, %v7241_v58  ;;  %v8209_v21 = vmax.f32 %v8081_v55, 0.0 }
 0x355   :  { %v8376_v13 = vmul.f32 %v13400_v5, %v8206_v52  ;;  %v8214_v15 = vmax.f32 %v8086_v57, 0.0  ;;  %v8510_v19 = vadd.f32 %v8509_v3, %v8370_v50  ;;  %v8087_v61 = vadd.f32 %v13390_v0, %v6904_v59 }
 0x356   :  { %v8377_v20 = vmul.f32 %v13408_v11, %v8207_v6  ;;  %v8378_v22 = vmul.f32 %v13404_v9, %v8208_v4  ;;  %v8089_v24 = vadd.f32 %v13396_v2, %v7243_v10  ;;  %v8216_v28 = vmax.f32 %v8088_v17, 0.0 }
 0x357   :  { %v8384_v23 = vmul.f32 %v13400_v5, %v8214_v15  ;;  %v13587_v26 = vadd.f32 %v8510_v19, %v8371_v12  ;;  %v8215_v29 = vmax.f32 %v8087_v61, 0.0  ;;  %v8379_v31 = vmul.f32 %v13412_v16, %v8209_v21 }
 0x358   :  { %v8518_v27 = vadd.f32 %v8377_v20, %v8376_v13  ;;  %v8217_v34 = vmax.f32 %v8089_v24, 0.0  ;;  %v8386_v0 = vmul.f32 %v13404_v9, %v8216_v28  ;;  %v12_v39 = vstv %s13816_s6 }
 0x359   :  { %v8385_v32 = vmul.f32 %v13408_v11, %v8215_v29  ;;  %13 = vst [vmem:[#allocation2] sm:$0x1] %v12_v39  ;;  %v7952_v11 = vsub.s32 6, %v13361_v53  ;;  %v7948_v41 = vsub.s32 5, %v13361_v53  ;;  %v7956_v42 = vsub.s32 7, %v13361_v53 }
 0x35a   :  { %v8519_v63 = vadd.f32 %v8518_v27, %v8378_v22  ;;  %v8387_v5 = vmul.f32 %v13412_v16, %v8217_v34  ;;  %v13605_v9 = vrot.slane %v13370_v56, %v7944_v40  ;;  %v13618_v49 = vrot.slane %v13384_v62, %v7944_v40 }
 0x35b   :  { %v8527_v37 = vadd.f32 %v8385_v32, %v8384_v23  ;;  %v13608_v16 = vrot.slane %v13370_v56, %v7952_v11  ;;  %v13611_v45 = vrot.slane %v13370_v56, %v7948_v41  ;;  %v13614_v47 = vrot.slane %v13370_v56, %v7956_v42 }
 0x35c   :  { %v13591_v35 = vadd.f32 %v8519_v63, %v8379_v31  ;;  %v13623_v58 = vrot.slane %v13384_v62, %v7948_v41  ;;  %v13630_v21 = vrot.slane %v13384_v62, %v7952_v11  ;;  %v13639_v32 = vrot.slane %v13384_v62, %v7956_v42 }
 0x35d   :  { %v8528_v38 = vadd.f32 %v8527_v37, %v8386_v0 }
 0x35f   :  { %v13595_v2 = vadd.f32 %v8528_v38, %v8387_v5 }
 0x3d8   :  { %v7506_v46 = vpop.f32.mrb[32].mxu0  ;;  %v7845_v50 = vpop.f32.mrb[32].mxu1 }
 0x3d9   :  { %v7970_v48 = vadd.f32 %v13605_v9, %v7506_v46  ;;  %v7508_v52 = vpop.f32.mrb[33].mxu0  ;;  %v7972_v55 = vadd.f32 %v13608_v16, %v7845_v50  ;;  %v7847_v59 = vpop.f32.mrb[33].mxu1 }
 0x3da   :  { %v7971_v57 = vadd.f32 %v13611_v45, %v7508_v52  ;;  %v7510_v3 = vpop.f32.mrb[34].mxu0  ;;  %v7849_v6 = vpop.f32.mrb[34].mxu1  ;;  %v7973_v13 = vadd.f32 %v13614_v47, %v7847_v59 }
 0x3db   :  { %v8098_v4 = vmax.f32 %v7970_v48, 0.0  ;;  %v7978_v56 = vadd.f32 %v13605_v9, %v7510_v3  ;;  %v7512_v10 = vpop.f32.mrb[35].mxu0  ;;  %v7851_v17 = vpop.f32.mrb[35].mxu1  ;;  %v8100_v20 = vmax.f32 %v7972_v55, 0.0  ;;  %v7980_v23 = vadd.f32 %v13608_v16, %v7849_v6 }
 0x3dc   :  { %v8099_v12 = vmax.f32 %v7971_v57, 0.0  ;;  %v7979_v15 = vadd.f32 %v13611_v45, %v7512_v10  ;;  %v7981_v27 = vadd.f32 %v13614_v47, %v7851_v17  ;;  %v8101_v31 = vmax.f32 %v7973_v13, 0.0 }
 0x3dd   :  { %v8268_v19 = vmul.f32 %v13618_v49, %v8098_v4  ;;  %v8106_v61 = vmax.f32 %v7978_v56, 0.0  ;;  %v8270_v0 = vmul.f32 %v13630_v21, %v8100_v20  ;;  %v8108_v11 = vmax.f32 %v7980_v23, 0.0 }
 0x3de   :  { %v8269_v22 = vmul.f32 %v13623_v58, %v8099_v12  ;;  %v8107_v24 = vmax.f32 %v7979_v15, 0.0  ;;  %v8271_v15 = vmul.f32 %v13639_v32, %v8101_v31 }
 0x3df   :  { %v8395_v28 = vadd.f32 %v13437_v60, %v8268_v19  ;;  %v8276_v29 = vmul.f32 %v13618_v49, %v8106_v61  ;;  %v8109_v60 = vmax.f32 %v7981_v27, 0.0  ;;  %v8278_v17 = vmul.f32 %v13630_v21, %v8108_v11 }
 0x3e0   :  { %v8277_v63 = vmul.f32 %v13623_v58, %v8107_v24  ;;  %v7516_v34 = vpop.f32.mrb[36].mxu0  ;;  %v7855_v38 = vpop.f32.mrb[36].mxu1 }
 0x3e1   :  { %v8404_v37 = vadd.f32 %v13444_v14, %v8276_v29  ;;  %v7986_v5 = vadd.f32 %v13605_v9, %v7516_v34  ;;  %v7518_v39 = vpop.f32.mrb[37].mxu0  ;;  %v8396_v40 = vadd.f32 %v8395_v28, %v8269_v22  ;;  %v7988_v41 = vadd.f32 %v13608_v16, %v7855_v38  ;;  %v7857_v48 = vpop.f32.mrb[37].mxu1 }
 0x3e2   :  { %v7987_v46 = vadd.f32 %v13611_v45, %v7518_v39  ;;  %v7520_v50 = vpop.f32.mrb[38].mxu0  ;;  %v7989_v52 = vadd.f32 %v13614_v47, %v7857_v48  ;;  %v7859_v14 = vpop.f32.mrb[38].mxu1  ;;  %v8279_v19 = vmul.f32 %v13639_v32, %v8109_v60 }
 0x3e3   :  { %v8405_v62 = vadd.f32 %v8404_v37, %v8277_v63  ;;  %v8114_v42 = vmax.f32 %v7986_v5, 0.0  ;;  %v7994_v55 = vadd.f32 %v13605_v9, %v7520_v50  ;;  %v7522_v57 = vpop.f32.mrb[39].mxu0  ;;  %v8116_v59 = vmax.f32 %v7988_v41, 0.0  ;;  %v7861_v6 = vpop.f32.mrb[39].mxu1 }
 0x3e4   :  { %v8115_v3 = vmax.f32 %v7987_v46, 0.0  ;;  %v7996_v4 = vadd.f32 %v13608_v16, %v7859_v14  ;;  %v7995_v56 = vadd.f32 %v13611_v45, %v7522_v57  ;;  %v7997_v13 = vadd.f32 %v13614_v47, %v7861_v6 }
 0x3e5   :  { %v8284_v10 = vmul.f32 %v13618_v49, %v8114_v42  ;;  %v8122_v12 = vmax.f32 %v7994_v55, 0.0  ;;  %v8117_v23 = vmax.f32 %v7989_v52, 0.0  ;;  %v8397_v27 = vadd.f32 %v8396_v40, %v8270_v0 }
 0x3e6   :  { %v8285_v20 = vmul.f32 %v13623_v58, %v8115_v3  ;;  %v8123_v61 = vmax.f32 %v7995_v56, 0.0  ;;  %v8286_v28 = vmul.f32 %v13630_v21, %v8116_v59  ;;  %v8124_v29 = vmax.f32 %v7996_v4, 0.0 }
 0x3e7   :  { %v8413_v22 = vadd.f32 %v13462_v43, %v8284_v10  ;;  %v8292_v24 = vmul.f32 %v13618_v49, %v8122_v12  ;;  %v8406_v31 = vadd.f32 %v8405_v62, %v8278_v17  ;;  %v8125_v5 = vmax.f32 %v7997_v13, 0.0 }
 0x3e8   :  { %v8293_v63 = vmul.f32 %v13623_v58, %v8123_v61  ;;  %v7526_v34 = vpop.f32.mrb[40].mxu0  ;;  %v8398_v38 = vadd.f32 %v8397_v27, %v8271_v15  ;;  %v7865_v11 = vpop.f32.mrb[40].mxu1  ;;  %v8294_v56 = vmul.f32 %v13630_v21, %v8124_v29 }
 0x3e9   :  { %v8422_v37 = vadd.f32 %v13477_v7, %v8292_v24  ;;  %v8002_v39 = vadd.f32 %v13605_v9, %v7526_v34  ;;  %v7528_v60 = vpop.f32.mrb[41].mxu0  ;;  %v8004_v43 = vadd.f32 %v13608_v16, %v7865_v11  ;;  %v7867_v0 = vpop.f32.mrb[41].mxu1  ;;  %v8407_v46 = vadd.f32 %v8406_v31, %v8279_v19 }
 0x3ea   :  { %v8003_v41 = vadd.f32 %v13611_v45, %v7528_v60  ;;  %v7530_v40 = vpop.f32.mrb[42].mxu0  ;;  %v8414_v48 = vadd.f32 %v8413_v22, %v8285_v20  ;;  %8399 = vadd.xlane.f32.xlu0 %v8398_v38  ;;  %v8005_v62 = vadd.f32 %v13614_v47, %v7867_v0  ;;  %v7869_v52 = vpop.f32.mrb[42].mxu1  ;;  %v8295_v13 = vmul.f32 %v13639_v32, %v8125_v5 }
 0x3eb   :  { %v8423_v50 = vadd.f32 %v8422_v37, %v8293_v63  ;;  %v8130_v42 = vmax.f32 %v8002_v39, 0.0  ;;  %v8010_v7 = vadd.f32 %v13605_v9, %v7530_v40  ;;  %v7532_v55 = vpop.f32.mrb[43].mxu0  ;;  %v8132_v14 = vmax.f32 %v8004_v43, 0.0  ;;  %v7871_v3 = vpop.f32.mrb[43].mxu1 }
 0x3ec   :  { %v8131_v57 = vmax.f32 %v8003_v41, 0.0  ;;  %v8012_v59 = vadd.f32 %v13608_v16, %v7869_v52  ;;  %v8011_v4 = vadd.f32 %v13611_v45, %v7532_v55  ;;  %v8013_v12 = vadd.f32 %v13614_v47, %v7871_v3 }
 0x3ed   :  { %v8300_v6 = vmul.f32 %v13618_v49, %v8130_v42  ;;  %v8138_v10 = vmax.f32 %v8010_v7, 0.0  ;;  %v8287_v19 = vmul.f32 %v13639_v32, %v8117_v23  ;;  %v8302_v61 = vmul.f32 %v13630_v21, %v8132_v14 }
 0x3ee   :  { %v8301_v15 = vmul.f32 %v13623_v58, %v8131_v57  ;;  %v8139_v17 = vmax.f32 %v8011_v4, 0.0  ;;  %v8133_v22 = vmax.f32 %v8005_v62, 0.0  ;;  %8408 = vadd.xlane.f32.xlu0 %v8407_v46  ;;  %v8140_v27 = vmax.f32 %v8012_v59, 0.0 }
 0x3ef   :  { %v8431_v20 = vadd.f32 %v13488_v33, %v8300_v6  ;;  %v8308_v24 = vmul.f32 %v13618_v49, %v8138_v10  ;;  %v8415_v63 = vadd.f32 %v8414_v48, %v8286_v28  ;;  %v8424_v31 = vadd.f32 %v8423_v50, %v8294_v56 }
 0x3f0   :  { %v8309_v29 = vmul.f32 %v13623_v58, %v8139_v17  ;;  %v7536_v34 = vpop.f32.mrb[44].mxu0  ;;  %v8141_v38 = vmax.f32 %v8013_v12, 0.0  ;;  %v7875_v39 = vpop.f32.mrb[44].mxu1  ;;  %v8303_v57 = vmul.f32 %v13639_v32, %v8133_v22  ;;  %v8310_v56 = vmul.f32 %v13630_v21, %v8140_v27 }
 0x3f1   :  { %v8432_v37 = vadd.f32 %v8431_v20, %v8301_v15  ;;  %v8440_v5 = vadd.f32 %v13503_v54, %v8308_v24  ;;  %v8018_v23 = vadd.f32 %v13605_v9, %v7536_v34  ;;  %v7538_v33 = vpop.f32.mrb[45].mxu0  ;;  %v8416_v11 = vadd.f32 %v8415_v63, %v8287_v19  ;;  %v7877_v41 = vpop.f32.mrb[45].mxu1 }
 0x3f2   :  { %v8020_v60 = vadd.f32 %v13608_v16, %v7875_v39  ;;  %v8019_v43 = vadd.f32 %v13611_v45, %v7538_v33  ;;  %v7540_v0 = vpop.f32.mrb[46].mxu0  ;;  %v8425_v40 = vadd.f32 %v8424_v31, %v8295_v13  ;;  %v8021_v48 = vadd.f32 %v13614_v47, %v7877_v41  ;;  %v7879_v54 = vpop.f32.mrb[46].mxu1 }
 0x3f3   :  { %v8441_v46 = vadd.f32 %v8440_v5, %v8309_v29  ;;  %v8146_v28 = vmax.f32 %v8018_v23, 0.0  ;;  %v8026_v50 = vadd.f32 %v13605_v9, %v7540_v0  ;;  %v7542_v42 = vpop.f32.mrb[47].mxu0  ;;  %8417 = vadd.xlane.f32.xlu1 %v8416_v11  ;;  %v8028_v52 = vadd.f32 %v13608_v16, %v7879_v54  ;;  %v7881_v55 = vpop.f32.mrb[47].mxu1 }
 0x3f4   :  { %v8148_v62 = vmax.f32 %v8020_v60, 0.0  ;;  %v8147_v7 = vmax.f32 %v8019_v43, 0.0  ;;  %v8027_v14 = vadd.f32 %v13611_v45, %v7542_v42  ;;  %v8029_v4 = vadd.f32 %v13614_v47, %v7881_v55 }
 0x3f5   :  { %v8316_v59 = vmul.f32 %v13618_v49, %v8146_v28  ;;  %v8154_v3 = vmax.f32 %v8026_v50, 0.0  ;;  %v8311_v6 = vmul.f32 %v13639_v32, %v8141_v38  ;;  %v8149_v17 = vmax.f32 %v8021_v48, 0.0 }
 0x3f6   :  { %v8317_v10 = vmul.f32 %v13623_v58, %v8147_v7  ;;  %v8155_v12 = vmax.f32 %v8027_v14, 0.0  ;;  %v8318_v15 = vmul.f32 %v13630_v21, %v8148_v62  ;;  %v8156_v20 = vmax.f32 %v8028_v52, 0.0 }
 0x3f7   :  { %v8449_v13 = vadd.f32 %v13514_v25, %v8316_v59  ;;  %v8324_v19 = vmul.f32 %v13618_v49, %v8154_v3  ;;  %8426 = vadd.xlane.f32.xlu1 %v8425_v40  ;;  %v8433_v24 = vadd.f32 %v8432_v37, %v8302_v61  ;;  %v8442_v63 = vadd.f32 %v8441_v46, %v8310_v56 }
 0x3f8   :  { %v8325_v22 = vmul.f32 %v13623_v58, %v8155_v12  ;;  %v7546_v29 = vpop.f32.mrb[48].mxu0  ;;  %v8157_v31 = vmax.f32 %v8029_v4, 0.0  ;;  %v7885_v38 = vpop.f32.mrb[48].mxu1  ;;  %v8319_v42 = vmul.f32 %v13639_v32, %v8149_v17  ;;  %v8326_v55 = vmul.f32 %v13630_v21, %v8156_v20 }
 0x3f9   :  { %v8450_v27 = vadd.f32 %v8449_v13, %v8317_v10  ;;  %v8458_v34 = vadd.f32 %v13526_v44, %v8324_v19  ;;  %v8034_v5 = vadd.f32 %v13605_v9, %v7546_v29  ;;  %v7548_v25 = vpop.f32.mrb[49].mxu0  ;;  %v8434_v23 = vadd.f32 %v8433_v24, %v8303_v57  ;;  %v7887_v33 = vpop.f32.mrb[49].mxu1 }
 0x3fa   :  { %v8036_v39 = vadd.f32 %v13608_v16, %v7885_v38  ;;  %v8443_v11 = vadd.f32 %v8442_v63, %v8311_v6  ;;  %v8035_v60 = vadd.f32 %v13611_v45, %v7548_v25  ;;  %v7550_v43 = vpop.f32.mrb[50].mxu0  ;;  %v8037_v37 = vadd.f32 %v13614_v47, %v7887_v33  ;;  %v7889_v44 = vpop.f32.mrb[50].mxu1 }
 0x3fb   :  { %v8459_v41 = vadd.f32 %v8458_v34, %v8325_v22  ;;  %v8162_v61 = vmax.f32 %v8034_v5, 0.0  ;;  %v8042_v0 = vadd.f32 %v13605_v9, %v7550_v43  ;;  %v7552_v40 = vpop.f32.mrb[51].mxu0  ;;  %8435 = vadd.xlane.f32.xlu0 %v8434_v23  ;;  %v8044_v48 = vadd.f32 %v13608_v16, %v7889_v44  ;;  %v7891_v54 = vpop.f32.mrb[51].mxu1 }
 0x3fc   :  { %v8164_v46 = vmax.f32 %v8036_v39, 0.0  ;;  %8444 = vadd.xlane.f32.xlu1 %v8443_v11  ;;  %v8163_v28 = vmax.f32 %v8035_v60, 0.0  ;;  %v8043_v50 = vadd.f32 %v13611_v45, %v7552_v40  ;;  %v8045_v52 = vadd.f32 %v13614_v47, %v7891_v54 }
 0x3fd   :  { %v8332_v62 = vmul.f32 %v13618_v49, %v8162_v61  ;;  %v8170_v7 = vmax.f32 %v8042_v0, 0.0  ;;  %v8327_v14 = vmul.f32 %v13639_v32, %v8157_v31  ;;  %v8165_v56 = vmax.f32 %v8037_v37, 0.0 }
 0x3fe   :  { %v8333_v57 = vmul.f32 %v13623_v58, %v8163_v28  ;;  %v8171_v59 = vmax.f32 %v8043_v50, 0.0  ;;  %v8334_v4 = vmul.f32 %v13630_v21, %v8164_v46  ;;  %v8172_v10 = vmax.f32 %v8044_v48, 0.0 }
 0x3ff   :  { %v8467_v3 = vadd.f32 %v13537_v18, %v8332_v62  ;;  %v8340_v6 = vmul.f32 %v13618_v49, %v8170_v7  ;;  %v8451_v13 = vadd.f32 %v8450_v27, %v8318_v15  ;;  %v8460_v19 = vadd.f32 %v8459_v41, %v8326_v55 }
 0x400   :  { %v8341_v12 = vmul.f32 %v13623_v58, %v8171_v59  ;;  %v7556_v17 = vpop.f32.mrb[52].mxu0  ;;  %v8173_v24 = vmax.f32 %v8045_v52, 0.0  ;;  %v7895_v63 = vpop.f32.mrb[52].mxu1  ;;  %v8335_v0 = vmul.f32 %v13639_v32, %v8165_v56  ;;  %v8342_v28 = vmul.f32 %v13630_v21, %v8172_v10 }
 0x401   :  { %v8468_v22 = vadd.f32 %v8467_v3, %v8333_v57  ;;  %v8476_v20 = vadd.f32 %v13546_v36, %v8340_v6  ;;  %v8050_v29 = vadd.f32 %v13605_v9, %v7556_v17  ;;  %v7558_v34 = vpop.f32.mrb[53].mxu0  ;;  %v8452_v18 = vadd.f32 %v8451_v13, %v8319_v42  ;;  %v7897_v5 = vpop.f32.mrb[53].mxu1 }
 0x402   :  { %v8052_v31 = vadd.f32 %v13608_v16, %v7895_v63  ;;  %v8461_v38 = vadd.f32 %v8460_v19, %v8327_v14  ;;  %v8051_v25 = vadd.f32 %v13611_v45, %v7558_v34  ;;  %v7560_v23 = vpop.f32.mrb[54].mxu0  ;;  %v8053_v27 = vadd.f32 %v13614_v47, %v7897_v5  ;;  %v7899_v36 = vpop.f32.mrb[54].mxu1 }
 0x403   :  { %v8477_v39 = vadd.f32 %v8476_v20, %v8341_v12  ;;  %v8178_v15 = vmax.f32 %v8050_v29, 0.0  ;;  %v8058_v33 = vadd.f32 %v13605_v9, %v7560_v23  ;;  %v7562_v11 = vpop.f32.mrb[55].mxu0  ;;  %8453 = vadd.xlane.f32.xlu0 %v8452_v18  ;;  %v8060_v41 = vadd.f32 %v13608_v16, %v7899_v36  ;;  %v7901_v37 = vpop.f32.mrb[55].mxu1 }
 0x404   :  { %v8180_v60 = vmax.f32 %v8052_v31, 0.0  ;;  %8462 = vadd.xlane.f32.xlu1 %v8461_v38  ;;  %v8179_v43 = vmax.f32 %v8051_v25, 0.0  ;;  %v8059_v61 = vadd.f32 %v13611_v45, %v7562_v11  ;;  %v8061_v46 = vadd.f32 %v13614_v47, %v7901_v37 }
 0x405   :  { %v8348_v44 = vmul.f32 %v13618_v49, %v8178_v15  ;;  %v8186_v40 = vmax.f32 %v8058_v33, 0.0  ;;  %v8343_v48 = vmul.f32 %v13639_v32, %v8173_v24  ;;  %v8181_v7 = vmax.f32 %v8053_v27, 0.0 }
 0x406   :  { %v8349_v50 = vmul.f32 %v13623_v58, %v8179_v43  ;;  %v8187_v54 = vmax.f32 %v8059_v61, 0.0  ;;  %v8350_v62 = vmul.f32 %v13630_v21, %v8180_v60  ;;  %v8188_v55 = vmax.f32 %v8060_v41, 0.0 }
 0x407   :  { %v8485_v42 = vadd.f32 %v13557_v8, %v8348_v44  ;;  %v8356_v52 = vmul.f32 %v13618_v49, %v8186_v40  ;;  %v8469_v57 = vadd.f32 %v8468_v22, %v8334_v4  ;;  %v8478_v3 = vadd.f32 %v8477_v39, %v8342_v28 }
 0x408   :  { %v8357_v14 = vmul.f32 %v13623_v58, %v8187_v54  ;;  %v7566_v59 = vpop.f32.mrb[56].mxu0  ;;  %v8189_v10 = vmax.f32 %v8061_v46, 0.0  ;;  %v7905_v13 = vpop.f32.mrb[56].mxu1  ;;  %v8351_v15 = vmul.f32 %v13639_v32, %v8181_v7  ;;  %v8358_v11 = vmul.f32 %v13630_v21, %v8188_v55 }
 0x409   :  { %v8486_v56 = vadd.f32 %v8485_v42, %v8349_v50  ;;  %v8494_v6 = vadd.f32 %v13566_v30, %v8356_v52  ;;  %v8066_v12 = vadd.f32 %v13605_v9, %v7566_v59  ;;  %v7568_v17 = vpop.f32.mrb[57].mxu0  ;;  %v8470_v8 = vadd.f32 %v8469_v57, %v8335_v0  ;;  %v7907_v20 = vpop.f32.mrb[57].mxu1 }
 0x40a   :  { %v8068_v19 = vadd.f32 %v13608_v16, %v7905_v13  ;;  %v8479_v24 = vadd.f32 %v8478_v3, %v8343_v48  ;;  %v8067_v29 = vadd.f32 %v13611_v45, %v7568_v17  ;;  %v7570_v63 = vpop.f32.mrb[58].mxu0  ;;  %v8069_v22 = vadd.f32 %v13614_v47, %v7907_v20  ;;  %v7909_v30 = vpop.f32.mrb[58].mxu1 }
 0x40b   :  { %v8495_v34 = vadd.f32 %v8494_v6, %v8357_v14  ;;  %v8194_v4 = vmax.f32 %v8066_v12, 0.0  ;;  %v8074_v18 = vadd.f32 %v13605_v9, %v7570_v63  ;;  %v7572_v31 = vpop.f32.mrb[59].mxu0  ;;  %8471 = vadd.xlane.f32.xlu0 %v8470_v8  ;;  %v8076_v25 = vadd.f32 %v13608_v16, %v7909_v30  ;;  %v7911_v39 = vpop.f32.mrb[59].mxu1 }
 0x40c   :  { %v8196_v5 = vmax.f32 %v8068_v19, 0.0  ;;  %8480 = vadd.xlane.f32.xlu1 %v8479_v24  ;;  %v8195_v38 = vmax.f32 %v8067_v29, 0.0  ;;  %v8075_v23 = vadd.f32 %v13611_v45, %v7572_v31  ;;  %v8077_v36 = vadd.f32 %v13614_v47, %v7911_v39 }
 0x40d   :  { %v8364_v27 = vmul.f32 %v13618_v49, %v8194_v4  ;;  %v8202_v33 = vmax.f32 %v8074_v18, 0.0  ;;  %v8359_v60 = vmul.f32 %v13639_v32, %v8189_v10  ;;  %v8197_v0 = vmax.f32 %v8069_v22, 0.0 }
 0x40e   :  { %v8365_v43 = vmul.f32 %v13623_v58, %v8195_v38  ;;  %v8203_v41 = vmax.f32 %v8075_v23, 0.0  ;;  %v8366_v37 = vmul.f32 %v13630_v21, %v8196_v5  ;;  %v8204_v40 = vmax.f32 %v8076_v25, 0.0 }
 0x40f   :  { %v8503_v61 = vadd.f32 %v13577_v1, %v8364_v27  ;;  %v8372_v44 = vmul.f32 %v13618_v49, %v8202_v33  ;;  %v8487_v28 = vadd.f32 %v8486_v56, %v8350_v62  ;;  %v8496_v50 = vadd.f32 %v8495_v34, %v8358_v11 }
 0x410   :  { %v8373_v46 = vmul.f32 %v13623_v58, %v8203_v41  ;;  %v7576_v48 = vpop.f32.mrb[60].mxu0  ;;  %v8205_v7 = vmax.f32 %v8077_v36, 0.0  ;;  %v7915_v55 = vpop.f32.mrb[60].mxu1  ;;  %v8367_v63 = vmul.f32 %v13639_v32, %v8197_v0 }
 0x411   :  { %v8504_v54 = vadd.f32 %v8503_v61, %v8365_v43  ;;  %v8512_v42 = vadd.f32 %v13587_v26, %v8372_v44  ;;  %v8082_v52 = vadd.f32 %v13605_v9, %v7576_v48  ;;  %v7578_v14 = vpop.f32.mrb[61].mxu0  ;;  %v8488_v1 = vadd.f32 %v8487_v28, %v8351_v15  ;;  %v7917_v59 = vpop.f32.mrb[61].mxu1 }
 0x412   :  { %v8084_v57 = vadd.f32 %v13608_v16, %v7915_v55  ;;  %v8497_v3 = vadd.f32 %v8496_v50, %v8359_v60  ;;  %v8083_v6 = vadd.f32 %v13611_v45, %v7578_v14  ;;  %v7580_v10 = vpop.f32.mrb[62].mxu0  ;;  %v8085_v56 = vadd.f32 %v13614_v47, %v7917_v59  ;;  %v7919_v26 = vpop.f32.mrb[62].mxu1 }
 0x413   :  { %v8513_v12 = vadd.f32 %v8512_v42, %v8373_v46  ;;  %v8210_v62 = vmax.f32 %v8082_v52, 0.0  ;;  %v8090_v13 = vadd.f32 %v13605_v9, %v7580_v10  ;;  %v7582_v17 = vpop.f32.mrb[63].mxu0  ;;  %8489 = vadd.xlane.f32.xlu0 %v8488_v1  ;;  %v8092_v20 = vadd.f32 %v13608_v16, %v7919_v26  ;;  %v7921_v29 = vpop.f32.mrb[63].mxu1 }
 0x414   :  { %v8212_v8 = vmax.f32 %v8084_v57, 0.0  ;;  %8498 = vadd.xlane.f32.xlu1 %v8497_v3  ;;  %v8211_v19 = vmax.f32 %v8083_v6, 0.0  ;;  %v8091_v24 = vadd.f32 %v13611_v45, %v7582_v17  ;;  %v8093_v22 = vadd.f32 %v13614_v47, %v7921_v29 }
 0x415   :  { %v8380_v34 = vmul.f32 %v13618_v49, %v8210_v62  ;;  %v8218_v4 = vmax.f32 %v8090_v13, 0.0  ;;  %v8374_v9 = vmul.f32 %v13630_v21, %v8204_v40  ;;  %v8375_v18 = vmul.f32 %v13639_v32, %v8205_v7 }
 0x416   :  { %v8381_v30 = vmul.f32 %v13623_v58, %v8211_v19  ;;  %v8219_v31 = vmax.f32 %v8091_v24, 0.0  ;;  %v8213_v16 = vmax.f32 %v8085_v56, 0.0  ;;  %v8220_v38 = vmax.f32 %v8092_v20, 0.0 }
 0x417   :  { %v8521_v5 = vadd.f32 %v13591_v35, %v8380_v34  ;;  %v8388_v45 = vmul.f32 %v13618_v49, %v8218_v4  ;;  %v8382_v25 = vmul.f32 %v13630_v21, %v8212_v8  ;;  %v8505_v39 = vadd.f32 %v8504_v54, %v8366_v37 }
 0x418   :  { %v8389_v23 = vmul.f32 %v13623_v58, %v8219_v31  ;;  %v8514_v15 = vadd.f32 %v8513_v12, %v8374_v9  ;;  %v8221_v33 = vmax.f32 %v8093_v22, 0.0  ;;  %v10475_v60 = vmov 0  }
 0x419   :  { %v8522_v47 = vadd.f32 %v8521_v5, %v8381_v30  ;;  %v8530_v27 = vadd.f32 %v13595_v2, %v8388_v45  ;;  %v8506_v36 = vadd.f32 %v8505_v39, %v8367_v63  ;;  %10229 = vset.pattern.permute.xlu0 %v10475_v60  ;;  %10230 = vset.pattern.permute.xlu1 %v10475_v60  ;;  %v9586_v2 = vld [vmem:[#allocation2] ss:$0 sm:$0xff]  ;;  %v8561_v9 = vadd.s32 8, %v13361_v53 }
 0x41a   :  { %v8515_v11 = vadd.f32 %v8514_v15, %v8375_v18  ;;  %v8383_v35 = vmul.f32 %v13639_v32, %v8213_v16  ;;  %v8390_v49 = vmul.f32 %v13630_v21, %v8220_v38  ;;  %v8391_v58 = vmul.f32 %v13639_v32, %v8221_v33 }
 0x41b   :  { %v8531_v43 = vadd.f32 %v8530_v27, %v8389_v23  ;;  %v8523_v41 = vadd.f32 %v8522_v47, %v8382_v25  ;;  %8507 = vadd.xlane.f32.xlu0 %v8506_v36  ;;  %v13774_v18 = vand.u32 127, %v7926_v51  ;;  %v8562_v30 = vadd.s32 16, %v13361_v53 }
 0x41c   :  { %8516 = vadd.xlane.f32.xlu1 %v8515_v11  ;;  %v8563_v5 = vadd.s32 24, %v13361_v53  ;;  %v8564_v45 = vadd.s32 32, %v13361_v53  ;;  %v8565_v51 = vadd.s32 40, %v13361_v53  ;;  %v8566_v47 = vadd.s32 48, %v13361_v53 }
 0x41d   :  { %v8524_v61 = vadd.f32 %v8523_v41, %v8383_v35  ;;  %v8532_v37 = vadd.f32 %v8531_v43, %v8390_v49  ;;  %vm8579_vm0 = vcmp.eq.s32.totalorder %v8561_v9, %v13774_v18  ;;  %vm8578_vm1 = vcmp.eq.s32.totalorder %v13361_v53, %v13774_v18 }
 0x41e   :  { %vm8580_vm2 = vcmp.eq.s32.totalorder %v8562_v30, %v13774_v18  ;;  %vm8581_vm3 = vcmp.eq.s32.totalorder %v8563_v5, %v13774_v18  ;;  %vm8582_vm4 = vcmp.eq.s32.totalorder %v8564_v45, %v13774_v18  ;;  %vm8583_vm5 = vcmp.eq.s32.totalorder %v8565_v51, %v13774_v18 }
 0x41f   :  { %v8533_v0 = vadd.f32 %v8532_v37, %v8391_v58  ;;  %8525 = vadd.xlane.f32.xlu0 %v8524_v61  ;;  %v8567_v11 = vadd.s32 56, %v13361_v53  ;;  %vm8584_vm6 = vcmp.eq.s32.totalorder %v8566_v47, %v13774_v18  ;;  %v8568_v43 = vadd.s32 64, %v13361_v53 }
 0x421   :  { %8534 = vadd.xlane.f32.xlu1 %v8533_v0  ;;  %vm8585_vm7 = vcmp.eq.s32.totalorder %v8567_v11, %v13774_v18  ;;  %vm8586_vm8 = vcmp.eq.s32.totalorder %v8568_v43, %v13774_v18 }
 0x477   :  { %v8400_v44 = vpop.xlane.xlu0 %8399 }
 0x478   :  { %v8543_v40 = vadd.f32 %v9586_v2, %v8400_v44 }
 0x47a   :  { %8596 = vperm.xlu0 %10229, %v8543_v40  }
 0x47b   :  { %v8409_v46 = vpop.xlane.xlu0 %8408 }
 0x47c   :  { %v8544_v28 = vadd.f32 %v9586_v2, %v8409_v46  ;;  %v8570_v46 = vadd.s32 80, %v13361_v53 }
 0x47e   :  { %8601 = vperm.xlu1 %10230, %v8544_v28   ;;  %vm8588_vm10 = vcmp.eq.s32.totalorder %v8570_v46, %v13774_v18 }
 0x480   :  { %v8418_v48 = vpop.xlane.xlu1 %8417 }
 0x481   :  { %v8545_v21 = vadd.f32 %v9586_v2, %v8418_v48 }
 0x483   :  { %8606 = vperm.xlu1 %10230, %v8545_v21  }
 0x484   :  { %v8427_v50 = vpop.xlane.xlu1 %8426 }
 0x485   :  { %v8546_v54 = vadd.f32 %v9586_v2, %v8427_v50 }
 0x487   :  { %8611 = vperm.xlu1 %10230, %v8546_v54   ;;  %v8571_v54 = vadd.s32 88, %v13361_v53 }
 0x488   :  { %v8436_v42 = vpop.xlane.xlu0 %8435 }
 0x489   :  { %v8547_v32 = vadd.f32 %v9586_v2, %v8436_v42  ;;  %v8445_v7 = vpop.xlane.xlu1 %8444  ;;  %vm8589_vm11 = vcmp.eq.s32.totalorder %v8571_v54, %v13774_v18 }
 0x48a   :  { %v8548_v52 = vadd.f32 %v9586_v2, %v8445_v7 }
 0x48b   :  { %8616 = vperm.xlu1 %10230, %v8547_v32  }
 0x48f   :  { %8621 = vperm.xlu1 %10230, %v8548_v52  }
 0x490   :  { %v8454_v55 = vpop.xlane.xlu0 %8453 }
 0x491   :  { %v8549_v14 = vadd.f32 %v9586_v2, %v8454_v55  ;;  %v8463_v1 = vpop.xlane.xlu1 %8462 }
 0x492   :  { %v8550_v57 = vadd.f32 %v9586_v2, %v8463_v1  ;;  %v8573_v1 = vadd.s32 104, %v13361_v53 }
 0x493   :  { %8626 = vperm.xlu1 %10230, %v8549_v14   ;;  %v8572_v14 = vadd.s32 96, %v13361_v53 }
 0x494   :  { %vm8591_vm13 = vcmp.eq.s32.totalorder %v8573_v1, %v13774_v18 }
 0x495   :  { %vm8590_vm12 = vcmp.eq.s32.totalorder %v8572_v14, %v13774_v18 }
 0x497   :  { %8631 = vperm.xlu1 %10230, %v8550_v57  }
 0x498   :  { %v8472_v59 = vpop.xlane.xlu0 %8471 }
 0x499   :  { %v8481_v3 = vpop.xlane.xlu1 %8480  ;;  %v8551_v6 = vadd.f32 %v9586_v2, %v8472_v59 }
 0x49a   :  { %v8552_v10 = vadd.f32 %v9586_v2, %v8481_v3  ;;  %v8574_v3 = vadd.s32 112, %v13361_v53 }
 0x49b   :  { %8636 = vperm.xlu1 %10230, %v8551_v6   ;;  %v8575_v6 = vadd.s32 120, %v13361_v53 }
 0x49c   :  { %8641 = vperm.xlu0 %10229, %v8552_v10   ;;  %vm8592_vm14 = vcmp.eq.s32.totalorder %v8574_v3, %v13774_v18 }
 0x49d   :  { %vm8593_vm15 = vcmp.eq.s32.totalorder %v8575_v6, %v13774_v18 }
 0x4a0   :  { %v8490_v12 = vpop.xlane.xlu0 %8489 }
 0x4a1   :  { %v8499_v62 = vpop.xlane.xlu1 %8498  ;;  %v8553_v56 = vadd.f32 %v9586_v2, %v8490_v12 }
 0x4a2   :  { %v8554_v13 = vadd.f32 %v9586_v2, %v8499_v62 }
 0x4a3   :  { %8646 = vperm.xlu1 %10230, %v8553_v56  }
 0x4a4   :  { %8651 = vperm.xlu0 %10229, %v8554_v13  }
 0x4a8   :  { %v8508_v26 = vpop.xlane.xlu0 %8507 }
 0x4a9   :  { %v8517_v17 = vpop.xlane.xlu1 %8516  ;;  %v8555_v8 = vadd.f32 %v9586_v2, %v8508_v26 }
 0x4aa   :  { %v8556_v19 = vadd.f32 %v9586_v2, %v8517_v17 }
 0x4ab   :  { %8656 = vperm.xlu1 %10230, %v8555_v8  }
 0x4ac   :  { %8661 = vperm.xlu0 %10229, %v8556_v19   ;;  %v8526_v20 = vpop.xlane.xlu0 %8525 }
 0x4ad   :  { %v8557_v24 = vadd.f32 %v9586_v2, %v8526_v20 }
 0x4ae   :  { %v8535_v29 = vpop.xlane.xlu1 %8534 }
 0x4af   :  { %v8558_v63 = vadd.f32 %v9586_v2, %v8535_v29  ;;  %8666 = vperm.xlu1 %10230, %v8557_v24   ;;  %v8569_v2 = vadd.s32 72, %v13361_v53 }
 0x4b1   :  { %8671 = vperm.xlu0 %10229, %v8558_v63   ;;  %vm8587_vm9 = vcmp.eq.s32.totalorder %v8569_v2, %v13774_v18 }
 0x4f9   :  { %v8597_v16 = vpop.permute.xlu0 %8596 }
 0x4fa   :  { %v8674_v23 = vsel %vm8578_vm1, %v8597_v16, 0.0 }
 0x4fd   :  { %v8602_v34 = vpop.permute.xlu1 %8601 }
 0x4fe   :  { %v8675_v25 = vsel %vm8579_vm0, %v8602_v34, 0.0 }
 0x4ff   :  { %v8690_v15 = vadd.f32 %v8675_v25, %v8674_v23 }
 0x502   :  { %v8607_v4 = vpop.permute.xlu1 %8606 }
 0x503   :  { %v8676_v39 = vsel %vm8580_vm2, %v8607_v4, 0.0 }
 0x504   :  { %v8691_v36 = vadd.f32 %v8690_v15, %v8676_v39 }
 0x506   :  { %v8612_v22 = vpop.permute.xlu1 %8611 }
 0x507   :  { %v8677_v33 = vsel %vm8581_vm3, %v8612_v22, 0.0 }
 0x508   :  { %v8692_v35 = vadd.f32 %v8691_v36, %v8677_v33 }
 0x50a   :  { %v8617_v31 = vpop.permute.xlu1 %8616 }
 0x50b   :  { %v8678_v60 = vsel %vm8582_vm4, %v8617_v31, 0.0 }
 0x50c   :  { %v8693_v58 = vadd.f32 %v8692_v35, %v8678_v60 }
 0x50e   :  { %v8622_v38 = vpop.permute.xlu1 %8621 }
 0x50f   :  { %v8679_v41 = vsel %vm8583_vm5, %v8622_v38, 0.0 }
 0x510   :  { %v8694_v37 = vadd.f32 %v8693_v58, %v8679_v41 }
 0x512   :  { %v8627_v27 = vpop.permute.xlu1 %8626 }
 0x513   :  { %v8680_v61 = vsel %vm8584_vm6, %v8627_v27, 0.0 }
 0x514   :  { %v8695_v40 = vadd.f32 %v8694_v37, %v8680_v61 }
 0x516   :  { %v8632_v49 = vpop.permute.xlu1 %8631 }
 0x517   :  { %v8681_v44 = vsel %vm8585_vm7, %v8632_v49, 0.0 }
 0x518   :  { %v8696_v48 = vadd.f32 %v8695_v40, %v8681_v44 }
 0x51a   :  { %v8637_v0 = vpop.permute.xlu1 %8636 }
 0x51b   :  { %v8682_v28 = vsel %vm8586_vm8, %v8637_v0, 0.0  ;;  %v8642_v21 = vpop.permute.xlu0 %8641 }
 0x51c   :  { %v8697_v50 = vadd.f32 %v8696_v48, %v8682_v28  ;;  %v8683_v42 = vsel %vm8587_vm9, %v8642_v21, 0.0 }
 0x51e   :  { %v8698_v52 = vadd.f32 %v8697_v50, %v8683_v42 }
 0x522   :  { %v8647_v32 = vpop.permute.xlu1 %8646 }
 0x523   :  { %v8684_v7 = vsel %vm8588_vm10, %v8647_v32, 0.0  ;;  %v8652_v55 = vpop.permute.xlu0 %8651 }
 0x524   :  { %v8699_v57 = vadd.f32 %v8698_v52, %v8684_v7  ;;  %v8685_v59 = vsel %vm8589_vm11, %v8652_v55, 0.0 }
 0x526   :  { %v8700_v10 = vadd.f32 %v8699_v57, %v8685_v59 }
 0x52a   :  { %v8657_v12 = vpop.permute.xlu1 %8656 }
 0x52b   :  { %v8662_v62 = vpop.permute.xlu0 %8661  ;;  %v8686_v56 = vsel %vm8590_vm12, %v8657_v12, 0.0 }
 0x52c   :  { %v8687_v13 = vsel %vm8591_vm13, %v8662_v62, 0.0  ;;  %v8701_v26 = vadd.f32 %v8700_v10, %v8686_v56 }
 0x52e   :  { %v8702_v17 = vadd.f32 %v8701_v26, %v8687_v13  ;;  %v8667_v8 = vpop.permute.xlu1 %8666 }
 0x52f   :  { %v8688_v19 = vsel %vm8592_vm14, %v8667_v8, 0.0 }
 0x530   :  { %v8672_v20 = vpop.permute.xlu0 %8671  ;;  %v8703_v24 = vadd.f32 %v8702_v17, %v8688_v19 }
 0x531   :  { %v8689_v29 = vsel %vm8593_vm15, %v8672_v20, 0.0 }
 0x532   :  { %v8704_v63 = vadd.f32 %v8703_v24, %v8689_v29 }
 0x534   :  { %v8705_v34 = vrot.slane %v8704_v63, 4 }
 0x536   :  { %v8706_v4 = vadd.f32 %v8705_v34, %v8704_v63 }
 0x538   :  { %v8707_v53 = vrot.slane %v8706_v4, 2 }
 0x53a   :  { %v8708_v22 = vadd.f32 %v8707_v53, %v8706_v4 }
 0x53c   :  { %v8709_v9 = vrot.slane %v8708_v22, 1 }
 0x53e   :  { %v8710_v30 = vadd.f32 %v8709_v9, %v8708_v22 }
 0x540   :  { %v9587_v31 = vmul.f32 -1.442695, %v8710_v30 }
 0x542   :  { %10375 = vpow2.f32 %v9587_v31 }
 0x54c   :  { %v10376_v5 = vpop.eup %10375 }
 0x54d   :  { %v8714_v16 = vadd.f32 1.0, %v10376_v5 }
 0x54f   :  { %10377 = vrcp.f32 %v8714_v16 }
 0x559   :  { %v10378_v45 = vpop.eup %10377 }
 0x55a   :  { %8717 = vst [vmem:[%s13817_s7] sm:$0x1] %v10378_v45 }

</bundles_post_ra>
